<compile_context>
chip_gen: v7x
topology: tpu7x:2x2x1
jax: 0.10.0
libtpu: 0.0.40
codegen_flags: <defaults>
</compile_context>

<pallas_src>
import math

import jax
import jax.numpy as jnp
from jax.experimental import pallas as pl
from jax.experimental.pallas import tpu as pltpu

# ----------------------------- model config ---------------------------------
VOCAB = 64
VOCAB_PAD = 128          # lane-dense LM head / output
D_MODEL = 32
N_HEADS = 4
D_HEAD = D_MODEL // N_HEADS
D_FFN = 64
N_LAYERS = 2
MAX_POS = 64
PAD_ID = 0
NEG_INF = -1e9
LANES = 128


# --------------------------- parameter slab layout ---------------------------
def _round8(n):
    return (n + 7) // 8 * 8


_PER_LAYER_SPEC = [
    ("enc_wqkv", D_MODEL, 3 * D_MODEL), ("enc_bqkv", 1, 3 * D_MODEL),
    ("enc_wo", D_MODEL, D_MODEL), ("enc_bo", 1, D_MODEL),
    ("enc_ln1", 2, D_MODEL),
    ("enc_w1", D_MODEL, D_FFN), ("enc_b1", 1, D_FFN),
    ("enc_w2", D_FFN, D_MODEL), ("enc_b2", 1, D_MODEL),
    ("enc_ln2", 2, D_MODEL),
    ("dec_swqkv", D_MODEL, 3 * D_MODEL), ("dec_sbqkv", 1, 3 * D_MODEL),
    ("dec_swo", D_MODEL, D_MODEL), ("dec_sbo", 1, D_MODEL),
    ("dec_ln1", 2, D_MODEL),
    ("dec_cwq", D_MODEL, D_MODEL), ("dec_cbq", 1, D_MODEL),
    ("dec_cwkv", D_MODEL, 2 * D_MODEL), ("dec_cbkv", 1, 2 * D_MODEL),
    ("dec_cwo", D_MODEL, D_MODEL), ("dec_cbo", 1, D_MODEL),
    ("dec_ln2", 2, D_MODEL),
    ("dec_w1", D_MODEL, D_FFN), ("dec_b1", 1, D_FFN),
    ("dec_w2", D_FFN, D_MODEL), ("dec_b2", 1, D_MODEL),
    ("dec_ln3", 2, D_MODEL),
]


def _build_layout():
    entries = [("enc_emb_ln", 2, D_MODEL), ("dec_emb_ln", 2, D_MODEL)]
    for l in range(N_LAYERS):
        for base, r, c in _PER_LAYER_SPEC:
            entries.append((f"{base}_{l}", r, c))
    entries.append(("lm_w", D_MODEL, VOCAB_PAD))
    entries.append(("lm_b", 1, VOCAB_PAD))

    layout, off = {}, 0
    for name, rows, cols in entries:
        layout[name] = (off, rows, cols)
        off += _round8(rows)           # keep every block sublane-aligned
    return layout, _round8(off)


LAYOUT, SLAB_ROWS = _build_layout()


def pack_params(params):
    """Pack all weights/biases into one lane-aligned f32 slab [SLAB_ROWS, 128]."""
    slab = jnp.zeros((SLAB_ROWS, LANES), jnp.float32)

    def put(s, name, arr):
        off, rows, cols = LAYOUT[name]
        return s.at[off:off + rows, :cols].set(arr.astype(jnp.float32))

    slab = put(slab, "enc_emb_ln", params["enc_emb_ln"])
    slab = put(slab, "dec_emb_ln", params["dec_emb_ln"])
    for l in range(N_LAYERS):
        for base, _, _ in _PER_LAYER_SPEC:
            slab = put(slab, f"{base}_{l}", params[base][l])
    lm_w = jnp.zeros((D_MODEL, VOCAB_PAD), jnp.float32).at[:, :VOCAB].set(
        params["lm_w"])
    lm_b = jnp.zeros((1, VOCAB_PAD), jnp.float32).at[:, :VOCAB].set(
        params["lm_b"])
    slab = put(slab, "lm_w", lm_w)
    slab = put(slab, "lm_b", lm_b)
    return slab


# ------------------------------ fused kernel ---------------------------------
def _simcas_kernel(slab_ref, x_enc_ref, y_dec_ref, enc_bias_ref, dec_bias_ref,
                   out_ref):
    scale = 1.0 / math.sqrt(D_HEAD)

    def P(name):
        off, rows, cols = LAYOUT[name]
        return slab_ref[off:off + rows, :cols]

    def bdot(a, b):
        # bf16 MXU inputs, f32 accumulation.
        return jnp.dot(a.astype(jnp.bfloat16), b.astype(jnp.bfloat16),
                       preferred_element_type=jnp.float32)

    def ln(x, gb):
        # fused residual-add happens at the call site: ln(x + res, gb)
        mean = jnp.mean(x, axis=-1, keepdims=True)
        cen = x - mean
        var = jnp.mean(cen * cen, axis=-1, keepdims=True)
        inv = jax.lax.rsqrt(var + 1e-5)
        return cen * inv * gb[0:1, :] + gb[1:2, :]

    def split_heads(x):
        # [S, D] -> [H, S, Dh]: static lane slices stacked on a new leading axis.
        return jnp.stack(
            [x[:, h * D_HEAD:(h + 1) * D_HEAD] for h in range(N_HEADS)], axis=0)

    def mha(q, k, v, bias, wo, bo):
        """q:[Sq,D] k,v:[Sk,D]; bias broadcasts to [Sq,Sk]; head-batched dots."""
        qh = split_heads(q).astype(jnp.bfloat16)            # [H, Sq, Dh]
        kh = split_heads(k).astype(jnp.bfloat16)            # [H, Sk, Dh]
        vh = split_heads(v).astype(jnp.bfloat16)            # [H, Sk, Dh]
        s = jax.lax.dot_general(                             # [H, Sq, Sk]
            qh, kh, (((2,), (2,)), ((0,), (0,))),
            preferred_element_type=jnp.float32) * scale
        s = s + bias[None, :, :]                             # broadcast once
        m = jnp.max(s, axis=-1, keepdims=True)
        p = jnp.exp(s - m)
        l = jnp.sum(p, axis=-1, keepdims=True)
        o = jax.lax.dot_general(                             # [H, Sq, Dh]
            p.astype(jnp.bfloat16), vh, (((2,), (1,)), ((0,), (0,))),
            preferred_element_type=jnp.float32)
        o = o * pl.reciprocal(l, approx=True)                # deferred softmax norm
        att = jnp.concatenate([o[h] for h in range(N_HEADS)], axis=-1)  # [Sq, D]
        return bdot(att, wo) + bo                            # single wo matmul

    def ffn(x, w1, b1, w2, b2):
        h = bdot(x, w1) + b1
        # TODO(synk): BART uses exact (erf) GELU; tanh approximation used here.
        h = jax.nn.gelu(h, approximate=True)
        return bdot(h, w2) + b2

    # ------------------------------ encoder ----------------------------------
    e_bias = enc_bias_ref[0]                                 # [1, S_enc]
    x = ln(x_enc_ref[0], P("enc_emb_ln"))
    for l in range(N_LAYERS):
        qkv = bdot(x, P(f"enc_wqkv_{l}")) + P(f"enc_bqkv_{l}")
        a = mha(qkv[:, :D_MODEL], qkv[:, D_MODEL:2 * D_MODEL],
                qkv[:, 2 * D_MODEL:], e_bias,
                P(f"enc_wo_{l}"), P(f"enc_bo_{l}"))
        x = ln(x + a, P(f"enc_ln1_{l}"))
        x = ln(x + ffn(x, P(f"enc_w1_{l}"), P(f"enc_b1_{l}"),
                       P(f"enc_w2_{l}"), P(f"enc_b2_{l}")), P(f"enc_ln2_{l}"))
    enc_out = x                                              # [S_enc, D]

    # ------------------------------ decoder ----------------------------------
    d_bias = dec_bias_ref[0]                                 # [S_dec, S_dec]
    y = ln(y_dec_ref[0], P("dec_emb_ln"))
    for l in range(N_LAYERS):
        # masked causal self-attention (fused QKV projection)
        qkv = bdot(y, P(f"dec_swqkv_{l}")) + P(f"dec_sbqkv_{l}")
        a = mha(qkv[:, :D_MODEL], qkv[:, D_MODEL:2 * D_MODEL],
                qkv[:, 2 * D_MODEL:], d_bias,
                P(f"dec_swo_{l}"), P(f"dec_sbo_{l}"))
        y = ln(y + a, P(f"dec_ln1_{l}"))
        # cross-attention (fused KV projection of encoder output); cross mask
        # is identical to the encoder padding mask -> reuse e_bias.
        cq = bdot(y, P(f"dec_cwq_{l}")) + P(f"dec_cbq_{l}")
        ckv = bdot(enc_out, P(f"dec_cwkv_{l}")) + P(f"dec_cbkv_{l}")
        a = mha(cq, ckv[:, :D_MODEL], ckv[:, D_MODEL:], e_bias,
                P(f"dec_cwo_{l}"), P(f"dec_cbo_{l}"))
        y = ln(y + a, P(f"dec_ln2_{l}"))
        # FFN
        y = ln(y + ffn(y, P(f"dec_w1_{l}"), P(f"dec_b1_{l}"),
                       P(f"dec_w2_{l}"), P(f"dec_b2_{l}")), P(f"dec_ln3_{l}"))

    # ------------------------------ LM head ----------------------------------
    out_ref[0] = bdot(y, P("lm_w")) + P("lm_b")              # [S_dec, VOCAB_PAD]


# ------------------------------ forward wrapper -------------------------------
def simcas_forward(params, text_id, candidate_id, pad_token_id=PAD_ID):
    """Reproduces SimCAS.forward (eval mode): returns {'probs': logits}."""
    B, S_enc = text_id.shape
    S_dec = candidate_id.shape[1]

    # mask construction (exact semantics of the PyTorch forward)
    input_mask = text_id != pad_token_id                     # [B, S_enc]
    cand_mask = candidate_id != pad_token_id                 # [B, S_dec]
    cand_mask = cand_mask.at[:, 0].set(True)                 # cand_mask[:,0]=1

    # additive biases (un-broadcast; kernel broadcasts over query rows / heads)
    enc_bias = jnp.where(input_mask[:, None, :], 0.0, NEG_INF
                         ).astype(jnp.float32)               # [B, 1, S_enc]
    causal = jnp.tril(jnp.ones((S_dec, S_dec), bool))[None]
    dec_bias = jnp.where(causal & cand_mask[:, None, :], 0.0, NEG_INF
                         ).astype(jnp.float32)               # [B, S_dec, S_dec]

    # embeddings (gather + positional add stay in plain JAX)
    x_enc = (params["tok_emb"][text_id] + params["enc_pos"][None, :S_enc]
             ).astype(jnp.float32)
    y_dec = (params["tok_emb"][candidate_id] + params["dec_pos"][None, :S_dec]
             ).astype(jnp.float32)

    slab = pack_params(params)                               # one param operand

    logits_padded = pl.pallas_call(
        _simcas_kernel,
        out_shape=jax.ShapeDtypeStruct((B, S_dec, VOCAB_PAD), jnp.float32),
        grid=(B,),
        in_specs=[
            pl.BlockSpec((SLAB_ROWS, LANES), lambda b: (0, 0)),     # shared slab
            pl.BlockSpec((1, S_enc, D_MODEL), lambda b: (b, 0, 0)),
            pl.BlockSpec((1, S_dec, D_MODEL), lambda b: (b, 0, 0)),
            pl.BlockSpec((1, 1, S_enc), lambda b: (b, 0, 0)),
            pl.BlockSpec((1, S_dec, S_dec), lambda b: (b, 0, 0)),
        ],
        out_specs=pl.BlockSpec((1, S_dec, VOCAB_PAD), lambda b: (b, 0, 0)),
        compiler_params=pltpu.CompilerParams(
            dimension_semantics=("parallel",)),
    )(slab, x_enc, y_dec, enc_bias, dec_bias)

    return {"probs": logits_padded[:, :, :VOCAB]}


@jax.jit
def _jit_forward(params, text_id, candidate_id):
    return simcas_forward(params, text_id, candidate_id)


# ------------------------------ parameter init -------------------------------
def init_params(key):
    keys = iter(jax.random.split(key, 64))
    L = N_LAYERS

    def w(shape, scale=0.02):
        return jax.random.normal(next(keys), shape, jnp.float32) * scale

    def zeros(shape):
        return jnp.zeros(shape, jnp.float32)

    def ln_pair():
        return jnp.stack([jnp.ones((D_MODEL,), jnp.float32),
                          jnp.zeros((D_MODEL,), jnp.float32)])   # [2, D]

    def ln_stack():
        return jnp.tile(ln_pair()[None], (L, 1, 1))              # [L, 2, D]

    return {
        "tok_emb": w((VOCAB, D_MODEL)),
        "enc_pos": w((MAX_POS, D_MODEL)),
        "dec_pos": w((MAX_POS, D_MODEL)),
        "enc_emb_ln": ln_pair(),
        "dec_emb_ln": ln_pair(),
        # encoder layers (stacked along a leading layer axis)
        "enc_wqkv": w((L, D_MODEL, 3 * D_MODEL)),
        "enc_bqkv": zeros((L, 1, 3 * D_MODEL)),
        "enc_wo": w((L, D_MODEL, D_MODEL)),
        "enc_bo": zeros((L, 1, D_MODEL)),
        "enc_ln1": ln_stack(),
        "enc_w1": w((L, D_MODEL, D_FFN)),
        "enc_b1": zeros((L, 1, D_FFN)),
        "enc_w2": w((L, D_FFN, D_MODEL)),
        "enc_b2": zeros((L, 1, D_MODEL)),
        "enc_ln2": ln_stack(),
        # decoder layers
        "dec_swqkv": w((L, D_MODEL, 3 * D_MODEL)),
        "dec_sbqkv": zeros((L, 1, 3 * D_MODEL)),
        "dec_swo": w((L, D_MODEL, D_MODEL)),
        "dec_sbo": zeros((L, 1, D_MODEL)),
        "dec_ln1": ln_stack(),
        "dec_cwq": w((L, D_MODEL, D_MODEL)),
        "dec_cbq": zeros((L, 1, D_MODEL)),
        "dec_cwkv": w((L, D_MODEL, 2 * D_MODEL)),
        "dec_cbkv": zeros((L, 1, 2 * D_MODEL)),
        "dec_cwo": w((L, D_MODEL, D_MODEL)),
        "dec_cbo": zeros((L, 1, D_MODEL)),
        "dec_ln2": ln_stack(),
        "dec_w1": w((L, D_MODEL, D_FFN)),
        "dec_b1": zeros((L, 1, D_FFN)),
        "dec_w2": w((L, D_FFN, D_MODEL)),
        "dec_b2": zeros((L, 1, D_MODEL)),
        "dec_ln3": ln_stack(),
        # LM head (unpadded; pack_params lane-pads to 128)
        "lm_w": w((D_MODEL, VOCAB)),
        "lm_b": zeros((1, VOCAB)),
    }


# ---------------------------------- main -------------------------------------
if __name__ == "__main__":
    key = jax.random.PRNGKey(0)
    kp, kt, kc = jax.random.split(key, 3)

    params = init_params(kp)

    B, S_ENC, S_DEC = 2, 16, 8
    text_id = jax.random.randint(kt, (B, S_ENC), 1, VOCAB, dtype=jnp.int32)
    candidate_id = jax.random.randint(kc, (B, S_DEC), 1, VOCAB, dtype=jnp.int32)
    # introduce some padding to exercise the masks
    text_id = text_id.at[:, -3:].set(PAD_ID)
    candidate_id = candidate_id.at[:, -2:].set(PAD_ID)
    candidate_id = candidate_id.at[:, 0].set(PAD_ID)  # forced-on first position

    out = _jit_forward(params, text_id, candidate_id)
    probs = jax.block_until_ready(out["probs"])
    assert probs.shape == (B, S_DEC, VOCAB)
    assert bool(jnp.all(jnp.isfinite(probs)))
    print("KERNEL_OK")
</pallas_src>

<mosaic_0001>
module attributes {stable_mosaic.version = 11 : i64} {
  func.func @_simcas_kernel(%arg0: i32, %arg1: memref<1144x128xf32, #tpu.memory_space<vmem>>, %arg2: memref<1x16x32xf32, #tpu.memory_space<vmem>>, %arg3: memref<1x8x32xf32, #tpu.memory_space<vmem>>, %arg4: memref<1x1x16xf32, #tpu.memory_space<vmem>>, %arg5: memref<1x8x8xf32, #tpu.memory_space<vmem>>, %arg6: memref<1x8x128xf32, #tpu.memory_space<vmem>>) attributes {dimension_semantics = [#tpu.dimension_semantics<parallel>], iteration_bounds = array<i64: 2>, scalar_prefetch = 0 : i64, scratch_operands = 0 : i64, tpu.core_type = #tpu.core_type<tc>, window_params = [{pipeline_mode = #tpu.pipeline_mode<synchronous>, transform_indices = @transform_0, window_bounds = array<i64: 1144, 128>}, {transform_indices = @transform_1, window_bounds = array<i64: 1, 16, 32>}, {transform_indices = @transform_2, window_bounds = array<i64: 1, 8, 32>}, {transform_indices = @transform_3, window_bounds = array<i64: 1, 1, 16>}, {transform_indices = @transform_4, window_bounds = array<i64: 1, 8, 8>}, {transform_indices = @transform_5, window_bounds = array<i64: 1, 8, 128>}]} {
    %c0 = arith.constant 0 : index
    %c0_0 = arith.constant 0 : index
    %c0_1 = arith.constant 0 : index
    %0 = vector.load %arg4[%c0, %c0_0, %c0_1] : memref<1x1x16xf32, #tpu.memory_space<vmem>>, vector<1x1x16xf32>
    %1 = vector.shape_cast %0 : vector<1x1x16xf32> to vector<1x16xf32>
    %c0_2 = arith.constant 0 : index
    %c0_3 = arith.constant 0 : index
    %c0_4 = arith.constant 0 : index
    %2 = vector.load %arg2[%c0_2, %c0_3, %c0_4] : memref<1x16x32xf32, #tpu.memory_space<vmem>>, vector<1x16x32xf32>
    %3 = vector.shape_cast %2 : vector<1x16x32xf32> to vector<16x32xf32>
    %c0_5 = arith.constant 0 : index
    %c0_6 = arith.constant 0 : index
    %4 = vector.load %arg1[%c0_5, %c0_6] : memref<1144x128xf32, #tpu.memory_space<vmem>>, vector<2x32xf32>
    %cst = arith.constant dense<0.000000e+00> : vector<16xf32>
    %5 = vector.multi_reduction <add>, %3, %cst [1] : vector<16x32xf32> to vector<16xf32>
    %6 = vector.shape_cast %5 : vector<16xf32> to vector<16x1xf32>
    %cst_7 = arith.constant 3.200000e+01 : f32
    %7 = vector.broadcast %cst_7 : f32 to vector<16x1xf32>
    %8 = arith.divf %6, %7 : vector<16x1xf32>
    %9 = vector.broadcast %8 : vector<16x1xf32> to vector<16x32xf32>
    %10 = arith.subf %3, %9 : vector<16x32xf32>
    %11 = arith.mulf %10, %10 : vector<16x32xf32>
    %cst_8 = arith.constant dense<0.000000e+00> : vector<16xf32>
    %12 = vector.multi_reduction <add>, %11, %cst_8 [1] : vector<16x32xf32> to vector<16xf32>
    %13 = vector.shape_cast %12 : vector<16xf32> to vector<16x1xf32>
    %cst_9 = arith.constant 3.200000e+01 : f32
    %14 = vector.broadcast %cst_9 : f32 to vector<16x1xf32>
    %15 = arith.divf %13, %14 : vector<16x1xf32>
    %cst_10 = arith.constant 9.99999974E-6 : f32
    %16 = vector.broadcast %cst_10 : f32 to vector<16x1xf32>
    %17 = arith.addf %15, %16 : vector<16x1xf32>
    %18 = math.rsqrt %17 : vector<16x1xf32>
    %19 = vector.broadcast %18 : vector<16x1xf32> to vector<16x32xf32>
    %20 = arith.mulf %10, %19 : vector<16x32xf32>
    %21 = vector.extract_strided_slice %4 {offsets = [0, 0], sizes = [1, 32], strides = [1, 1]} : vector<2x32xf32> to vector<1x32xf32>
    %22 = vector.broadcast %21 : vector<1x32xf32> to vector<16x32xf32>
    %23 = arith.mulf %20, %22 : vector<16x32xf32>
    %24 = vector.extract_strided_slice %4 {offsets = [1, 0], sizes = [1, 32], strides = [1, 1]} : vector<2x32xf32> to vector<1x32xf32>
    %25 = vector.broadcast %24 : vector<1x32xf32> to vector<16x32xf32>
    %26 = arith.addf %23, %25 : vector<16x32xf32>
    %c16 = arith.constant 16 : index
    %c0_11 = arith.constant 0 : index
    %27 = vector.load %arg1[%c16, %c0_11] : memref<1144x128xf32, #tpu.memory_space<vmem>>, vector<32x96xf32>
    %28 = arith.truncf %26 : vector<16x32xf32> to vector<16x32xbf16>
    %29 = arith.truncf %27 : vector<32x96xf32> to vector<32x96xbf16>
    %cst_12 = arith.constant dense<0.000000e+00> : vector<16x96xf32>
    %30 = tpu.matmul %28, %29, %cst_12 {dimension_numbers = #tpu.dot_dimension_numbers<[1], [0], [0], [1], [0, 0, 1, 1], [], []>} : vector<16x32xbf16>, vector<32x96xbf16>, vector<16x96xf32> -> vector<16x96xf32>
    %c48 = arith.constant 48 : index
    %c0_13 = arith.constant 0 : index
    %31 = vector.load %arg1[%c48, %c0_13] : memref<1144x128xf32, #tpu.memory_space<vmem>>, vector<1x96xf32>
    %32 = vector.broadcast %31 : vector<1x96xf32> to vector<16x96xf32>
    %33 = arith.addf %30, %32 : vector<16x96xf32>
    %34 = vector.extract_strided_slice %33 {offsets = [0, 0], sizes = [16, 32], strides = [1, 1]} : vector<16x96xf32> to vector<16x32xf32>
    %35 = vector.extract_strided_slice %33 {offsets = [0, 32], sizes = [16, 32], strides = [1, 1]} : vector<16x96xf32> to vector<16x32xf32>
    %36 = vector.extract_strided_slice %33 {offsets = [0, 64], sizes = [16, 32], strides = [1, 1]} : vector<16x96xf32> to vector<16x32xf32>
    %c56 = arith.constant 56 : index
    %c0_14 = arith.constant 0 : index
    %37 = vector.load %arg1[%c56, %c0_14] : memref<1144x128xf32, #tpu.memory_space<vmem>>, vector<32x32xf32>
    %c88 = arith.constant 88 : index
    %c0_15 = arith.constant 0 : index
    %38 = vector.load %arg1[%c88, %c0_15] : memref<1144x128xf32, #tpu.memory_space<vmem>>, vector<1x32xf32>
    %39 = vector.extract_strided_slice %34 {offsets = [0, 0], sizes = [16, 8], strides = [1, 1]} : vector<16x32xf32> to vector<16x8xf32>
    %40 = vector.extract_strided_slice %34 {offsets = [0, 8], sizes = [16, 8], strides = [1, 1]} : vector<16x32xf32> to vector<16x8xf32>
    %41 = vector.extract_strided_slice %34 {offsets = [0, 16], sizes = [16, 8], strides = [1, 1]} : vector<16x32xf32> to vector<16x8xf32>
    %42 = vector.extract_strided_slice %34 {offsets = [0, 24], sizes = [16, 8], strides = [1, 1]} : vector<16x32xf32> to vector<16x8xf32>
    %43 = vector.shape_cast %39 : vector<16x8xf32> to vector<1x16x8xf32>
    %44 = vector.shape_cast %40 : vector<16x8xf32> to vector<1x16x8xf32>
    %45 = vector.shape_cast %41 : vector<16x8xf32> to vector<1x16x8xf32>
    %46 = vector.shape_cast %42 : vector<16x8xf32> to vector<1x16x8xf32>
    %47 = tpu.concatenate %43, %44, %45, %46 in 0 : vector<1x16x8xf32>, vector<1x16x8xf32>, vector<1x16x8xf32>, vector<1x16x8xf32> -> vector<4x16x8xf32>
    %48 = arith.truncf %47 : vector<4x16x8xf32> to vector<4x16x8xbf16>
    %49 = vector.extract_strided_slice %35 {offsets = [0, 0], sizes = [16, 8], strides = [1, 1]} : vector<16x32xf32> to vector<16x8xf32>
    %50 = vector.extract_strided_slice %35 {offsets = [0, 8], sizes = [16, 8], strides = [1, 1]} : vector<16x32xf32> to vector<16x8xf32>
    %51 = vector.extract_strided_slice %35 {offsets = [0, 16], sizes = [16, 8], strides = [1, 1]} : vector<16x32xf32> to vector<16x8xf32>
    %52 = vector.extract_strided_slice %35 {offsets = [0, 24], sizes = [16, 8], strides = [1, 1]} : vector<16x32xf32> to vector<16x8xf32>
    %53 = vector.shape_cast %49 : vector<16x8xf32> to vector<1x16x8xf32>
    %54 = vector.shape_cast %50 : vector<16x8xf32> to vector<1x16x8xf32>
    %55 = vector.shape_cast %51 : vector<16x8xf32> to vector<1x16x8xf32>
    %56 = vector.shape_cast %52 : vector<16x8xf32> to vector<1x16x8xf32>
    %57 = tpu.concatenate %53, %54, %55, %56 in 0 : vector<1x16x8xf32>, vector<1x16x8xf32>, vector<1x16x8xf32>, vector<1x16x8xf32> -> vector<4x16x8xf32>
    %58 = arith.truncf %57 : vector<4x16x8xf32> to vector<4x16x8xbf16>
    %59 = vector.extract_strided_slice %36 {offsets = [0, 0], sizes = [16, 8], strides = [1, 1]} : vector<16x32xf32> to vector<16x8xf32>
    %60 = vector.extract_strided_slice %36 {offsets = [0, 8], sizes = [16, 8], strides = [1, 1]} : vector<16x32xf32> to vector<16x8xf32>
    %61 = vector.extract_strided_slice %36 {offsets = [0, 16], sizes = [16, 8], strides = [1, 1]} : vector<16x32xf32> to vector<16x8xf32>
    %62 = vector.extract_strided_slice %36 {offsets = [0, 24], sizes = [16, 8], strides = [1, 1]} : vector<16x32xf32> to vector<16x8xf32>
    %63 = vector.shape_cast %59 : vector<16x8xf32> to vector<1x16x8xf32>
    %64 = vector.shape_cast %60 : vector<16x8xf32> to vector<1x16x8xf32>
    %65 = vector.shape_cast %61 : vector<16x8xf32> to vector<1x16x8xf32>
    %66 = vector.shape_cast %62 : vector<16x8xf32> to vector<1x16x8xf32>
    %67 = tpu.concatenate %63, %64, %65, %66 in 0 : vector<1x16x8xf32>, vector<1x16x8xf32>, vector<1x16x8xf32>, vector<1x16x8xf32> -> vector<4x16x8xf32>
    %68 = arith.truncf %67 : vector<4x16x8xf32> to vector<4x16x8xbf16>
    %cst_16 = arith.constant dense<0.000000e+00> : vector<4x16x16xf32>
    %69 = tpu.matmul %48, %58, %cst_16 {dimension_numbers = #tpu.dot_dimension_numbers<[2], [2], [1], [1], [0, 0, 0, 1, 1, 1], [0], [0]>} : vector<4x16x8xbf16>, vector<4x16x8xbf16>, vector<4x16x16xf32> -> vector<4x16x16xf32>
    %cst_17 = arith.constant 0.353553385 : f32
    %70 = vector.broadcast %cst_17 : f32 to vector<4x16x16xf32>
    %71 = arith.mulf %69, %70 : vector<4x16x16xf32>
    %72 = vector.shape_cast %1 : vector<1x16xf32> to vector<1x1x16xf32>
    %73 = vector.broadcast %72 : vector<1x1x16xf32> to vector<4x16x16xf32>
    %74 = arith.addf %71, %73 : vector<4x16x16xf32>
    %cst_18 = arith.constant dense<0xFF800000> : vector<4x16xf32>
    %75 = vector.multi_reduction <maximumf>, %74, %cst_18 [2] : vector<4x16x16xf32> to vector<4x16xf32>
    %76 = vector.shape_cast %75 : vector<4x16xf32> to vector<4x16x1xf32>
    %77 = vector.broadcast %76 : vector<4x16x1xf32> to vector<4x16x16xf32>
    %78 = arith.subf %74, %77 : vector<4x16x16xf32>
    %79 = math.exp %78 : vector<4x16x16xf32>
    %cst_19 = arith.constant dense<0.000000e+00> : vector<4x16xf32>
    %80 = vector.multi_reduction <add>, %79, %cst_19 [2] : vector<4x16x16xf32> to vector<4x16xf32>
    %81 = vector.shape_cast %80 : vector<4x16xf32> to vector<4x16x1xf32>
    %82 = arith.truncf %79 : vector<4x16x16xf32> to vector<4x16x16xbf16>
    %cst_20 = arith.constant dense<0.000000e+00> : vector<4x16x8xf32>
    %83 = tpu.matmul %82, %68, %cst_20 {dimension_numbers = #tpu.dot_dimension_numbers<[2], [1], [1], [2], [0, 0, 0, 1, 1, 2], [0], [0]>} : vector<4x16x16xbf16>, vector<4x16x8xbf16>, vector<4x16x8xf32> -> vector<4x16x8xf32>
    %84 = tpu.reciprocal %81 {approx = true} : vector<4x16x1xf32> -> vector<4x16x1xf32>
    %85 = vector.broadcast %84 : vector<4x16x1xf32> to vector<4x16x8xf32>
    %86 = arith.mulf %83, %85 : vector<4x16x8xf32>
    %87 = vector.extract_strided_slice %86 {offsets = [0, 0, 0], sizes = [1, 16, 8], strides = [1, 1, 1]} : vector<4x16x8xf32> to vector<1x16x8xf32>
    %88 = vector.shape_cast %87 : vector<1x16x8xf32> to vector<16x8xf32>
    %89 = vector.extract_strided_slice %86 {offsets = [1, 0, 0], sizes = [1, 16, 8], strides = [1, 1, 1]} : vector<4x16x8xf32> to vector<1x16x8xf32>
    %90 = vector.shape_cast %89 : vector<1x16x8xf32> to vector<16x8xf32>
    %91 = vector.extract_strided_slice %86 {offsets = [2, 0, 0], sizes = [1, 16, 8], strides = [1, 1, 1]} : vector<4x16x8xf32> to vector<1x16x8xf32>
    %92 = vector.shape_cast %91 : vector<1x16x8xf32> to vector<16x8xf32>
    %93 = vector.extract_strided_slice %86 {offsets = [3, 0, 0], sizes = [1, 16, 8], strides = [1, 1, 1]} : vector<4x16x8xf32> to vector<1x16x8xf32>
    %94 = vector.shape_cast %93 : vector<1x16x8xf32> to vector<16x8xf32>
    %95 = tpu.concatenate %88, %90, %92, %94 in 1 : vector<16x8xf32>, vector<16x8xf32>, vector<16x8xf32>, vector<16x8xf32> -> vector<16x32xf32>
    %96 = arith.truncf %95 : vector<16x32xf32> to vector<16x32xbf16>
    %97 = arith.truncf %37 : vector<32x32xf32> to vector<32x32xbf16>
    %cst_21 = arith.constant dense<0.000000e+00> : vector<16x32xf32>
    %98 = tpu.matmul %96, %97, %cst_21 {dimension_numbers = #tpu.dot_dimension_numbers<[1], [0], [0], [1], [0, 0, 1, 1], [], []>} : vector<16x32xbf16>, vector<32x32xbf16>, vector<16x32xf32> -> vector<16x32xf32>
    %99 = vector.broadcast %38 : vector<1x32xf32> to vector<16x32xf32>
    %100 = arith.addf %98, %99 : vector<16x32xf32>
    %101 = arith.addf %26, %100 : vector<16x32xf32>
    %c96 = arith.constant 96 : index
    %c0_22 = arith.constant 0 : index
    %102 = vector.load %arg1[%c96, %c0_22] : memref<1144x128xf32, #tpu.memory_space<vmem>>, vector<2x32xf32>
    %cst_23 = arith.constant dense<0.000000e+00> : vector<16xf32>
    %103 = vector.multi_reduction <add>, %101, %cst_23 [1] : vector<16x32xf32> to vector<16xf32>
    %104 = vector.shape_cast %103 : vector<16xf32> to vector<16x1xf32>
    %cst_24 = arith.constant 3.200000e+01 : f32
    %105 = vector.broadcast %cst_24 : f32 to vector<16x1xf32>
    %106 = arith.divf %104, %105 : vector<16x1xf32>
    %107 = vector.broadcast %106 : vector<16x1xf32> to vector<16x32xf32>
    %108 = arith.subf %101, %107 : vector<16x32xf32>
    %109 = arith.mulf %108, %108 : vector<16x32xf32>
    %cst_25 = arith.constant dense<0.000000e+00> : vector<16xf32>
    %110 = vector.multi_reduction <add>, %109, %cst_25 [1] : vector<16x32xf32> to vector<16xf32>
    %111 = vector.shape_cast %110 : vector<16xf32> to vector<16x1xf32>
    %cst_26 = arith.constant 3.200000e+01 : f32
    %112 = vector.broadcast %cst_26 : f32 to vector<16x1xf32>
    %113 = arith.divf %111, %112 : vector<16x1xf32>
    %cst_27 = arith.constant 9.99999974E-6 : f32
    %114 = vector.broadcast %cst_27 : f32 to vector<16x1xf32>
    %115 = arith.addf %113, %114 : vector<16x1xf32>
    %116 = math.rsqrt %115 : vector<16x1xf32>
    %117 = vector.broadcast %116 : vector<16x1xf32> to vector<16x32xf32>
    %118 = arith.mulf %108, %117 : vector<16x32xf32>
    %119 = vector.extract_strided_slice %102 {offsets = [0, 0], sizes = [1, 32], strides = [1, 1]} : vector<2x32xf32> to vector<1x32xf32>
    %120 = vector.broadcast %119 : vector<1x32xf32> to vector<16x32xf32>
    %121 = arith.mulf %118, %120 : vector<16x32xf32>
    %122 = vector.extract_strided_slice %102 {offsets = [1, 0], sizes = [1, 32], strides = [1, 1]} : vector<2x32xf32> to vector<1x32xf32>
    %123 = vector.broadcast %122 : vector<1x32xf32> to vector<16x32xf32>
    %124 = arith.addf %121, %123 : vector<16x32xf32>
    %c104 = arith.constant 104 : index
    %c0_28 = arith.constant 0 : index
    %125 = vector.load %arg1[%c104, %c0_28] : memref<1144x128xf32, #tpu.memory_space<vmem>>, vector<32x64xf32>
    %c136 = arith.constant 136 : index
    %c0_29 = arith.constant 0 : index
    %126 = vector.load %arg1[%c136, %c0_29] : memref<1144x128xf32, #tpu.memory_space<vmem>>, vector<1x64xf32>
    %c144 = arith.constant 144 : index
    %c0_30 = arith.constant 0 : index
    %127 = vector.load %arg1[%c144, %c0_30] : memref<1144x128xf32, #tpu.memory_space<vmem>>, vector<64x32xf32>
    %c208 = arith.constant 208 : index
    %c0_31 = arith.constant 0 : index
    %128 = vector.load %arg1[%c208, %c0_31] : memref<1144x128xf32, #tpu.memory_space<vmem>>, vector<1x32xf32>
    %129 = arith.truncf %124 : vector<16x32xf32> to vector<16x32xbf16>
    %130 = arith.truncf %125 : vector<32x64xf32> to vector<32x64xbf16>
    %cst_32 = arith.constant dense<0.000000e+00> : vector<16x64xf32>
    %131 = tpu.matmul %129, %130, %cst_32 {dimension_numbers = #tpu.dot_dimension_numbers<[1], [0], [0], [1], [0, 0, 1, 1], [], []>} : vector<16x32xbf16>, vector<32x64xbf16>, vector<16x64xf32> -> vector<16x64xf32>
    %132 = vector.broadcast %126 : vector<1x64xf32> to vector<16x64xf32>
    %133 = arith.addf %131, %132 : vector<16x64xf32>
    %134 = arith.mulf %133, %133 : vector<16x64xf32>
    %135 = arith.mulf %133, %134 : vector<16x64xf32>
    %cst_33 = arith.constant 4.471500e-02 : f32
    %136 = vector.broadcast %cst_33 : f32 to vector<16x64xf32>
    %137 = arith.mulf %136, %135 : vector<16x64xf32>
    %138 = arith.addf %133, %137 : vector<16x64xf32>
    %cst_34 = arith.constant 0.797884583 : f32
    %139 = vector.broadcast %cst_34 : f32 to vector<16x64xf32>
    %140 = arith.mulf %139, %138 : vector<16x64xf32>
    %141 = math.tanh %140 : vector<16x64xf32>
    %cst_35 = arith.constant 1.000000e+00 : f32
    %142 = vector.broadcast %cst_35 : f32 to vector<16x64xf32>
    %143 = arith.addf %142, %141 : vector<16x64xf32>
    %cst_36 = arith.constant 5.000000e-01 : f32
    %144 = vector.broadcast %cst_36 : f32 to vector<16x64xf32>
    %145 = arith.mulf %144, %143 : vector<16x64xf32>
    %146 = arith.mulf %133, %145 : vector<16x64xf32>
    %147 = arith.truncf %146 : vector<16x64xf32> to vector<16x64xbf16>
    %148 = arith.truncf %127 : vector<64x32xf32> to vector<64x32xbf16>
    %cst_37 = arith.constant dense<0.000000e+00> : vector<16x32xf32>
    %149 = tpu.matmul %147, %148, %cst_37 {dimension_numbers = #tpu.dot_dimension_numbers<[1], [0], [0], [1], [0, 0, 1, 1], [], []>} : vector<16x64xbf16>, vector<64x32xbf16>, vector<16x32xf32> -> vector<16x32xf32>
    %150 = vector.broadcast %128 : vector<1x32xf32> to vector<16x32xf32>
    %151 = arith.addf %149, %150 : vector<16x32xf32>
    %152 = arith.addf %124, %151 : vector<16x32xf32>
    %c216 = arith.constant 216 : index
    %c0_38 = arith.constant 0 : index
    %153 = vector.load %arg1[%c216, %c0_38] : memref<1144x128xf32, #tpu.memory_space<vmem>>, vector<2x32xf32>
    %cst_39 = arith.constant dense<0.000000e+00> : vector<16xf32>
    %154 = vector.multi_reduction <add>, %152, %cst_39 [1] : vector<16x32xf32> to vector<16xf32>
    %155 = vector.shape_cast %154 : vector<16xf32> to vector<16x1xf32>
    %cst_40 = arith.constant 3.200000e+01 : f32
    %156 = vector.broadcast %cst_40 : f32 to vector<16x1xf32>
    %157 = arith.divf %155, %156 : vector<16x1xf32>
    %158 = vector.broadcast %157 : vector<16x1xf32> to vector<16x32xf32>
    %159 = arith.subf %152, %158 : vector<16x32xf32>
    %160 = arith.mulf %159, %159 : vector<16x32xf32>
    %cst_41 = arith.constant dense<0.000000e+00> : vector<16xf32>
    %161 = vector.multi_reduction <add>, %160, %cst_41 [1] : vector<16x32xf32> to vector<16xf32>
    %162 = vector.shape_cast %161 : vector<16xf32> to vector<16x1xf32>
    %cst_42 = arith.constant 3.200000e+01 : f32
    %163 = vector.broadcast %cst_42 : f32 to vector<16x1xf32>
    %164 = arith.divf %162, %163 : vector<16x1xf32>
    %cst_43 = arith.constant 9.99999974E-6 : f32
    %165 = vector.broadcast %cst_43 : f32 to vector<16x1xf32>
    %166 = arith.addf %164, %165 : vector<16x1xf32>
    %167 = math.rsqrt %166 : vector<16x1xf32>
    %168 = vector.broadcast %167 : vector<16x1xf32> to vector<16x32xf32>
    %169 = arith.mulf %159, %168 : vector<16x32xf32>
    %170 = vector.extract_strided_slice %153 {offsets = [0, 0], sizes = [1, 32], strides = [1, 1]} : vector<2x32xf32> to vector<1x32xf32>
    %171 = vector.broadcast %170 : vector<1x32xf32> to vector<16x32xf32>
    %172 = arith.mulf %169, %171 : vector<16x32xf32>
    %173 = vector.extract_strided_slice %153 {offsets = [1, 0], sizes = [1, 32], strides = [1, 1]} : vector<2x32xf32> to vector<1x32xf32>
    %174 = vector.broadcast %173 : vector<1x32xf32> to vector<16x32xf32>
    %175 = arith.addf %172, %174 : vector<16x32xf32>
    %c560 = arith.constant 560 : index
    %c0_44 = arith.constant 0 : index
    %176 = vector.load %arg1[%c560, %c0_44] : memref<1144x128xf32, #tpu.memory_space<vmem>>, vector<32x96xf32>
    %177 = arith.truncf %175 : vector<16x32xf32> to vector<16x32xbf16>
    %178 = arith.truncf %176 : vector<32x96xf32> to vector<32x96xbf16>
    %cst_45 = arith.constant dense<0.000000e+00> : vector<16x96xf32>
    %179 = tpu.matmul %177, %178, %cst_45 {dimension_numbers = #tpu.dot_dimension_numbers<[1], [0], [0], [1], [0, 0, 1, 1], [], []>} : vector<16x32xbf16>, vector<32x96xbf16>, vector<16x96xf32> -> vector<16x96xf32>
    %c592 = arith.constant 592 : index
    %c0_46 = arith.constant 0 : index
    %180 = vector.load %arg1[%c592, %c0_46] : memref<1144x128xf32, #tpu.memory_space<vmem>>, vector<1x96xf32>
    %181 = vector.broadcast %180 : vector<1x96xf32> to vector<16x96xf32>
    %182 = arith.addf %179, %181 : vector<16x96xf32>
    %183 = vector.extract_strided_slice %182 {offsets = [0, 0], sizes = [16, 32], strides = [1, 1]} : vector<16x96xf32> to vector<16x32xf32>
    %184 = vector.extract_strided_slice %182 {offsets = [0, 32], sizes = [16, 32], strides = [1, 1]} : vector<16x96xf32> to vector<16x32xf32>
    %185 = vector.extract_strided_slice %182 {offsets = [0, 64], sizes = [16, 32], strides = [1, 1]} : vector<16x96xf32> to vector<16x32xf32>
    %c600 = arith.constant 600 : index
    %c0_47 = arith.constant 0 : index
    %186 = vector.load %arg1[%c600, %c0_47] : memref<1144x128xf32, #tpu.memory_space<vmem>>, vector<32x32xf32>
    %c632 = arith.constant 632 : index
    %c0_48 = arith.constant 0 : index
    %187 = vector.load %arg1[%c632, %c0_48] : memref<1144x128xf32, #tpu.memory_space<vmem>>, vector<1x32xf32>
    %188 = vector.extract_strided_slice %183 {offsets = [0, 0], sizes = [16, 8], strides = [1, 1]} : vector<16x32xf32> to vector<16x8xf32>
    %189 = vector.extract_strided_slice %183 {offsets = [0, 8], sizes = [16, 8], strides = [1, 1]} : vector<16x32xf32> to vector<16x8xf32>
    %190 = vector.extract_strided_slice %183 {offsets = [0, 16], sizes = [16, 8], strides = [1, 1]} : vector<16x32xf32> to vector<16x8xf32>
    %191 = vector.extract_strided_slice %183 {offsets = [0, 24], sizes = [16, 8], strides = [1, 1]} : vector<16x32xf32> to vector<16x8xf32>
    %192 = vector.shape_cast %188 : vector<16x8xf32> to vector<1x16x8xf32>
    %193 = vector.shape_cast %189 : vector<16x8xf32> to vector<1x16x8xf32>
    %194 = vector.shape_cast %190 : vector<16x8xf32> to vector<1x16x8xf32>
    %195 = vector.shape_cast %191 : vector<16x8xf32> to vector<1x16x8xf32>
    %196 = tpu.concatenate %192, %193, %194, %195 in 0 : vector<1x16x8xf32>, vector<1x16x8xf32>, vector<1x16x8xf32>, vector<1x16x8xf32> -> vector<4x16x8xf32>
    %197 = arith.truncf %196 : vector<4x16x8xf32> to vector<4x16x8xbf16>
    %198 = vector.extract_strided_slice %184 {offsets = [0, 0], sizes = [16, 8], strides = [1, 1]} : vector<16x32xf32> to vector<16x8xf32>
    %199 = vector.extract_strided_slice %184 {offsets = [0, 8], sizes = [16, 8], strides = [1, 1]} : vector<16x32xf32> to vector<16x8xf32>
    %200 = vector.extract_strided_slice %184 {offsets = [0, 16], sizes = [16, 8], strides = [1, 1]} : vector<16x32xf32> to vector<16x8xf32>
    %201 = vector.extract_strided_slice %184 {offsets = [0, 24], sizes = [16, 8], strides = [1, 1]} : vector<16x32xf32> to vector<16x8xf32>
    %202 = vector.shape_cast %198 : vector<16x8xf32> to vector<1x16x8xf32>
    %203 = vector.shape_cast %199 : vector<16x8xf32> to vector<1x16x8xf32>
    %204 = vector.shape_cast %200 : vector<16x8xf32> to vector<1x16x8xf32>
    %205 = vector.shape_cast %201 : vector<16x8xf32> to vector<1x16x8xf32>
    %206 = tpu.concatenate %202, %203, %204, %205 in 0 : vector<1x16x8xf32>, vector<1x16x8xf32>, vector<1x16x8xf32>, vector<1x16x8xf32> -> vector<4x16x8xf32>
    %207 = arith.truncf %206 : vector<4x16x8xf32> to vector<4x16x8xbf16>
    %208 = vector.extract_strided_slice %185 {offsets = [0, 0], sizes = [16, 8], strides = [1, 1]} : vector<16x32xf32> to vector<16x8xf32>
    %209 = vector.extract_strided_slice %185 {offsets = [0, 8], sizes = [16, 8], strides = [1, 1]} : vector<16x32xf32> to vector<16x8xf32>
    %210 = vector.extract_strided_slice %185 {offsets = [0, 16], sizes = [16, 8], strides = [1, 1]} : vector<16x32xf32> to vector<16x8xf32>
    %211 = vector.extract_strided_slice %185 {offsets = [0, 24], sizes = [16, 8], strides = [1, 1]} : vector<16x32xf32> to vector<16x8xf32>
    %212 = vector.shape_cast %208 : vector<16x8xf32> to vector<1x16x8xf32>
    %213 = vector.shape_cast %209 : vector<16x8xf32> to vector<1x16x8xf32>
    %214 = vector.shape_cast %210 : vector<16x8xf32> to vector<1x16x8xf32>
    %215 = vector.shape_cast %211 : vector<16x8xf32> to vector<1x16x8xf32>
    %216 = tpu.concatenate %212, %213, %214, %215 in 0 : vector<1x16x8xf32>, vector<1x16x8xf32>, vector<1x16x8xf32>, vector<1x16x8xf32> -> vector<4x16x8xf32>
    %217 = arith.truncf %216 : vector<4x16x8xf32> to vector<4x16x8xbf16>
    %cst_49 = arith.constant dense<0.000000e+00> : vector<4x16x16xf32>
    %218 = tpu.matmul %197, %207, %cst_49 {dimension_numbers = #tpu.dot_dimension_numbers<[2], [2], [1], [1], [0, 0, 0, 1, 1, 1], [0], [0]>} : vector<4x16x8xbf16>, vector<4x16x8xbf16>, vector<4x16x16xf32> -> vector<4x16x16xf32>
    %cst_50 = arith.constant 0.353553385 : f32
    %219 = vector.broadcast %cst_50 : f32 to vector<4x16x16xf32>
    %220 = arith.mulf %218, %219 : vector<4x16x16xf32>
    %221 = vector.shape_cast %1 : vector<1x16xf32> to vector<1x1x16xf32>
    %222 = vector.broadcast %221 : vector<1x1x16xf32> to vector<4x16x16xf32>
    %223 = arith.addf %220, %222 : vector<4x16x16xf32>
    %cst_51 = arith.constant dense<0xFF800000> : vector<4x16xf32>
    %224 = vector.multi_reduction <maximumf>, %223, %cst_51 [2] : vector<4x16x16xf32> to vector<4x16xf32>
    %225 = vector.shape_cast %224 : vector<4x16xf32> to vector<4x16x1xf32>
    %226 = vector.broadcast %225 : vector<4x16x1xf32> to vector<4x16x16xf32>
    %227 = arith.subf %223, %226 : vector<4x16x16xf32>
    %228 = math.exp %227 : vector<4x16x16xf32>
    %cst_52 = arith.constant dense<0.000000e+00> : vector<4x16xf32>
    %229 = vector.multi_reduction <add>, %228, %cst_52 [2] : vector<4x16x16xf32> to vector<4x16xf32>
    %230 = vector.shape_cast %229 : vector<4x16xf32> to vector<4x16x1xf32>
    %231 = arith.truncf %228 : vector<4x16x16xf32> to vector<4x16x16xbf16>
    %cst_53 = arith.constant dense<0.000000e+00> : vector<4x16x8xf32>
    %232 = tpu.matmul %231, %217, %cst_53 {dimension_numbers = #tpu.dot_dimension_numbers<[2], [1], [1], [2], [0, 0, 0, 1, 1, 2], [0], [0]>} : vector<4x16x16xbf16>, vector<4x16x8xbf16>, vector<4x16x8xf32> -> vector<4x16x8xf32>
    %233 = tpu.reciprocal %230 {approx = true} : vector<4x16x1xf32> -> vector<4x16x1xf32>
    %234 = vector.broadcast %233 : vector<4x16x1xf32> to vector<4x16x8xf32>
    %235 = arith.mulf %232, %234 : vector<4x16x8xf32>
    %236 = vector.extract_strided_slice %235 {offsets = [0, 0, 0], sizes = [1, 16, 8], strides = [1, 1, 1]} : vector<4x16x8xf32> to vector<1x16x8xf32>
    %237 = vector.shape_cast %236 : vector<1x16x8xf32> to vector<16x8xf32>
    %238 = vector.extract_strided_slice %235 {offsets = [1, 0, 0], sizes = [1, 16, 8], strides = [1, 1, 1]} : vector<4x16x8xf32> to vector<1x16x8xf32>
    %239 = vector.shape_cast %238 : vector<1x16x8xf32> to vector<16x8xf32>
    %240 = vector.extract_strided_slice %235 {offsets = [2, 0, 0], sizes = [1, 16, 8], strides = [1, 1, 1]} : vector<4x16x8xf32> to vector<1x16x8xf32>
    %241 = vector.shape_cast %240 : vector<1x16x8xf32> to vector<16x8xf32>
    %242 = vector.extract_strided_slice %235 {offsets = [3, 0, 0], sizes = [1, 16, 8], strides = [1, 1, 1]} : vector<4x16x8xf32> to vector<1x16x8xf32>
    %243 = vector.shape_cast %242 : vector<1x16x8xf32> to vector<16x8xf32>
    %244 = tpu.concatenate %237, %239, %241, %243 in 1 : vector<16x8xf32>, vector<16x8xf32>, vector<16x8xf32>, vector<16x8xf32> -> vector<16x32xf32>
    %245 = arith.truncf %244 : vector<16x32xf32> to vector<16x32xbf16>
    %246 = arith.truncf %186 : vector<32x32xf32> to vector<32x32xbf16>
    %cst_54 = arith.constant dense<0.000000e+00> : vector<16x32xf32>
    %247 = tpu.matmul %245, %246, %cst_54 {dimension_numbers = #tpu.dot_dimension_numbers<[1], [0], [0], [1], [0, 0, 1, 1], [], []>} : vector<16x32xbf16>, vector<32x32xbf16>, vector<16x32xf32> -> vector<16x32xf32>
    %248 = vector.broadcast %187 : vector<1x32xf32> to vector<16x32xf32>
    %249 = arith.addf %247, %248 : vector<16x32xf32>
    %250 = arith.addf %175, %249 : vector<16x32xf32>
    %c640 = arith.constant 640 : index
    %c0_55 = arith.constant 0 : index
    %251 = vector.load %arg1[%c640, %c0_55] : memref<1144x128xf32, #tpu.memory_space<vmem>>, vector<2x32xf32>
    %cst_56 = arith.constant dense<0.000000e+00> : vector<16xf32>
    %252 = vector.multi_reduction <add>, %250, %cst_56 [1] : vector<16x32xf32> to vector<16xf32>
    %253 = vector.shape_cast %252 : vector<16xf32> to vector<16x1xf32>
    %cst_57 = arith.constant 3.200000e+01 : f32
    %254 = vector.broadcast %cst_57 : f32 to vector<16x1xf32>
    %255 = arith.divf %253, %254 : vector<16x1xf32>
    %256 = vector.broadcast %255 : vector<16x1xf32> to vector<16x32xf32>
    %257 = arith.subf %250, %256 : vector<16x32xf32>
    %258 = arith.mulf %257, %257 : vector<16x32xf32>
    %cst_58 = arith.constant dense<0.000000e+00> : vector<16xf32>
    %259 = vector.multi_reduction <add>, %258, %cst_58 [1] : vector<16x32xf32> to vector<16xf32>
    %260 = vector.shape_cast %259 : vector<16xf32> to vector<16x1xf32>
    %cst_59 = arith.constant 3.200000e+01 : f32
    %261 = vector.broadcast %cst_59 : f32 to vector<16x1xf32>
    %262 = arith.divf %260, %261 : vector<16x1xf32>
    %cst_60 = arith.constant 9.99999974E-6 : f32
    %263 = vector.broadcast %cst_60 : f32 to vector<16x1xf32>
    %264 = arith.addf %262, %263 : vector<16x1xf32>
    %265 = math.rsqrt %264 : vector<16x1xf32>
    %266 = vector.broadcast %265 : vector<16x1xf32> to vector<16x32xf32>
    %267 = arith.mulf %257, %266 : vector<16x32xf32>
    %268 = vector.extract_strided_slice %251 {offsets = [0, 0], sizes = [1, 32], strides = [1, 1]} : vector<2x32xf32> to vector<1x32xf32>
    %269 = vector.broadcast %268 : vector<1x32xf32> to vector<16x32xf32>
    %270 = arith.mulf %267, %269 : vector<16x32xf32>
    %271 = vector.extract_strided_slice %251 {offsets = [1, 0], sizes = [1, 32], strides = [1, 1]} : vector<2x32xf32> to vector<1x32xf32>
    %272 = vector.broadcast %271 : vector<1x32xf32> to vector<16x32xf32>
    %273 = arith.addf %270, %272 : vector<16x32xf32>
    %c648 = arith.constant 648 : index
    %c0_61 = arith.constant 0 : index
    %274 = vector.load %arg1[%c648, %c0_61] : memref<1144x128xf32, #tpu.memory_space<vmem>>, vector<32x64xf32>
    %c680 = arith.constant 680 : index
    %c0_62 = arith.constant 0 : index
    %275 = vector.load %arg1[%c680, %c0_62] : memref<1144x128xf32, #tpu.memory_space<vmem>>, vector<1x64xf32>
    %c688 = arith.constant 688 : index
    %c0_63 = arith.constant 0 : index
    %276 = vector.load %arg1[%c688, %c0_63] : memref<1144x128xf32, #tpu.memory_space<vmem>>, vector<64x32xf32>
    %c752 = arith.constant 752 : index
    %c0_64 = arith.constant 0 : index
    %277 = vector.load %arg1[%c752, %c0_64] : memref<1144x128xf32, #tpu.memory_space<vmem>>, vector<1x32xf32>
    %278 = arith.truncf %273 : vector<16x32xf32> to vector<16x32xbf16>
    %279 = arith.truncf %274 : vector<32x64xf32> to vector<32x64xbf16>
    %cst_65 = arith.constant dense<0.000000e+00> : vector<16x64xf32>
    %280 = tpu.matmul %278, %279, %cst_65 {dimension_numbers = #tpu.dot_dimension_numbers<[1], [0], [0], [1], [0, 0, 1, 1], [], []>} : vector<16x32xbf16>, vector<32x64xbf16>, vector<16x64xf32> -> vector<16x64xf32>
    %281 = vector.broadcast %275 : vector<1x64xf32> to vector<16x64xf32>
    %282 = arith.addf %280, %281 : vector<16x64xf32>
    %283 = arith.mulf %282, %282 : vector<16x64xf32>
    %284 = arith.mulf %282, %283 : vector<16x64xf32>
    %cst_66 = arith.constant 4.471500e-02 : f32
    %285 = vector.broadcast %cst_66 : f32 to vector<16x64xf32>
    %286 = arith.mulf %285, %284 : vector<16x64xf32>
    %287 = arith.addf %282, %286 : vector<16x64xf32>
    %cst_67 = arith.constant 0.797884583 : f32
    %288 = vector.broadcast %cst_67 : f32 to vector<16x64xf32>
    %289 = arith.mulf %288, %287 : vector<16x64xf32>
    %290 = math.tanh %289 : vector<16x64xf32>
    %cst_68 = arith.constant 1.000000e+00 : f32
    %291 = vector.broadcast %cst_68 : f32 to vector<16x64xf32>
    %292 = arith.addf %291, %290 : vector<16x64xf32>
    %cst_69 = arith.constant 5.000000e-01 : f32
    %293 = vector.broadcast %cst_69 : f32 to vector<16x64xf32>
    %294 = arith.mulf %293, %292 : vector<16x64xf32>
    %295 = arith.mulf %282, %294 : vector<16x64xf32>
    %296 = arith.truncf %295 : vector<16x64xf32> to vector<16x64xbf16>
    %297 = arith.truncf %276 : vector<64x32xf32> to vector<64x32xbf16>
    %cst_70 = arith.constant dense<0.000000e+00> : vector<16x32xf32>
    %298 = tpu.matmul %296, %297, %cst_70 {dimension_numbers = #tpu.dot_dimension_numbers<[1], [0], [0], [1], [0, 0, 1, 1], [], []>} : vector<16x64xbf16>, vector<64x32xbf16>, vector<16x32xf32> -> vector<16x32xf32>
    %299 = vector.broadcast %277 : vector<1x32xf32> to vector<16x32xf32>
    %300 = arith.addf %298, %299 : vector<16x32xf32>
    %301 = arith.addf %273, %300 : vector<16x32xf32>
    %c760 = arith.constant 760 : index
    %c0_71 = arith.constant 0 : index
    %302 = vector.load %arg1[%c760, %c0_71] : memref<1144x128xf32, #tpu.memory_space<vmem>>, vector<2x32xf32>
    %cst_72 = arith.constant dense<0.000000e+00> : vector<16xf32>
    %303 = vector.multi_reduction <add>, %301, %cst_72 [1] : vector<16x32xf32> to vector<16xf32>
    %304 = vector.shape_cast %303 : vector<16xf32> to vector<16x1xf32>
    %cst_73 = arith.constant 3.200000e+01 : f32
    %305 = vector.broadcast %cst_73 : f32 to vector<16x1xf32>
    %306 = arith.divf %304, %305 : vector<16x1xf32>
    %307 = vector.broadcast %306 : vector<16x1xf32> to vector<16x32xf32>
    %308 = arith.subf %301, %307 : vector<16x32xf32>
    %309 = arith.mulf %308, %308 : vector<16x32xf32>
    %cst_74 = arith.constant dense<0.000000e+00> : vector<16xf32>
    %310 = vector.multi_reduction <add>, %309, %cst_74 [1] : vector<16x32xf32> to vector<16xf32>
    %311 = vector.shape_cast %310 : vector<16xf32> to vector<16x1xf32>
    %cst_75 = arith.constant 3.200000e+01 : f32
    %312 = vector.broadcast %cst_75 : f32 to vector<16x1xf32>
    %313 = arith.divf %311, %312 : vector<16x1xf32>
    %cst_76 = arith.constant 9.99999974E-6 : f32
    %314 = vector.broadcast %cst_76 : f32 to vector<16x1xf32>
    %315 = arith.addf %313, %314 : vector<16x1xf32>
    %316 = math.rsqrt %315 : vector<16x1xf32>
    %317 = vector.broadcast %316 : vector<16x1xf32> to vector<16x32xf32>
    %318 = arith.mulf %308, %317 : vector<16x32xf32>
    %319 = vector.extract_strided_slice %302 {offsets = [0, 0], sizes = [1, 32], strides = [1, 1]} : vector<2x32xf32> to vector<1x32xf32>
    %320 = vector.broadcast %319 : vector<1x32xf32> to vector<16x32xf32>
    %321 = arith.mulf %318, %320 : vector<16x32xf32>
    %322 = vector.extract_strided_slice %302 {offsets = [1, 0], sizes = [1, 32], strides = [1, 1]} : vector<2x32xf32> to vector<1x32xf32>
    %323 = vector.broadcast %322 : vector<1x32xf32> to vector<16x32xf32>
    %324 = arith.addf %321, %323 : vector<16x32xf32>
    %c0_77 = arith.constant 0 : index
    %c0_78 = arith.constant 0 : index
    %c0_79 = arith.constant 0 : index
    %325 = vector.load %arg5[%c0_77, %c0_78, %c0_79] : memref<1x8x8xf32, #tpu.memory_space<vmem>>, vector<1x8x8xf32>
    %326 = vector.shape_cast %325 : vector<1x8x8xf32> to vector<8x8xf32>
    %c0_80 = arith.constant 0 : index
    %c0_81 = arith.constant 0 : index
    %c0_82 = arith.constant 0 : index
    %327 = vector.load %arg3[%c0_80, %c0_81, %c0_82] : memref<1x8x32xf32, #tpu.memory_space<vmem>>, vector<1x8x32xf32>
    %328 = vector.shape_cast %327 : vector<1x8x32xf32> to vector<8x32xf32>
    %c8 = arith.constant 8 : index
    %c0_83 = arith.constant 0 : index
    %329 = vector.load %arg1[%c8, %c0_83] : memref<1144x128xf32, #tpu.memory_space<vmem>>, vector<2x32xf32>
    %cst_84 = arith.constant dense<0.000000e+00> : vector<8xf32>
    %330 = vector.multi_reduction <add>, %328, %cst_84 [1] : vector<8x32xf32> to vector<8xf32>
    %331 = vector.shape_cast %330 : vector<8xf32> to vector<8x1xf32>
    %cst_85 = arith.constant 3.200000e+01 : f32
    %332 = vector.broadcast %cst_85 : f32 to vector<8x1xf32>
    %333 = arith.divf %331, %332 : vector<8x1xf32>
    %334 = vector.broadcast %333 : vector<8x1xf32> to vector<8x32xf32>
    %335 = arith.subf %328, %334 : vector<8x32xf32>
    %336 = arith.mulf %335, %335 : vector<8x32xf32>
    %cst_86 = arith.constant dense<0.000000e+00> : vector<8xf32>
    %337 = vector.multi_reduction <add>, %336, %cst_86 [1] : vector<8x32xf32> to vector<8xf32>
    %338 = vector.shape_cast %337 : vector<8xf32> to vector<8x1xf32>
    %cst_87 = arith.constant 3.200000e+01 : f32
    %339 = vector.broadcast %cst_87 : f32 to vector<8x1xf32>
    %340 = arith.divf %338, %339 : vector<8x1xf32>
    %cst_88 = arith.constant 9.99999974E-6 : f32
    %341 = vector.broadcast %cst_88 : f32 to vector<8x1xf32>
    %342 = arith.addf %340, %341 : vector<8x1xf32>
    %343 = math.rsqrt %342 : vector<8x1xf32>
    %344 = vector.broadcast %343 : vector<8x1xf32> to vector<8x32xf32>
    %345 = arith.mulf %335, %344 : vector<8x32xf32>
    %346 = vector.extract_strided_slice %329 {offsets = [0, 0], sizes = [1, 32], strides = [1, 1]} : vector<2x32xf32> to vector<1x32xf32>
    %347 = vector.broadcast %346 : vector<1x32xf32> to vector<8x32xf32>
    %348 = arith.mulf %345, %347 : vector<8x32xf32>
    %349 = vector.extract_strided_slice %329 {offsets = [1, 0], sizes = [1, 32], strides = [1, 1]} : vector<2x32xf32> to vector<1x32xf32>
    %350 = vector.broadcast %349 : vector<1x32xf32> to vector<8x32xf32>
    %351 = arith.addf %348, %350 : vector<8x32xf32>
    %c224 = arith.constant 224 : index
    %c0_89 = arith.constant 0 : index
    %352 = vector.load %arg1[%c224, %c0_89] : memref<1144x128xf32, #tpu.memory_space<vmem>>, vector<32x96xf32>
    %353 = arith.truncf %351 : vector<8x32xf32> to vector<8x32xbf16>
    %354 = arith.truncf %352 : vector<32x96xf32> to vector<32x96xbf16>
    %cst_90 = arith.constant dense<0.000000e+00> : vector<8x96xf32>
    %355 = tpu.matmul %353, %354, %cst_90 {dimension_numbers = #tpu.dot_dimension_numbers<[1], [0], [0], [1], [0, 0, 1, 1], [], []>} : vector<8x32xbf16>, vector<32x96xbf16>, vector<8x96xf32> -> vector<8x96xf32>
    %c256 = arith.constant 256 : index
    %c0_91 = arith.constant 0 : index
    %356 = vector.load %arg1[%c256, %c0_91] : memref<1144x128xf32, #tpu.memory_space<vmem>>, vector<1x96xf32>
    %357 = vector.broadcast %356 : vector<1x96xf32> to vector<8x96xf32>
    %358 = arith.addf %355, %357 : vector<8x96xf32>
    %359 = vector.extract_strided_slice %358 {offsets = [0, 0], sizes = [8, 32], strides = [1, 1]} : vector<8x96xf32> to vector<8x32xf32>
    %360 = vector.extract_strided_slice %358 {offsets = [0, 32], sizes = [8, 32], strides = [1, 1]} : vector<8x96xf32> to vector<8x32xf32>
    %361 = vector.extract_strided_slice %358 {offsets = [0, 64], sizes = [8, 32], strides = [1, 1]} : vector<8x96xf32> to vector<8x32xf32>
    %c264 = arith.constant 264 : index
    %c0_92 = arith.constant 0 : index
    %362 = vector.load %arg1[%c264, %c0_92] : memref<1144x128xf32, #tpu.memory_space<vmem>>, vector<32x32xf32>
    %c296 = arith.constant 296 : index
    %c0_93 = arith.constant 0 : index
    %363 = vector.load %arg1[%c296, %c0_93] : memref<1144x128xf32, #tpu.memory_space<vmem>>, vector<1x32xf32>
    %364 = vector.extract_strided_slice %359 {offsets = [0, 0], sizes = [8, 8], strides = [1, 1]} : vector<8x32xf32> to vector<8x8xf32>
    %365 = vector.extract_strided_slice %359 {offsets = [0, 8], sizes = [8, 8], strides = [1, 1]} : vector<8x32xf32> to vector<8x8xf32>
    %366 = vector.extract_strided_slice %359 {offsets = [0, 16], sizes = [8, 8], strides = [1, 1]} : vector<8x32xf32> to vector<8x8xf32>
    %367 = vector.extract_strided_slice %359 {offsets = [0, 24], sizes = [8, 8], strides = [1, 1]} : vector<8x32xf32> to vector<8x8xf32>
    %368 = vector.shape_cast %364 : vector<8x8xf32> to vector<1x8x8xf32>
    %369 = vector.shape_cast %365 : vector<8x8xf32> to vector<1x8x8xf32>
    %370 = vector.shape_cast %366 : vector<8x8xf32> to vector<1x8x8xf32>
    %371 = vector.shape_cast %367 : vector<8x8xf32> to vector<1x8x8xf32>
    %372 = tpu.concatenate %368, %369, %370, %371 in 0 : vector<1x8x8xf32>, vector<1x8x8xf32>, vector<1x8x8xf32>, vector<1x8x8xf32> -> vector<4x8x8xf32>
    %373 = arith.truncf %372 : vector<4x8x8xf32> to vector<4x8x8xbf16>
    %374 = vector.extract_strided_slice %360 {offsets = [0, 0], sizes = [8, 8], strides = [1, 1]} : vector<8x32xf32> to vector<8x8xf32>
    %375 = vector.extract_strided_slice %360 {offsets = [0, 8], sizes = [8, 8], strides = [1, 1]} : vector<8x32xf32> to vector<8x8xf32>
    %376 = vector.extract_strided_slice %360 {offsets = [0, 16], sizes = [8, 8], strides = [1, 1]} : vector<8x32xf32> to vector<8x8xf32>
    %377 = vector.extract_strided_slice %360 {offsets = [0, 24], sizes = [8, 8], strides = [1, 1]} : vector<8x32xf32> to vector<8x8xf32>
    %378 = vector.shape_cast %374 : vector<8x8xf32> to vector<1x8x8xf32>
    %379 = vector.shape_cast %375 : vector<8x8xf32> to vector<1x8x8xf32>
    %380 = vector.shape_cast %376 : vector<8x8xf32> to vector<1x8x8xf32>
    %381 = vector.shape_cast %377 : vector<8x8xf32> to vector<1x8x8xf32>
    %382 = tpu.concatenate %378, %379, %380, %381 in 0 : vector<1x8x8xf32>, vector<1x8x8xf32>, vector<1x8x8xf32>, vector<1x8x8xf32> -> vector<4x8x8xf32>
    %383 = arith.truncf %382 : vector<4x8x8xf32> to vector<4x8x8xbf16>
    %384 = vector.extract_strided_slice %361 {offsets = [0, 0], sizes = [8, 8], strides = [1, 1]} : vector<8x32xf32> to vector<8x8xf32>
    %385 = vector.extract_strided_slice %361 {offsets = [0, 8], sizes = [8, 8], strides = [1, 1]} : vector<8x32xf32> to vector<8x8xf32>
    %386 = vector.extract_strided_slice %361 {offsets = [0, 16], sizes = [8, 8], strides = [1, 1]} : vector<8x32xf32> to vector<8x8xf32>
    %387 = vector.extract_strided_slice %361 {offsets = [0, 24], sizes = [8, 8], strides = [1, 1]} : vector<8x32xf32> to vector<8x8xf32>
    %388 = vector.shape_cast %384 : vector<8x8xf32> to vector<1x8x8xf32>
    %389 = vector.shape_cast %385 : vector<8x8xf32> to vector<1x8x8xf32>
    %390 = vector.shape_cast %386 : vector<8x8xf32> to vector<1x8x8xf32>
    %391 = vector.shape_cast %387 : vector<8x8xf32> to vector<1x8x8xf32>
    %392 = tpu.concatenate %388, %389, %390, %391 in 0 : vector<1x8x8xf32>, vector<1x8x8xf32>, vector<1x8x8xf32>, vector<1x8x8xf32> -> vector<4x8x8xf32>
    %393 = arith.truncf %392 : vector<4x8x8xf32> to vector<4x8x8xbf16>
    %cst_94 = arith.constant dense<0.000000e+00> : vector<4x8x8xf32>
    %394 = tpu.matmul %373, %383, %cst_94 {dimension_numbers = #tpu.dot_dimension_numbers<[2], [2], [1], [1], [0, 0, 0, 1, 1, 1], [0], [0]>} : vector<4x8x8xbf16>, vector<4x8x8xbf16>, vector<4x8x8xf32> -> vector<4x8x8xf32>
    %cst_95 = arith.constant 0.353553385 : f32
    %395 = vector.broadcast %cst_95 : f32 to vector<4x8x8xf32>
    %396 = arith.mulf %394, %395 : vector<4x8x8xf32>
    %397 = vector.shape_cast %326 : vector<8x8xf32> to vector<1x8x8xf32>
    %398 = vector.broadcast %397 : vector<1x8x8xf32> to vector<4x8x8xf32>
    %399 = arith.addf %396, %398 : vector<4x8x8xf32>
    %cst_96 = arith.constant dense<0xFF800000> : vector<4x8xf32>
    %400 = vector.multi_reduction <maximumf>, %399, %cst_96 [2] : vector<4x8x8xf32> to vector<4x8xf32>
    %401 = vector.shape_cast %400 : vector<4x8xf32> to vector<4x8x1xf32>
    %402 = vector.broadcast %401 : vector<4x8x1xf32> to vector<4x8x8xf32>
    %403 = arith.subf %399, %402 : vector<4x8x8xf32>
    %404 = math.exp %403 : vector<4x8x8xf32>
    %cst_97 = arith.constant dense<0.000000e+00> : vector<4x8xf32>
    %405 = vector.multi_reduction <add>, %404, %cst_97 [2] : vector<4x8x8xf32> to vector<4x8xf32>
    %406 = vector.shape_cast %405 : vector<4x8xf32> to vector<4x8x1xf32>
    %407 = arith.truncf %404 : vector<4x8x8xf32> to vector<4x8x8xbf16>
    %cst_98 = arith.constant dense<0.000000e+00> : vector<4x8x8xf32>
    %408 = tpu.matmul %407, %393, %cst_98 {dimension_numbers = #tpu.dot_dimension_numbers<[2], [1], [1], [2], [0, 0, 0, 1, 1, 2], [0], [0]>} : vector<4x8x8xbf16>, vector<4x8x8xbf16>, vector<4x8x8xf32> -> vector<4x8x8xf32>
    %409 = tpu.reciprocal %406 {approx = true} : vector<4x8x1xf32> -> vector<4x8x1xf32>
    %410 = vector.broadcast %409 : vector<4x8x1xf32> to vector<4x8x8xf32>
    %411 = arith.mulf %408, %410 : vector<4x8x8xf32>
    %412 = vector.extract_strided_slice %411 {offsets = [0, 0, 0], sizes = [1, 8, 8], strides = [1, 1, 1]} : vector<4x8x8xf32> to vector<1x8x8xf32>
    %413 = vector.shape_cast %412 : vector<1x8x8xf32> to vector<8x8xf32>
    %414 = vector.extract_strided_slice %411 {offsets = [1, 0, 0], sizes = [1, 8, 8], strides = [1, 1, 1]} : vector<4x8x8xf32> to vector<1x8x8xf32>
    %415 = vector.shape_cast %414 : vector<1x8x8xf32> to vector<8x8xf32>
    %416 = vector.extract_strided_slice %411 {offsets = [2, 0, 0], sizes = [1, 8, 8], strides = [1, 1, 1]} : vector<4x8x8xf32> to vector<1x8x8xf32>
    %417 = vector.shape_cast %416 : vector<1x8x8xf32> to vector<8x8xf32>
    %418 = vector.extract_strided_slice %411 {offsets = [3, 0, 0], sizes = [1, 8, 8], strides = [1, 1, 1]} : vector<4x8x8xf32> to vector<1x8x8xf32>
    %419 = vector.shape_cast %418 : vector<1x8x8xf32> to vector<8x8xf32>
    %420 = tpu.concatenate %413, %415, %417, %419 in 1 : vector<8x8xf32>, vector<8x8xf32>, vector<8x8xf32>, vector<8x8xf32> -> vector<8x32xf32>
    %421 = arith.truncf %420 : vector<8x32xf32> to vector<8x32xbf16>
    %422 = arith.truncf %362 : vector<32x32xf32> to vector<32x32xbf16>
    %cst_99 = arith.constant dense<0.000000e+00> : vector<8x32xf32>
    %423 = tpu.matmul %421, %422, %cst_99 {dimension_numbers = #tpu.dot_dimension_numbers<[1], [0], [0], [1], [0, 0, 1, 1], [], []>} : vector<8x32xbf16>, vector<32x32xbf16>, vector<8x32xf32> -> vector<8x32xf32>
    %424 = vector.broadcast %363 : vector<1x32xf32> to vector<8x32xf32>
    %425 = arith.addf %423, %424 : vector<8x32xf32>
    %426 = arith.addf %351, %425 : vector<8x32xf32>
    %c304 = arith.constant 304 : index
    %c0_100 = arith.constant 0 : index
    %427 = vector.load %arg1[%c304, %c0_100] : memref<1144x128xf32, #tpu.memory_space<vmem>>, vector<2x32xf32>
    %cst_101 = arith.constant dense<0.000000e+00> : vector<8xf32>
    %428 = vector.multi_reduction <add>, %426, %cst_101 [1] : vector<8x32xf32> to vector<8xf32>
    %429 = vector.shape_cast %428 : vector<8xf32> to vector<8x1xf32>
    %cst_102 = arith.constant 3.200000e+01 : f32
    %430 = vector.broadcast %cst_102 : f32 to vector<8x1xf32>
    %431 = arith.divf %429, %430 : vector<8x1xf32>
    %432 = vector.broadcast %431 : vector<8x1xf32> to vector<8x32xf32>
    %433 = arith.subf %426, %432 : vector<8x32xf32>
    %434 = arith.mulf %433, %433 : vector<8x32xf32>
    %cst_103 = arith.constant dense<0.000000e+00> : vector<8xf32>
    %435 = vector.multi_reduction <add>, %434, %cst_103 [1] : vector<8x32xf32> to vector<8xf32>
    %436 = vector.shape_cast %435 : vector<8xf32> to vector<8x1xf32>
    %cst_104 = arith.constant 3.200000e+01 : f32
    %437 = vector.broadcast %cst_104 : f32 to vector<8x1xf32>
    %438 = arith.divf %436, %437 : vector<8x1xf32>
    %cst_105 = arith.constant 9.99999974E-6 : f32
    %439 = vector.broadcast %cst_105 : f32 to vector<8x1xf32>
    %440 = arith.addf %438, %439 : vector<8x1xf32>
    %441 = math.rsqrt %440 : vector<8x1xf32>
    %442 = vector.broadcast %441 : vector<8x1xf32> to vector<8x32xf32>
    %443 = arith.mulf %433, %442 : vector<8x32xf32>
    %444 = vector.extract_strided_slice %427 {offsets = [0, 0], sizes = [1, 32], strides = [1, 1]} : vector<2x32xf32> to vector<1x32xf32>
    %445 = vector.broadcast %444 : vector<1x32xf32> to vector<8x32xf32>
    %446 = arith.mulf %443, %445 : vector<8x32xf32>
    %447 = vector.extract_strided_slice %427 {offsets = [1, 0], sizes = [1, 32], strides = [1, 1]} : vector<2x32xf32> to vector<1x32xf32>
    %448 = vector.broadcast %447 : vector<1x32xf32> to vector<8x32xf32>
    %449 = arith.addf %446, %448 : vector<8x32xf32>
    %c312 = arith.constant 312 : index
    %c0_106 = arith.constant 0 : index
    %450 = vector.load %arg1[%c312, %c0_106] : memref<1144x128xf32, #tpu.memory_space<vmem>>, vector<32x32xf32>
    %451 = arith.truncf %449 : vector<8x32xf32> to vector<8x32xbf16>
    %452 = arith.truncf %450 : vector<32x32xf32> to vector<32x32xbf16>
    %cst_107 = arith.constant dense<0.000000e+00> : vector<8x32xf32>
    %453 = tpu.matmul %451, %452, %cst_107 {dimension_numbers = #tpu.dot_dimension_numbers<[1], [0], [0], [1], [0, 0, 1, 1], [], []>} : vector<8x32xbf16>, vector<32x32xbf16>, vector<8x32xf32> -> vector<8x32xf32>
    %c344 = arith.constant 344 : index
    %c0_108 = arith.constant 0 : index
    %454 = vector.load %arg1[%c344, %c0_108] : memref<1144x128xf32, #tpu.memory_space<vmem>>, vector<1x32xf32>
    %455 = vector.broadcast %454 : vector<1x32xf32> to vector<8x32xf32>
    %456 = arith.addf %453, %455 : vector<8x32xf32>
    %c352 = arith.constant 352 : index
    %c0_109 = arith.constant 0 : index
    %457 = vector.load %arg1[%c352, %c0_109] : memref<1144x128xf32, #tpu.memory_space<vmem>>, vector<32x64xf32>
    %458 = arith.truncf %324 : vector<16x32xf32> to vector<16x32xbf16>
    %459 = arith.truncf %457 : vector<32x64xf32> to vector<32x64xbf16>
    %cst_110 = arith.constant dense<0.000000e+00> : vector<16x64xf32>
    %460 = tpu.matmul %458, %459, %cst_110 {dimension_numbers = #tpu.dot_dimension_numbers<[1], [0], [0], [1], [0, 0, 1, 1], [], []>} : vector<16x32xbf16>, vector<32x64xbf16>, vector<16x64xf32> -> vector<16x64xf32>
    %c384 = arith.constant 384 : index
    %c0_111 = arith.constant 0 : index
    %461 = vector.load %arg1[%c384, %c0_111] : memref<1144x128xf32, #tpu.memory_space<vmem>>, vector<1x64xf32>
    %462 = vector.broadcast %461 : vector<1x64xf32> to vector<16x64xf32>
    %463 = arith.addf %460, %462 : vector<16x64xf32>
    %464 = vector.extract_strided_slice %463 {offsets = [0, 0], sizes = [16, 32], strides = [1, 1]} : vector<16x64xf32> to vector<16x32xf32>
    %465 = vector.extract_strided_slice %463 {offsets = [0, 32], sizes = [16, 32], strides = [1, 1]} : vector<16x64xf32> to vector<16x32xf32>
    %c392 = arith.constant 392 : index
    %c0_112 = arith.constant 0 : index
    %466 = vector.load %arg1[%c392, %c0_112] : memref<1144x128xf32, #tpu.memory_space<vmem>>, vector<32x32xf32>
    %c424 = arith.constant 424 : index
    %c0_113 = arith.constant 0 : index
    %467 = vector.load %arg1[%c424, %c0_113] : memref<1144x128xf32, #tpu.memory_space<vmem>>, vector<1x32xf32>
    %468 = vector.extract_strided_slice %456 {offsets = [0, 0], sizes = [8, 8], strides = [1, 1]} : vector<8x32xf32> to vector<8x8xf32>
    %469 = vector.extract_strided_slice %456 {offsets = [0, 8], sizes = [8, 8], strides = [1, 1]} : vector<8x32xf32> to vector<8x8xf32>
    %470 = vector.extract_strided_slice %456 {offsets = [0, 16], sizes = [8, 8], strides = [1, 1]} : vector<8x32xf32> to vector<8x8xf32>
    %471 = vector.extract_strided_slice %456 {offsets = [0, 24], sizes = [8, 8], strides = [1, 1]} : vector<8x32xf32> to vector<8x8xf32>
    %472 = vector.shape_cast %468 : vector<8x8xf32> to vector<1x8x8xf32>
    %473 = vector.shape_cast %469 : vector<8x8xf32> to vector<1x8x8xf32>
    %474 = vector.shape_cast %470 : vector<8x8xf32> to vector<1x8x8xf32>
    %475 = vector.shape_cast %471 : vector<8x8xf32> to vector<1x8x8xf32>
    %476 = tpu.concatenate %472, %473, %474, %475 in 0 : vector<1x8x8xf32>, vector<1x8x8xf32>, vector<1x8x8xf32>, vector<1x8x8xf32> -> vector<4x8x8xf32>
    %477 = arith.truncf %476 : vector<4x8x8xf32> to vector<4x8x8xbf16>
    %478 = vector.extract_strided_slice %464 {offsets = [0, 0], sizes = [16, 8], strides = [1, 1]} : vector<16x32xf32> to vector<16x8xf32>
    %479 = vector.extract_strided_slice %464 {offsets = [0, 8], sizes = [16, 8], strides = [1, 1]} : vector<16x32xf32> to vector<16x8xf32>
    %480 = vector.extract_strided_slice %464 {offsets = [0, 16], sizes = [16, 8], strides = [1, 1]} : vector<16x32xf32> to vector<16x8xf32>
    %481 = vector.extract_strided_slice %464 {offsets = [0, 24], sizes = [16, 8], strides = [1, 1]} : vector<16x32xf32> to vector<16x8xf32>
    %482 = vector.shape_cast %478 : vector<16x8xf32> to vector<1x16x8xf32>
    %483 = vector.shape_cast %479 : vector<16x8xf32> to vector<1x16x8xf32>
    %484 = vector.shape_cast %480 : vector<16x8xf32> to vector<1x16x8xf32>
    %485 = vector.shape_cast %481 : vector<16x8xf32> to vector<1x16x8xf32>
    %486 = tpu.concatenate %482, %483, %484, %485 in 0 : vector<1x16x8xf32>, vector<1x16x8xf32>, vector<1x16x8xf32>, vector<1x16x8xf32> -> vector<4x16x8xf32>
    %487 = arith.truncf %486 : vector<4x16x8xf32> to vector<4x16x8xbf16>
    %488 = vector.extract_strided_slice %465 {offsets = [0, 0], sizes = [16, 8], strides = [1, 1]} : vector<16x32xf32> to vector<16x8xf32>
    %489 = vector.extract_strided_slice %465 {offsets = [0, 8], sizes = [16, 8], strides = [1, 1]} : vector<16x32xf32> to vector<16x8xf32>
    %490 = vector.extract_strided_slice %465 {offsets = [0, 16], sizes = [16, 8], strides = [1, 1]} : vector<16x32xf32> to vector<16x8xf32>
    %491 = vector.extract_strided_slice %465 {offsets = [0, 24], sizes = [16, 8], strides = [1, 1]} : vector<16x32xf32> to vector<16x8xf32>
    %492 = vector.shape_cast %488 : vector<16x8xf32> to vector<1x16x8xf32>
    %493 = vector.shape_cast %489 : vector<16x8xf32> to vector<1x16x8xf32>
    %494 = vector.shape_cast %490 : vector<16x8xf32> to vector<1x16x8xf32>
    %495 = vector.shape_cast %491 : vector<16x8xf32> to vector<1x16x8xf32>
    %496 = tpu.concatenate %492, %493, %494, %495 in 0 : vector<1x16x8xf32>, vector<1x16x8xf32>, vector<1x16x8xf32>, vector<1x16x8xf32> -> vector<4x16x8xf32>
    %497 = arith.truncf %496 : vector<4x16x8xf32> to vector<4x16x8xbf16>
    %cst_114 = arith.constant dense<0.000000e+00> : vector<4x8x16xf32>
    %498 = tpu.matmul %477, %487, %cst_114 {dimension_numbers = #tpu.dot_dimension_numbers<[2], [2], [1], [1], [0, 0, 0, 1, 1, 1], [0], [0]>} : vector<4x8x8xbf16>, vector<4x16x8xbf16>, vector<4x8x16xf32> -> vector<4x8x16xf32>
    %cst_115 = arith.constant 0.353553385 : f32
    %499 = vector.broadcast %cst_115 : f32 to vector<4x8x16xf32>
    %500 = arith.mulf %498, %499 : vector<4x8x16xf32>
    %501 = vector.shape_cast %1 : vector<1x16xf32> to vector<1x1x16xf32>
    %502 = vector.broadcast %501 : vector<1x1x16xf32> to vector<4x8x16xf32>
    %503 = arith.addf %500, %502 : vector<4x8x16xf32>
    %cst_116 = arith.constant dense<0xFF800000> : vector<4x8xf32>
    %504 = vector.multi_reduction <maximumf>, %503, %cst_116 [2] : vector<4x8x16xf32> to vector<4x8xf32>
    %505 = vector.shape_cast %504 : vector<4x8xf32> to vector<4x8x1xf32>
    %506 = vector.broadcast %505 : vector<4x8x1xf32> to vector<4x8x16xf32>
    %507 = arith.subf %503, %506 : vector<4x8x16xf32>
    %508 = math.exp %507 : vector<4x8x16xf32>
    %cst_117 = arith.constant dense<0.000000e+00> : vector<4x8xf32>
    %509 = vector.multi_reduction <add>, %508, %cst_117 [2] : vector<4x8x16xf32> to vector<4x8xf32>
    %510 = vector.shape_cast %509 : vector<4x8xf32> to vector<4x8x1xf32>
    %511 = arith.truncf %508 : vector<4x8x16xf32> to vector<4x8x16xbf16>
    %cst_118 = arith.constant dense<0.000000e+00> : vector<4x8x8xf32>
    %512 = tpu.matmul %511, %497, %cst_118 {dimension_numbers = #tpu.dot_dimension_numbers<[2], [1], [1], [2], [0, 0, 0, 1, 1, 2], [0], [0]>} : vector<4x8x16xbf16>, vector<4x16x8xbf16>, vector<4x8x8xf32> -> vector<4x8x8xf32>
    %513 = tpu.reciprocal %510 {approx = true} : vector<4x8x1xf32> -> vector<4x8x1xf32>
    %514 = vector.broadcast %513 : vector<4x8x1xf32> to vector<4x8x8xf32>
    %515 = arith.mulf %512, %514 : vector<4x8x8xf32>
    %516 = vector.extract_strided_slice %515 {offsets = [0, 0, 0], sizes = [1, 8, 8], strides = [1, 1, 1]} : vector<4x8x8xf32> to vector<1x8x8xf32>
    %517 = vector.shape_cast %516 : vector<1x8x8xf32> to vector<8x8xf32>
    %518 = vector.extract_strided_slice %515 {offsets = [1, 0, 0], sizes = [1, 8, 8], strides = [1, 1, 1]} : vector<4x8x8xf32> to vector<1x8x8xf32>
    %519 = vector.shape_cast %518 : vector<1x8x8xf32> to vector<8x8xf32>
    %520 = vector.extract_strided_slice %515 {offsets = [2, 0, 0], sizes = [1, 8, 8], strides = [1, 1, 1]} : vector<4x8x8xf32> to vector<1x8x8xf32>
    %521 = vector.shape_cast %520 : vector<1x8x8xf32> to vector<8x8xf32>
    %522 = vector.extract_strided_slice %515 {offsets = [3, 0, 0], sizes = [1, 8, 8], strides = [1, 1, 1]} : vector<4x8x8xf32> to vector<1x8x8xf32>
    %523 = vector.shape_cast %522 : vector<1x8x8xf32> to vector<8x8xf32>
    %524 = tpu.concatenate %517, %519, %521, %523 in 1 : vector<8x8xf32>, vector<8x8xf32>, vector<8x8xf32>, vector<8x8xf32> -> vector<8x32xf32>
    %525 = arith.truncf %524 : vector<8x32xf32> to vector<8x32xbf16>
    %526 = arith.truncf %466 : vector<32x32xf32> to vector<32x32xbf16>
    %cst_119 = arith.constant dense<0.000000e+00> : vector<8x32xf32>
    %527 = tpu.matmul %525, %526, %cst_119 {dimension_numbers = #tpu.dot_dimension_numbers<[1], [0], [0], [1], [0, 0, 1, 1], [], []>} : vector<8x32xbf16>, vector<32x32xbf16>, vector<8x32xf32> -> vector<8x32xf32>
    %528 = vector.broadcast %467 : vector<1x32xf32> to vector<8x32xf32>
    %529 = arith.addf %527, %528 : vector<8x32xf32>
    %530 = arith.addf %449, %529 : vector<8x32xf32>
    %c432 = arith.constant 432 : index
    %c0_120 = arith.constant 0 : index
    %531 = vector.load %arg1[%c432, %c0_120] : memref<1144x128xf32, #tpu.memory_space<vmem>>, vector<2x32xf32>
    %cst_121 = arith.constant dense<0.000000e+00> : vector<8xf32>
    %532 = vector.multi_reduction <add>, %530, %cst_121 [1] : vector<8x32xf32> to vector<8xf32>
    %533 = vector.shape_cast %532 : vector<8xf32> to vector<8x1xf32>
    %cst_122 = arith.constant 3.200000e+01 : f32
    %534 = vector.broadcast %cst_122 : f32 to vector<8x1xf32>
    %535 = arith.divf %533, %534 : vector<8x1xf32>
    %536 = vector.broadcast %535 : vector<8x1xf32> to vector<8x32xf32>
    %537 = arith.subf %530, %536 : vector<8x32xf32>
    %538 = arith.mulf %537, %537 : vector<8x32xf32>
    %cst_123 = arith.constant dense<0.000000e+00> : vector<8xf32>
    %539 = vector.multi_reduction <add>, %538, %cst_123 [1] : vector<8x32xf32> to vector<8xf32>
    %540 = vector.shape_cast %539 : vector<8xf32> to vector<8x1xf32>
    %cst_124 = arith.constant 3.200000e+01 : f32
    %541 = vector.broadcast %cst_124 : f32 to vector<8x1xf32>
    %542 = arith.divf %540, %541 : vector<8x1xf32>
    %cst_125 = arith.constant 9.99999974E-6 : f32
    %543 = vector.broadcast %cst_125 : f32 to vector<8x1xf32>
    %544 = arith.addf %542, %543 : vector<8x1xf32>
    %545 = math.rsqrt %544 : vector<8x1xf32>
    %546 = vector.broadcast %545 : vector<8x1xf32> to vector<8x32xf32>
    %547 = arith.mulf %537, %546 : vector<8x32xf32>
    %548 = vector.extract_strided_slice %531 {offsets = [0, 0], sizes = [1, 32], strides = [1, 1]} : vector<2x32xf32> to vector<1x32xf32>
    %549 = vector.broadcast %548 : vector<1x32xf32> to vector<8x32xf32>
    %550 = arith.mulf %547, %549 : vector<8x32xf32>
    %551 = vector.extract_strided_slice %531 {offsets = [1, 0], sizes = [1, 32], strides = [1, 1]} : vector<2x32xf32> to vector<1x32xf32>
    %552 = vector.broadcast %551 : vector<1x32xf32> to vector<8x32xf32>
    %553 = arith.addf %550, %552 : vector<8x32xf32>
    %c440 = arith.constant 440 : index
    %c0_126 = arith.constant 0 : index
    %554 = vector.load %arg1[%c440, %c0_126] : memref<1144x128xf32, #tpu.memory_space<vmem>>, vector<32x64xf32>
    %c472 = arith.constant 472 : index
    %c0_127 = arith.constant 0 : index
    %555 = vector.load %arg1[%c472, %c0_127] : memref<1144x128xf32, #tpu.memory_space<vmem>>, vector<1x64xf32>
    %c480 = arith.constant 480 : index
    %c0_128 = arith.constant 0 : index
    %556 = vector.load %arg1[%c480, %c0_128] : memref<1144x128xf32, #tpu.memory_space<vmem>>, vector<64x32xf32>
    %c544 = arith.constant 544 : index
    %c0_129 = arith.constant 0 : index
    %557 = vector.load %arg1[%c544, %c0_129] : memref<1144x128xf32, #tpu.memory_space<vmem>>, vector<1x32xf32>
    %558 = arith.truncf %553 : vector<8x32xf32> to vector<8x32xbf16>
    %559 = arith.truncf %554 : vector<32x64xf32> to vector<32x64xbf16>
    %cst_130 = arith.constant dense<0.000000e+00> : vector<8x64xf32>
    %560 = tpu.matmul %558, %559, %cst_130 {dimension_numbers = #tpu.dot_dimension_numbers<[1], [0], [0], [1], [0, 0, 1, 1], [], []>} : vector<8x32xbf16>, vector<32x64xbf16>, vector<8x64xf32> -> vector<8x64xf32>
    %561 = vector.broadcast %555 : vector<1x64xf32> to vector<8x64xf32>
    %562 = arith.addf %560, %561 : vector<8x64xf32>
    %563 = arith.mulf %562, %562 : vector<8x64xf32>
    %564 = arith.mulf %562, %563 : vector<8x64xf32>
    %cst_131 = arith.constant 4.471500e-02 : f32
    %565 = vector.broadcast %cst_131 : f32 to vector<8x64xf32>
    %566 = arith.mulf %565, %564 : vector<8x64xf32>
    %567 = arith.addf %562, %566 : vector<8x64xf32>
    %cst_132 = arith.constant 0.797884583 : f32
    %568 = vector.broadcast %cst_132 : f32 to vector<8x64xf32>
    %569 = arith.mulf %568, %567 : vector<8x64xf32>
    %570 = math.tanh %569 : vector<8x64xf32>
    %cst_133 = arith.constant 1.000000e+00 : f32
    %571 = vector.broadcast %cst_133 : f32 to vector<8x64xf32>
    %572 = arith.addf %571, %570 : vector<8x64xf32>
    %cst_134 = arith.constant 5.000000e-01 : f32
    %573 = vector.broadcast %cst_134 : f32 to vector<8x64xf32>
    %574 = arith.mulf %573, %572 : vector<8x64xf32>
    %575 = arith.mulf %562, %574 : vector<8x64xf32>
    %576 = arith.truncf %575 : vector<8x64xf32> to vector<8x64xbf16>
    %577 = arith.truncf %556 : vector<64x32xf32> to vector<64x32xbf16>
    %cst_135 = arith.constant dense<0.000000e+00> : vector<8x32xf32>
    %578 = tpu.matmul %576, %577, %cst_135 {dimension_numbers = #tpu.dot_dimension_numbers<[1], [0], [0], [1], [0, 0, 1, 1], [], []>} : vector<8x64xbf16>, vector<64x32xbf16>, vector<8x32xf32> -> vector<8x32xf32>
    %579 = vector.broadcast %557 : vector<1x32xf32> to vector<8x32xf32>
    %580 = arith.addf %578, %579 : vector<8x32xf32>
    %581 = arith.addf %553, %580 : vector<8x32xf32>
    %c552 = arith.constant 552 : index
    %c0_136 = arith.constant 0 : index
    %582 = vector.load %arg1[%c552, %c0_136] : memref<1144x128xf32, #tpu.memory_space<vmem>>, vector<2x32xf32>
    %cst_137 = arith.constant dense<0.000000e+00> : vector<8xf32>
    %583 = vector.multi_reduction <add>, %581, %cst_137 [1] : vector<8x32xf32> to vector<8xf32>
    %584 = vector.shape_cast %583 : vector<8xf32> to vector<8x1xf32>
    %cst_138 = arith.constant 3.200000e+01 : f32
    %585 = vector.broadcast %cst_138 : f32 to vector<8x1xf32>
    %586 = arith.divf %584, %585 : vector<8x1xf32>
    %587 = vector.broadcast %586 : vector<8x1xf32> to vector<8x32xf32>
    %588 = arith.subf %581, %587 : vector<8x32xf32>
    %589 = arith.mulf %588, %588 : vector<8x32xf32>
    %cst_139 = arith.constant dense<0.000000e+00> : vector<8xf32>
    %590 = vector.multi_reduction <add>, %589, %cst_139 [1] : vector<8x32xf32> to vector<8xf32>
    %591 = vector.shape_cast %590 : vector<8xf32> to vector<8x1xf32>
    %cst_140 = arith.constant 3.200000e+01 : f32
    %592 = vector.broadcast %cst_140 : f32 to vector<8x1xf32>
    %593 = arith.divf %591, %592 : vector<8x1xf32>
    %cst_141 = arith.constant 9.99999974E-6 : f32
    %594 = vector.broadcast %cst_141 : f32 to vector<8x1xf32>
    %595 = arith.addf %593, %594 : vector<8x1xf32>
    %596 = math.rsqrt %595 : vector<8x1xf32>
    %597 = vector.broadcast %596 : vector<8x1xf32> to vector<8x32xf32>
    %598 = arith.mulf %588, %597 : vector<8x32xf32>
    %599 = vector.extract_strided_slice %582 {offsets = [0, 0], sizes = [1, 32], strides = [1, 1]} : vector<2x32xf32> to vector<1x32xf32>
    %600 = vector.broadcast %599 : vector<1x32xf32> to vector<8x32xf32>
    %601 = arith.mulf %598, %600 : vector<8x32xf32>
    %602 = vector.extract_strided_slice %582 {offsets = [1, 0], sizes = [1, 32], strides = [1, 1]} : vector<2x32xf32> to vector<1x32xf32>
    %603 = vector.broadcast %602 : vector<1x32xf32> to vector<8x32xf32>
    %604 = arith.addf %601, %603 : vector<8x32xf32>
    %c768 = arith.constant 768 : index
    %c0_142 = arith.constant 0 : index
    %605 = vector.load %arg1[%c768, %c0_142] : memref<1144x128xf32, #tpu.memory_space<vmem>>, vector<32x96xf32>
    %606 = arith.truncf %604 : vector<8x32xf32> to vector<8x32xbf16>
    %607 = arith.truncf %605 : vector<32x96xf32> to vector<32x96xbf16>
    %cst_143 = arith.constant dense<0.000000e+00> : vector<8x96xf32>
    %608 = tpu.matmul %606, %607, %cst_143 {dimension_numbers = #tpu.dot_dimension_numbers<[1], [0], [0], [1], [0, 0, 1, 1], [], []>} : vector<8x32xbf16>, vector<32x96xbf16>, vector<8x96xf32> -> vector<8x96xf32>
    %c800 = arith.constant 800 : index
    %c0_144 = arith.constant 0 : index
    %609 = vector.load %arg1[%c800, %c0_144] : memref<1144x128xf32, #tpu.memory_space<vmem>>, vector<1x96xf32>
    %610 = vector.broadcast %609 : vector<1x96xf32> to vector<8x96xf32>
    %611 = arith.addf %608, %610 : vector<8x96xf32>
    %612 = vector.extract_strided_slice %611 {offsets = [0, 0], sizes = [8, 32], strides = [1, 1]} : vector<8x96xf32> to vector<8x32xf32>
    %613 = vector.extract_strided_slice %611 {offsets = [0, 32], sizes = [8, 32], strides = [1, 1]} : vector<8x96xf32> to vector<8x32xf32>
    %614 = vector.extract_strided_slice %611 {offsets = [0, 64], sizes = [8, 32], strides = [1, 1]} : vector<8x96xf32> to vector<8x32xf32>
    %c808 = arith.constant 808 : index
    %c0_145 = arith.constant 0 : index
    %615 = vector.load %arg1[%c808, %c0_145] : memref<1144x128xf32, #tpu.memory_space<vmem>>, vector<32x32xf32>
    %c840 = arith.constant 840 : index
    %c0_146 = arith.constant 0 : index
    %616 = vector.load %arg1[%c840, %c0_146] : memref<1144x128xf32, #tpu.memory_space<vmem>>, vector<1x32xf32>
    %617 = vector.extract_strided_slice %612 {offsets = [0, 0], sizes = [8, 8], strides = [1, 1]} : vector<8x32xf32> to vector<8x8xf32>
    %618 = vector.extract_strided_slice %612 {offsets = [0, 8], sizes = [8, 8], strides = [1, 1]} : vector<8x32xf32> to vector<8x8xf32>
    %619 = vector.extract_strided_slice %612 {offsets = [0, 16], sizes = [8, 8], strides = [1, 1]} : vector<8x32xf32> to vector<8x8xf32>
    %620 = vector.extract_strided_slice %612 {offsets = [0, 24], sizes = [8, 8], strides = [1, 1]} : vector<8x32xf32> to vector<8x8xf32>
    %621 = vector.shape_cast %617 : vector<8x8xf32> to vector<1x8x8xf32>
    %622 = vector.shape_cast %618 : vector<8x8xf32> to vector<1x8x8xf32>
    %623 = vector.shape_cast %619 : vector<8x8xf32> to vector<1x8x8xf32>
    %624 = vector.shape_cast %620 : vector<8x8xf32> to vector<1x8x8xf32>
    %625 = tpu.concatenate %621, %622, %623, %624 in 0 : vector<1x8x8xf32>, vector<1x8x8xf32>, vector<1x8x8xf32>, vector<1x8x8xf32> -> vector<4x8x8xf32>
    %626 = arith.truncf %625 : vector<4x8x8xf32> to vector<4x8x8xbf16>
    %627 = vector.extract_strided_slice %613 {offsets = [0, 0], sizes = [8, 8], strides = [1, 1]} : vector<8x32xf32> to vector<8x8xf32>
    %628 = vector.extract_strided_slice %613 {offsets = [0, 8], sizes = [8, 8], strides = [1, 1]} : vector<8x32xf32> to vector<8x8xf32>
    %629 = vector.extract_strided_slice %613 {offsets = [0, 16], sizes = [8, 8], strides = [1, 1]} : vector<8x32xf32> to vector<8x8xf32>
    %630 = vector.extract_strided_slice %613 {offsets = [0, 24], sizes = [8, 8], strides = [1, 1]} : vector<8x32xf32> to vector<8x8xf32>
    %631 = vector.shape_cast %627 : vector<8x8xf32> to vector<1x8x8xf32>
    %632 = vector.shape_cast %628 : vector<8x8xf32> to vector<1x8x8xf32>
    %633 = vector.shape_cast %629 : vector<8x8xf32> to vector<1x8x8xf32>
    %634 = vector.shape_cast %630 : vector<8x8xf32> to vector<1x8x8xf32>
    %635 = tpu.concatenate %631, %632, %633, %634 in 0 : vector<1x8x8xf32>, vector<1x8x8xf32>, vector<1x8x8xf32>, vector<1x8x8xf32> -> vector<4x8x8xf32>
    %636 = arith.truncf %635 : vector<4x8x8xf32> to vector<4x8x8xbf16>
    %637 = vector.extract_strided_slice %614 {offsets = [0, 0], sizes = [8, 8], strides = [1, 1]} : vector<8x32xf32> to vector<8x8xf32>
    %638 = vector.extract_strided_slice %614 {offsets = [0, 8], sizes = [8, 8], strides = [1, 1]} : vector<8x32xf32> to vector<8x8xf32>
    %639 = vector.extract_strided_slice %614 {offsets = [0, 16], sizes = [8, 8], strides = [1, 1]} : vector<8x32xf32> to vector<8x8xf32>
    %640 = vector.extract_strided_slice %614 {offsets = [0, 24], sizes = [8, 8], strides = [1, 1]} : vector<8x32xf32> to vector<8x8xf32>
    %641 = vector.shape_cast %637 : vector<8x8xf32> to vector<1x8x8xf32>
    %642 = vector.shape_cast %638 : vector<8x8xf32> to vector<1x8x8xf32>
    %643 = vector.shape_cast %639 : vector<8x8xf32> to vector<1x8x8xf32>
    %644 = vector.shape_cast %640 : vector<8x8xf32> to vector<1x8x8xf32>
    %645 = tpu.concatenate %641, %642, %643, %644 in 0 : vector<1x8x8xf32>, vector<1x8x8xf32>, vector<1x8x8xf32>, vector<1x8x8xf32> -> vector<4x8x8xf32>
    %646 = arith.truncf %645 : vector<4x8x8xf32> to vector<4x8x8xbf16>
    %cst_147 = arith.constant dense<0.000000e+00> : vector<4x8x8xf32>
    %647 = tpu.matmul %626, %636, %cst_147 {dimension_numbers = #tpu.dot_dimension_numbers<[2], [2], [1], [1], [0, 0, 0, 1, 1, 1], [0], [0]>} : vector<4x8x8xbf16>, vector<4x8x8xbf16>, vector<4x8x8xf32> -> vector<4x8x8xf32>
    %cst_148 = arith.constant 0.353553385 : f32
    %648 = vector.broadcast %cst_148 : f32 to vector<4x8x8xf32>
    %649 = arith.mulf %647, %648 : vector<4x8x8xf32>
    %650 = vector.shape_cast %326 : vector<8x8xf32> to vector<1x8x8xf32>
    %651 = vector.broadcast %650 : vector<1x8x8xf32> to vector<4x8x8xf32>
    %652 = arith.addf %649, %651 : vector<4x8x8xf32>
    %cst_149 = arith.constant dense<0xFF800000> : vector<4x8xf32>
    %653 = vector.multi_reduction <maximumf>, %652, %cst_149 [2] : vector<4x8x8xf32> to vector<4x8xf32>
    %654 = vector.shape_cast %653 : vector<4x8xf32> to vector<4x8x1xf32>
    %655 = vector.broadcast %654 : vector<4x8x1xf32> to vector<4x8x8xf32>
    %656 = arith.subf %652, %655 : vector<4x8x8xf32>
    %657 = math.exp %656 : vector<4x8x8xf32>
    %cst_150 = arith.constant dense<0.000000e+00> : vector<4x8xf32>
    %658 = vector.multi_reduction <add>, %657, %cst_150 [2] : vector<4x8x8xf32> to vector<4x8xf32>
    %659 = vector.shape_cast %658 : vector<4x8xf32> to vector<4x8x1xf32>
    %660 = arith.truncf %657 : vector<4x8x8xf32> to vector<4x8x8xbf16>
    %cst_151 = arith.constant dense<0.000000e+00> : vector<4x8x8xf32>
    %661 = tpu.matmul %660, %646, %cst_151 {dimension_numbers = #tpu.dot_dimension_numbers<[2], [1], [1], [2], [0, 0, 0, 1, 1, 2], [0], [0]>} : vector<4x8x8xbf16>, vector<4x8x8xbf16>, vector<4x8x8xf32> -> vector<4x8x8xf32>
    %662 = tpu.reciprocal %659 {approx = true} : vector<4x8x1xf32> -> vector<4x8x1xf32>
    %663 = vector.broadcast %662 : vector<4x8x1xf32> to vector<4x8x8xf32>
    %664 = arith.mulf %661, %663 : vector<4x8x8xf32>
    %665 = vector.extract_strided_slice %664 {offsets = [0, 0, 0], sizes = [1, 8, 8], strides = [1, 1, 1]} : vector<4x8x8xf32> to vector<1x8x8xf32>
    %666 = vector.shape_cast %665 : vector<1x8x8xf32> to vector<8x8xf32>
    %667 = vector.extract_strided_slice %664 {offsets = [1, 0, 0], sizes = [1, 8, 8], strides = [1, 1, 1]} : vector<4x8x8xf32> to vector<1x8x8xf32>
    %668 = vector.shape_cast %667 : vector<1x8x8xf32> to vector<8x8xf32>
    %669 = vector.extract_strided_slice %664 {offsets = [2, 0, 0], sizes = [1, 8, 8], strides = [1, 1, 1]} : vector<4x8x8xf32> to vector<1x8x8xf32>
    %670 = vector.shape_cast %669 : vector<1x8x8xf32> to vector<8x8xf32>
    %671 = vector.extract_strided_slice %664 {offsets = [3, 0, 0], sizes = [1, 8, 8], strides = [1, 1, 1]} : vector<4x8x8xf32> to vector<1x8x8xf32>
    %672 = vector.shape_cast %671 : vector<1x8x8xf32> to vector<8x8xf32>
    %673 = tpu.concatenate %666, %668, %670, %672 in 1 : vector<8x8xf32>, vector<8x8xf32>, vector<8x8xf32>, vector<8x8xf32> -> vector<8x32xf32>
    %674 = arith.truncf %673 : vector<8x32xf32> to vector<8x32xbf16>
    %675 = arith.truncf %615 : vector<32x32xf32> to vector<32x32xbf16>
    %cst_152 = arith.constant dense<0.000000e+00> : vector<8x32xf32>
    %676 = tpu.matmul %674, %675, %cst_152 {dimension_numbers = #tpu.dot_dimension_numbers<[1], [0], [0], [1], [0, 0, 1, 1], [], []>} : vector<8x32xbf16>, vector<32x32xbf16>, vector<8x32xf32> -> vector<8x32xf32>
    %677 = vector.broadcast %616 : vector<1x32xf32> to vector<8x32xf32>
    %678 = arith.addf %676, %677 : vector<8x32xf32>
    %679 = arith.addf %604, %678 : vector<8x32xf32>
    %c848 = arith.constant 848 : index
    %c0_153 = arith.constant 0 : index
    %680 = vector.load %arg1[%c848, %c0_153] : memref<1144x128xf32, #tpu.memory_space<vmem>>, vector<2x32xf32>
    %cst_154 = arith.constant dense<0.000000e+00> : vector<8xf32>
    %681 = vector.multi_reduction <add>, %679, %cst_154 [1] : vector<8x32xf32> to vector<8xf32>
    %682 = vector.shape_cast %681 : vector<8xf32> to vector<8x1xf32>
    %cst_155 = arith.constant 3.200000e+01 : f32
    %683 = vector.broadcast %cst_155 : f32 to vector<8x1xf32>
    %684 = arith.divf %682, %683 : vector<8x1xf32>
    %685 = vector.broadcast %684 : vector<8x1xf32> to vector<8x32xf32>
    %686 = arith.subf %679, %685 : vector<8x32xf32>
    %687 = arith.mulf %686, %686 : vector<8x32xf32>
    %cst_156 = arith.constant dense<0.000000e+00> : vector<8xf32>
    %688 = vector.multi_reduction <add>, %687, %cst_156 [1] : vector<8x32xf32> to vector<8xf32>
    %689 = vector.shape_cast %688 : vector<8xf32> to vector<8x1xf32>
    %cst_157 = arith.constant 3.200000e+01 : f32
    %690 = vector.broadcast %cst_157 : f32 to vector<8x1xf32>
    %691 = arith.divf %689, %690 : vector<8x1xf32>
    %cst_158 = arith.constant 9.99999974E-6 : f32
    %692 = vector.broadcast %cst_158 : f32 to vector<8x1xf32>
    %693 = arith.addf %691, %692 : vector<8x1xf32>
    %694 = math.rsqrt %693 : vector<8x1xf32>
    %695 = vector.broadcast %694 : vector<8x1xf32> to vector<8x32xf32>
    %696 = arith.mulf %686, %695 : vector<8x32xf32>
    %697 = vector.extract_strided_slice %680 {offsets = [0, 0], sizes = [1, 32], strides = [1, 1]} : vector<2x32xf32> to vector<1x32xf32>
    %698 = vector.broadcast %697 : vector<1x32xf32> to vector<8x32xf32>
    %699 = arith.mulf %696, %698 : vector<8x32xf32>
    %700 = vector.extract_strided_slice %680 {offsets = [1, 0], sizes = [1, 32], strides = [1, 1]} : vector<2x32xf32> to vector<1x32xf32>
    %701 = vector.broadcast %700 : vector<1x32xf32> to vector<8x32xf32>
    %702 = arith.addf %699, %701 : vector<8x32xf32>
    %c856 = arith.constant 856 : index
    %c0_159 = arith.constant 0 : index
    %703 = vector.load %arg1[%c856, %c0_159] : memref<1144x128xf32, #tpu.memory_space<vmem>>, vector<32x32xf32>
    %704 = arith.truncf %702 : vector<8x32xf32> to vector<8x32xbf16>
    %705 = arith.truncf %703 : vector<32x32xf32> to vector<32x32xbf16>
    %cst_160 = arith.constant dense<0.000000e+00> : vector<8x32xf32>
    %706 = tpu.matmul %704, %705, %cst_160 {dimension_numbers = #tpu.dot_dimension_numbers<[1], [0], [0], [1], [0, 0, 1, 1], [], []>} : vector<8x32xbf16>, vector<32x32xbf16>, vector<8x32xf32> -> vector<8x32xf32>
    %c888 = arith.constant 888 : index
    %c0_161 = arith.constant 0 : index
    %707 = vector.load %arg1[%c888, %c0_161] : memref<1144x128xf32, #tpu.memory_space<vmem>>, vector<1x32xf32>
    %708 = vector.broadcast %707 : vector<1x32xf32> to vector<8x32xf32>
    %709 = arith.addf %706, %708 : vector<8x32xf32>
    %c896 = arith.constant 896 : index
    %c0_162 = arith.constant 0 : index
    %710 = vector.load %arg1[%c896, %c0_162] : memref<1144x128xf32, #tpu.memory_space<vmem>>, vector<32x64xf32>
    %711 = arith.truncf %324 : vector<16x32xf32> to vector<16x32xbf16>
    %712 = arith.truncf %710 : vector<32x64xf32> to vector<32x64xbf16>
    %cst_163 = arith.constant dense<0.000000e+00> : vector<16x64xf32>
    %713 = tpu.matmul %711, %712, %cst_163 {dimension_numbers = #tpu.dot_dimension_numbers<[1], [0], [0], [1], [0, 0, 1, 1], [], []>} : vector<16x32xbf16>, vector<32x64xbf16>, vector<16x64xf32> -> vector<16x64xf32>
    %c928 = arith.constant 928 : index
    %c0_164 = arith.constant 0 : index
    %714 = vector.load %arg1[%c928, %c0_164] : memref<1144x128xf32, #tpu.memory_space<vmem>>, vector<1x64xf32>
    %715 = vector.broadcast %714 : vector<1x64xf32> to vector<16x64xf32>
    %716 = arith.addf %713, %715 : vector<16x64xf32>
    %717 = vector.extract_strided_slice %716 {offsets = [0, 0], sizes = [16, 32], strides = [1, 1]} : vector<16x64xf32> to vector<16x32xf32>
    %718 = vector.extract_strided_slice %716 {offsets = [0, 32], sizes = [16, 32], strides = [1, 1]} : vector<16x64xf32> to vector<16x32xf32>
    %c936 = arith.constant 936 : index
    %c0_165 = arith.constant 0 : index
    %719 = vector.load %arg1[%c936, %c0_165] : memref<1144x128xf32, #tpu.memory_space<vmem>>, vector<32x32xf32>
    %c968 = arith.constant 968 : index
    %c0_166 = arith.constant 0 : index
    %720 = vector.load %arg1[%c968, %c0_166] : memref<1144x128xf32, #tpu.memory_space<vmem>>, vector<1x32xf32>
    %721 = vector.extract_strided_slice %709 {offsets = [0, 0], sizes = [8, 8], strides = [1, 1]} : vector<8x32xf32> to vector<8x8xf32>
    %722 = vector.extract_strided_slice %709 {offsets = [0, 8], sizes = [8, 8], strides = [1, 1]} : vector<8x32xf32> to vector<8x8xf32>
    %723 = vector.extract_strided_slice %709 {offsets = [0, 16], sizes = [8, 8], strides = [1, 1]} : vector<8x32xf32> to vector<8x8xf32>
    %724 = vector.extract_strided_slice %709 {offsets = [0, 24], sizes = [8, 8], strides = [1, 1]} : vector<8x32xf32> to vector<8x8xf32>
    %725 = vector.shape_cast %721 : vector<8x8xf32> to vector<1x8x8xf32>
    %726 = vector.shape_cast %722 : vector<8x8xf32> to vector<1x8x8xf32>
    %727 = vector.shape_cast %723 : vector<8x8xf32> to vector<1x8x8xf32>
    %728 = vector.shape_cast %724 : vector<8x8xf32> to vector<1x8x8xf32>
    %729 = tpu.concatenate %725, %726, %727, %728 in 0 : vector<1x8x8xf32>, vector<1x8x8xf32>, vector<1x8x8xf32>, vector<1x8x8xf32> -> vector<4x8x8xf32>
    %730 = arith.truncf %729 : vector<4x8x8xf32> to vector<4x8x8xbf16>
    %731 = vector.extract_strided_slice %717 {offsets = [0, 0], sizes = [16, 8], strides = [1, 1]} : vector<16x32xf32> to vector<16x8xf32>
    %732 = vector.extract_strided_slice %717 {offsets = [0, 8], sizes = [16, 8], strides = [1, 1]} : vector<16x32xf32> to vector<16x8xf32>
    %733 = vector.extract_strided_slice %717 {offsets = [0, 16], sizes = [16, 8], strides = [1, 1]} : vector<16x32xf32> to vector<16x8xf32>
    %734 = vector.extract_strided_slice %717 {offsets = [0, 24], sizes = [16, 8], strides = [1, 1]} : vector<16x32xf32> to vector<16x8xf32>
    %735 = vector.shape_cast %731 : vector<16x8xf32> to vector<1x16x8xf32>
    %736 = vector.shape_cast %732 : vector<16x8xf32> to vector<1x16x8xf32>
    %737 = vector.shape_cast %733 : vector<16x8xf32> to vector<1x16x8xf32>
    %738 = vector.shape_cast %734 : vector<16x8xf32> to vector<1x16x8xf32>
    %739 = tpu.concatenate %735, %736, %737, %738 in 0 : vector<1x16x8xf32>, vector<1x16x8xf32>, vector<1x16x8xf32>, vector<1x16x8xf32> -> vector<4x16x8xf32>
    %740 = arith.truncf %739 : vector<4x16x8xf32> to vector<4x16x8xbf16>
    %741 = vector.extract_strided_slice %718 {offsets = [0, 0], sizes = [16, 8], strides = [1, 1]} : vector<16x32xf32> to vector<16x8xf32>
    %742 = vector.extract_strided_slice %718 {offsets = [0, 8], sizes = [16, 8], strides = [1, 1]} : vector<16x32xf32> to vector<16x8xf32>
    %743 = vector.extract_strided_slice %718 {offsets = [0, 16], sizes = [16, 8], strides = [1, 1]} : vector<16x32xf32> to vector<16x8xf32>
    %744 = vector.extract_strided_slice %718 {offsets = [0, 24], sizes = [16, 8], strides = [1, 1]} : vector<16x32xf32> to vector<16x8xf32>
    %745 = vector.shape_cast %741 : vector<16x8xf32> to vector<1x16x8xf32>
    %746 = vector.shape_cast %742 : vector<16x8xf32> to vector<1x16x8xf32>
    %747 = vector.shape_cast %743 : vector<16x8xf32> to vector<1x16x8xf32>
    %748 = vector.shape_cast %744 : vector<16x8xf32> to vector<1x16x8xf32>
    %749 = tpu.concatenate %745, %746, %747, %748 in 0 : vector<1x16x8xf32>, vector<1x16x8xf32>, vector<1x16x8xf32>, vector<1x16x8xf32> -> vector<4x16x8xf32>
    %750 = arith.truncf %749 : vector<4x16x8xf32> to vector<4x16x8xbf16>
    %cst_167 = arith.constant dense<0.000000e+00> : vector<4x8x16xf32>
    %751 = tpu.matmul %730, %740, %cst_167 {dimension_numbers = #tpu.dot_dimension_numbers<[2], [2], [1], [1], [0, 0, 0, 1, 1, 1], [0], [0]>} : vector<4x8x8xbf16>, vector<4x16x8xbf16>, vector<4x8x16xf32> -> vector<4x8x16xf32>
    %cst_168 = arith.constant 0.353553385 : f32
    %752 = vector.broadcast %cst_168 : f32 to vector<4x8x16xf32>
    %753 = arith.mulf %751, %752 : vector<4x8x16xf32>
    %754 = vector.shape_cast %1 : vector<1x16xf32> to vector<1x1x16xf32>
    %755 = vector.broadcast %754 : vector<1x1x16xf32> to vector<4x8x16xf32>
    %756 = arith.addf %753, %755 : vector<4x8x16xf32>
    %cst_169 = arith.constant dense<0xFF800000> : vector<4x8xf32>
    %757 = vector.multi_reduction <maximumf>, %756, %cst_169 [2] : vector<4x8x16xf32> to vector<4x8xf32>
    %758 = vector.shape_cast %757 : vector<4x8xf32> to vector<4x8x1xf32>
    %759 = vector.broadcast %758 : vector<4x8x1xf32> to vector<4x8x16xf32>
    %760 = arith.subf %756, %759 : vector<4x8x16xf32>
    %761 = math.exp %760 : vector<4x8x16xf32>
    %cst_170 = arith.constant dense<0.000000e+00> : vector<4x8xf32>
    %762 = vector.multi_reduction <add>, %761, %cst_170 [2] : vector<4x8x16xf32> to vector<4x8xf32>
    %763 = vector.shape_cast %762 : vector<4x8xf32> to vector<4x8x1xf32>
    %764 = arith.truncf %761 : vector<4x8x16xf32> to vector<4x8x16xbf16>
    %cst_171 = arith.constant dense<0.000000e+00> : vector<4x8x8xf32>
    %765 = tpu.matmul %764, %750, %cst_171 {dimension_numbers = #tpu.dot_dimension_numbers<[2], [1], [1], [2], [0, 0, 0, 1, 1, 2], [0], [0]>} : vector<4x8x16xbf16>, vector<4x16x8xbf16>, vector<4x8x8xf32> -> vector<4x8x8xf32>
    %766 = tpu.reciprocal %763 {approx = true} : vector<4x8x1xf32> -> vector<4x8x1xf32>
    %767 = vector.broadcast %766 : vector<4x8x1xf32> to vector<4x8x8xf32>
    %768 = arith.mulf %765, %767 : vector<4x8x8xf32>
    %769 = vector.extract_strided_slice %768 {offsets = [0, 0, 0], sizes = [1, 8, 8], strides = [1, 1, 1]} : vector<4x8x8xf32> to vector<1x8x8xf32>
    %770 = vector.shape_cast %769 : vector<1x8x8xf32> to vector<8x8xf32>
    %771 = vector.extract_strided_slice %768 {offsets = [1, 0, 0], sizes = [1, 8, 8], strides = [1, 1, 1]} : vector<4x8x8xf32> to vector<1x8x8xf32>
    %772 = vector.shape_cast %771 : vector<1x8x8xf32> to vector<8x8xf32>
    %773 = vector.extract_strided_slice %768 {offsets = [2, 0, 0], sizes = [1, 8, 8], strides = [1, 1, 1]} : vector<4x8x8xf32> to vector<1x8x8xf32>
    %774 = vector.shape_cast %773 : vector<1x8x8xf32> to vector<8x8xf32>
    %775 = vector.extract_strided_slice %768 {offsets = [3, 0, 0], sizes = [1, 8, 8], strides = [1, 1, 1]} : vector<4x8x8xf32> to vector<1x8x8xf32>
    %776 = vector.shape_cast %775 : vector<1x8x8xf32> to vector<8x8xf32>
    %777 = tpu.concatenate %770, %772, %774, %776 in 1 : vector<8x8xf32>, vector<8x8xf32>, vector<8x8xf32>, vector<8x8xf32> -> vector<8x32xf32>
    %778 = arith.truncf %777 : vector<8x32xf32> to vector<8x32xbf16>
    %779 = arith.truncf %719 : vector<32x32xf32> to vector<32x32xbf16>
    %cst_172 = arith.constant dense<0.000000e+00> : vector<8x32xf32>
    %780 = tpu.matmul %778, %779, %cst_172 {dimension_numbers = #tpu.dot_dimension_numbers<[1], [0], [0], [1], [0, 0, 1, 1], [], []>} : vector<8x32xbf16>, vector<32x32xbf16>, vector<8x32xf32> -> vector<8x32xf32>
    %781 = vector.broadcast %720 : vector<1x32xf32> to vector<8x32xf32>
    %782 = arith.addf %780, %781 : vector<8x32xf32>
    %783 = arith.addf %702, %782 : vector<8x32xf32>
    %c976 = arith.constant 976 : index
    %c0_173 = arith.constant 0 : index
    %784 = vector.load %arg1[%c976, %c0_173] : memref<1144x128xf32, #tpu.memory_space<vmem>>, vector<2x32xf32>
    %cst_174 = arith.constant dense<0.000000e+00> : vector<8xf32>
    %785 = vector.multi_reduction <add>, %783, %cst_174 [1] : vector<8x32xf32> to vector<8xf32>
    %786 = vector.shape_cast %785 : vector<8xf32> to vector<8x1xf32>
    %cst_175 = arith.constant 3.200000e+01 : f32
    %787 = vector.broadcast %cst_175 : f32 to vector<8x1xf32>
    %788 = arith.divf %786, %787 : vector<8x1xf32>
    %789 = vector.broadcast %788 : vector<8x1xf32> to vector<8x32xf32>
    %790 = arith.subf %783, %789 : vector<8x32xf32>
    %791 = arith.mulf %790, %790 : vector<8x32xf32>
    %cst_176 = arith.constant dense<0.000000e+00> : vector<8xf32>
    %792 = vector.multi_reduction <add>, %791, %cst_176 [1] : vector<8x32xf32> to vector<8xf32>
    %793 = vector.shape_cast %792 : vector<8xf32> to vector<8x1xf32>
    %cst_177 = arith.constant 3.200000e+01 : f32
    %794 = vector.broadcast %cst_177 : f32 to vector<8x1xf32>
    %795 = arith.divf %793, %794 : vector<8x1xf32>
    %cst_178 = arith.constant 9.99999974E-6 : f32
    %796 = vector.broadcast %cst_178 : f32 to vector<8x1xf32>
    %797 = arith.addf %795, %796 : vector<8x1xf32>
    %798 = math.rsqrt %797 : vector<8x1xf32>
    %799 = vector.broadcast %798 : vector<8x1xf32> to vector<8x32xf32>
    %800 = arith.mulf %790, %799 : vector<8x32xf32>
    %801 = vector.extract_strided_slice %784 {offsets = [0, 0], sizes = [1, 32], strides = [1, 1]} : vector<2x32xf32> to vector<1x32xf32>
    %802 = vector.broadcast %801 : vector<1x32xf32> to vector<8x32xf32>
    %803 = arith.mulf %800, %802 : vector<8x32xf32>
    %804 = vector.extract_strided_slice %784 {offsets = [1, 0], sizes = [1, 32], strides = [1, 1]} : vector<2x32xf32> to vector<1x32xf32>
    %805 = vector.broadcast %804 : vector<1x32xf32> to vector<8x32xf32>
    %806 = arith.addf %803, %805 : vector<8x32xf32>
    %c984 = arith.constant 984 : index
    %c0_179 = arith.constant 0 : index
    %807 = vector.load %arg1[%c984, %c0_179] : memref<1144x128xf32, #tpu.memory_space<vmem>>, vector<32x64xf32>
    %c1016 = arith.constant 1016 : index
    %c0_180 = arith.constant 0 : index
    %808 = vector.load %arg1[%c1016, %c0_180] : memref<1144x128xf32, #tpu.memory_space<vmem>>, vector<1x64xf32>
    %c1024 = arith.constant 1024 : index
    %c0_181 = arith.constant 0 : index
    %809 = vector.load %arg1[%c1024, %c0_181] : memref<1144x128xf32, #tpu.memory_space<vmem>>, vector<64x32xf32>
    %c1088 = arith.constant 1088 : index
    %c0_182 = arith.constant 0 : index
    %810 = vector.load %arg1[%c1088, %c0_182] : memref<1144x128xf32, #tpu.memory_space<vmem>>, vector<1x32xf32>
    %811 = arith.truncf %806 : vector<8x32xf32> to vector<8x32xbf16>
    %812 = arith.truncf %807 : vector<32x64xf32> to vector<32x64xbf16>
    %cst_183 = arith.constant dense<0.000000e+00> : vector<8x64xf32>
    %813 = tpu.matmul %811, %812, %cst_183 {dimension_numbers = #tpu.dot_dimension_numbers<[1], [0], [0], [1], [0, 0, 1, 1], [], []>} : vector<8x32xbf16>, vector<32x64xbf16>, vector<8x64xf32> -> vector<8x64xf32>
    %814 = vector.broadcast %808 : vector<1x64xf32> to vector<8x64xf32>
    %815 = arith.addf %813, %814 : vector<8x64xf32>
    %816 = arith.mulf %815, %815 : vector<8x64xf32>
    %817 = arith.mulf %815, %816 : vector<8x64xf32>
    %cst_184 = arith.constant 4.471500e-02 : f32
    %818 = vector.broadcast %cst_184 : f32 to vector<8x64xf32>
    %819 = arith.mulf %818, %817 : vector<8x64xf32>
    %820 = arith.addf %815, %819 : vector<8x64xf32>
    %cst_185 = arith.constant 0.797884583 : f32
    %821 = vector.broadcast %cst_185 : f32 to vector<8x64xf32>
    %822 = arith.mulf %821, %820 : vector<8x64xf32>
    %823 = math.tanh %822 : vector<8x64xf32>
    %cst_186 = arith.constant 1.000000e+00 : f32
    %824 = vector.broadcast %cst_186 : f32 to vector<8x64xf32>
    %825 = arith.addf %824, %823 : vector<8x64xf32>
    %cst_187 = arith.constant 5.000000e-01 : f32
    %826 = vector.broadcast %cst_187 : f32 to vector<8x64xf32>
    %827 = arith.mulf %826, %825 : vector<8x64xf32>
    %828 = arith.mulf %815, %827 : vector<8x64xf32>
    %829 = arith.truncf %828 : vector<8x64xf32> to vector<8x64xbf16>
    %830 = arith.truncf %809 : vector<64x32xf32> to vector<64x32xbf16>
    %cst_188 = arith.constant dense<0.000000e+00> : vector<8x32xf32>
    %831 = tpu.matmul %829, %830, %cst_188 {dimension_numbers = #tpu.dot_dimension_numbers<[1], [0], [0], [1], [0, 0, 1, 1], [], []>} : vector<8x64xbf16>, vector<64x32xbf16>, vector<8x32xf32> -> vector<8x32xf32>
    %832 = vector.broadcast %810 : vector<1x32xf32> to vector<8x32xf32>
    %833 = arith.addf %831, %832 : vector<8x32xf32>
    %834 = arith.addf %806, %833 : vector<8x32xf32>
    %c1096 = arith.constant 1096 : index
    %c0_189 = arith.constant 0 : index
    %835 = vector.load %arg1[%c1096, %c0_189] : memref<1144x128xf32, #tpu.memory_space<vmem>>, vector<2x32xf32>
    %cst_190 = arith.constant dense<0.000000e+00> : vector<8xf32>
    %836 = vector.multi_reduction <add>, %834, %cst_190 [1] : vector<8x32xf32> to vector<8xf32>
    %837 = vector.shape_cast %836 : vector<8xf32> to vector<8x1xf32>
    %cst_191 = arith.constant 3.200000e+01 : f32
    %838 = vector.broadcast %cst_191 : f32 to vector<8x1xf32>
    %839 = arith.divf %837, %838 : vector<8x1xf32>
    %840 = vector.broadcast %839 : vector<8x1xf32> to vector<8x32xf32>
    %841 = arith.subf %834, %840 : vector<8x32xf32>
    %842 = arith.mulf %841, %841 : vector<8x32xf32>
    %cst_192 = arith.constant dense<0.000000e+00> : vector<8xf32>
    %843 = vector.multi_reduction <add>, %842, %cst_192 [1] : vector<8x32xf32> to vector<8xf32>
    %844 = vector.shape_cast %843 : vector<8xf32> to vector<8x1xf32>
    %cst_193 = arith.constant 3.200000e+01 : f32
    %845 = vector.broadcast %cst_193 : f32 to vector<8x1xf32>
    %846 = arith.divf %844, %845 : vector<8x1xf32>
    %cst_194 = arith.constant 9.99999974E-6 : f32
    %847 = vector.broadcast %cst_194 : f32 to vector<8x1xf32>
    %848 = arith.addf %846, %847 : vector<8x1xf32>
    %849 = math.rsqrt %848 : vector<8x1xf32>
    %850 = vector.broadcast %849 : vector<8x1xf32> to vector<8x32xf32>
    %851 = arith.mulf %841, %850 : vector<8x32xf32>
    %852 = vector.extract_strided_slice %835 {offsets = [0, 0], sizes = [1, 32], strides = [1, 1]} : vector<2x32xf32> to vector<1x32xf32>
    %853 = vector.broadcast %852 : vector<1x32xf32> to vector<8x32xf32>
    %854 = arith.mulf %851, %853 : vector<8x32xf32>
    %855 = vector.extract_strided_slice %835 {offsets = [1, 0], sizes = [1, 32], strides = [1, 1]} : vector<2x32xf32> to vector<1x32xf32>
    %856 = vector.broadcast %855 : vector<1x32xf32> to vector<8x32xf32>
    %857 = arith.addf %854, %856 : vector<8x32xf32>
    %c1104 = arith.constant 1104 : index
    %c0_195 = arith.constant 0 : index
    %858 = vector.load %arg1[%c1104, %c0_195] : memref<1144x128xf32, #tpu.memory_space<vmem>>, vector<32x128xf32>
    %859 = arith.truncf %857 : vector<8x32xf32> to vector<8x32xbf16>
    %860 = arith.truncf %858 : vector<32x128xf32> to vector<32x128xbf16>
    %cst_196 = arith.constant dense<0.000000e+00> : vector<8x128xf32>
    %861 = tpu.matmul %859, %860, %cst_196 {dimension_numbers = #tpu.dot_dimension_numbers<[1], [0], [0], [1], [0, 0, 1, 1], [], []>} : vector<8x32xbf16>, vector<32x128xbf16>, vector<8x128xf32> -> vector<8x128xf32>
    %c1136 = arith.constant 1136 : index
    %c0_197 = arith.constant 0 : index
    %862 = vector.load %arg1[%c1136, %c0_197] : memref<1144x128xf32, #tpu.memory_space<vmem>>, vector<1x128xf32>
    %863 = vector.broadcast %862 : vector<1x128xf32> to vector<8x128xf32>
    %864 = arith.addf %861, %863 : vector<8x128xf32>
    %c0_198 = arith.constant 0 : index
    %c0_199 = arith.constant 0 : index
    %c0_200 = arith.constant 0 : index
    %865 = vector.load %arg6[%c0_198, %c0_199, %c0_200] : memref<1x8x128xf32, #tpu.memory_space<vmem>>, vector<1x8x128xf32>
    %866 = vector.shape_cast %865 : vector<1x8x128xf32> to vector<8x128xf32>
    %867 = vector.shape_cast %864 : vector<8x128xf32> to vector<1x8x128xf32>
    tpu.vector_store %arg6[%c0_198, %c0_199, %c0_200], %867 {strides = array<i32>} : memref<1x8x128xf32, #tpu.memory_space<vmem>>, vector<1x8x128xf32>,
    return
  }
  func.func @transform_0(%arg0: i32) -> (i32, i32) {
    %c0_i32 = arith.constant 0 : i32
    %c0_i32_0 = arith.constant 0 : i32
    %c0_i32_1 = arith.constant 0 : i32
    return %c0_i32, %c0_i32_0 : i32, i32
  }
  func.func @transform_1(%arg0: i32) -> (i32, i32, i32) {
    %c0_i32 = arith.constant 0 : i32
    %c0_i32_0 = arith.constant 0 : i32
    %c0_i32_1 = arith.constant 0 : i32
    return %arg0, %c0_i32, %c0_i32_0 : i32, i32, i32
  }
  func.func @transform_2(%arg0: i32) -> (i32, i32, i32) {
    %c0_i32 = arith.constant 0 : i32
    %c0_i32_0 = arith.constant 0 : i32
    %c0_i32_1 = arith.constant 0 : i32
    return %arg0, %c0_i32, %c0_i32_0 : i32, i32, i32
  }
  func.func @transform_3(%arg0: i32) -> (i32, i32, i32) {
    %c0_i32 = arith.constant 0 : i32
    %c0_i32_0 = arith.constant 0 : i32
    %c0_i32_1 = arith.constant 0 : i32
    return %arg0, %c0_i32, %c0_i32_0 : i32, i32, i32
  }
  func.func @transform_4(%arg0: i32) -> (i32, i32, i32) {
    %c0_i32 = arith.constant 0 : i32
    %c0_i32_0 = arith.constant 0 : i32
    %c0_i32_1 = arith.constant 0 : i32
    return %arg0, %c0_i32, %c0_i32_0 : i32, i32, i32
  }
  func.func @transform_5(%arg0: i32) -> (i32, i32, i32) {
    %c0_i32 = arith.constant 0 : i32
    %c0_i32_0 = arith.constant 0 : i32
    %c0_i32_1 = arith.constant 0 : i32
    return %arg0, %c0_i32, %c0_i32_0 : i32, i32, i32
  }
}

</mosaic_0001>

<bundles_post_ra>
// kernel: _jit_forward.1
= control target key start
LH: loop header
LB: loop body
LE: loop exit
PB: predicated region body
PF: predicated region fallthrough
CT: control target
= control target key end

     0   :  { %10 = vsyncpa [#allocation3], 0  ;;  %s7618_s0 = inlined_call_operand.vmem [shape: f32[1144,128], index: 0, kind: input, shape index: {}]   ;;  %s7619_s1 = inlined_call_operand.vmem [shape: f32[2,16,32], index: 1, kind: input, shape index: {}]   ;;  %s7620_s2 = inlined_call_operand.vmem [shape: f32[2,8,32], index: 2, kind: input, shape index: {}]   ;;  %s7621_s3 = inlined_call_operand.vmem [shape: f32[2,1,16], index: 3, kind: input, shape index: {}]   ;;  %s7622_s4 = inlined_call_operand.vmem [shape: f32[2,8,8], index: 4, kind: input, shape index: {}]   ;;  %s7623_s5 = inlined_call_operand.hbm [shape: f32[2,8,128], index: 5, kind: output, shape index: {}]  }
   0x1   :  { %12 = vsyncpa [#allocation3 + $0x1], 0  ;;  %s6322_s18 = smov 0   ;;  %s6324_s19 = smov 0  }
   0x2   :  { %s6326_s20 = smov 0   ;;  %s6328_s21 = smov 0  }
   0x3 LB: > { %s6343_s22 = sadd.s32 4294967295, %s6279_s21   ;;  %s5131_s23 = sadd.s32 4294967294, %s6279_s21   ;;  %s6279_s21 = sphi %s6328_s21, %s7655_s21   ;;  %s6275_s20 = sphi %s6326_s20, %s7654_s20   ;;  %s6271_s19 = sphi %s6324_s19, %s7653_s19   ;;  %s6267_s18 = sphi %s6322_s18, %s7652_s18  }
   0x4   : > { %s6347_s24 = sadd.s32 1, %s6279_s21   ;;  %s150_s25 = sadd.s32 1, %s6275_s20 }
   0x5   : > { %s147_s26 = ssub.s32 %s6279_s21, %s6347_s24  ;;  %p160_p0 = scmp.ne.s32.totalorder %s6275_s20, %s6271_s19 }
   0x6   : > { %p148_p1 = scmp.eq.s32.totalorder %s147_s26, 0  ;;  %p161_p2 = scmp.eq.s32.totalorder %s6343_s22, 1 }
   0x7   : > { %p166_p3 = scmp.ne.s32.totalorder %s6271_s19, %s6267_s18  ;;  %p167_p4 = scmp.eq.s32.totalorder %s5131_s23, 1 }
   0x8   : > { %s6358_s27 = scalar_select %p148_p1, %s6275_s20, %s150_s25  }
   0x9   : > { %p6360_p5 = por %p161_p2, %p160_p0  ;;  %p6364_p6 = por %p167_p4, %p166_p3 }
   0xa   : > { %p5134_p7 = scmp.ge.s32.totalorder %s6279_s21, 1  ;;  %p216_p8 = scmp.lt.s32.totalorder %s6279_s21, 3 }
   0xc   : > { %p217_p9 = pnand %p5134_p7, %p216_p8 }
   0xd   : > { %p255_p10 = scmp.lt.s32.totalorder (!%p217_p9), %s6343_s22, 1  ;;  %vm276_vm0 = vcmask (!%p217_p9), 261120   ;;  %v316_v14 = vld [vmem:[%s7618_s0 + $0x10] sm:$0xff] (!%p217_p9)  ;;  %v317_v15 = vld [vmem:[%s7618_s0 + $0x18] sm:$0xff] (!%p217_p9)  ;;  %v318_v16 = vld [vmem:[%s7618_s0 + $0x20] sm:$0xff] (!%p217_p9)  ;;  %v6281_v17 = vmov (!%p217_p9), 0.0   ;;  %v304_v25 = vlaneseq (!%p217_p9) }
   0xe   : > { %220 = sbr.rel (%p217_p9) target bundleno = 12914 (0x3272), region = 40  ;;  %5413 = vmatprep.subr.bf16.mxu0 (!%p217_p9), %v6281_v17  ;;  %v321_v18 = vpack.c.bf16 (!%p217_p9), %v317_v15, %v316_v14  ;;  %v319_v19 = vld [vmem:[%s7618_s0 + $0x28] sm:$0xff] (!%p217_p9)  ;;  %vm6282_vm1 = vmmov (!%p217_p9), 0   ;;  %5421 = vmatprep.subr.bf16.mxu1 (!%p217_p9), %v6281_v17  ;;  %v275_v30 = vld [vmem:[%s7618_s0] sm:$0x3] (!%p217_p9)  ;;  %s7639_s7 = smov (!%p217_p9), 112  }
   0xf   : > { %5417 = vmatprep.mubr.msk.bf16.mxu0 (!%p217_p9), %vm6282_vm1, %v6281_v17  ;;  %5423 = vmatprep.mubr.msk.bf16.mxu1 (!%p217_p9), %vm6282_vm1, %v6281_v17  ;;  %v322_v20 = vpack.c.bf16 (!%p217_p9), %v319_v19, %v318_v16  ;;  %v305_v28 = vshrl.u32 (!%p217_p9), %v304_v25, 7  ;;  %v5140_v43 = vld [vmem:[%s7618_s0 + $0x30] ss:$0 sm:$0xff] (!%p217_p9)  ;;  %s7637_s8 = smov (!%p217_p9), 120   ;;  %s7633_s10 = smov (!%p217_p9), 96   ;;  %vm404_vm2 = vcmask (!%p217_p9), 64512  }
  0x10   : > { %5414 = vmatpush3.bf16.msra.mxu0 (!%p217_p9), %v321_v18  ;;  %s7631_s11 = smov (!%p217_p9), 64   ;;  %vm624_vm3 = vcmask (!%p217_p9), 130048   ;;  %s7628_s13 = smov (!%p217_p9), 8   ;;  %vm933_vm4 = vcmask (!%p217_p9), 195584   ;;  %vm1120_vm5 = vcmask (!%p217_p9), 523264   ;;  %vm2435_vm6 = vcmask (!%p217_p9), 1043456  }
  0x11   : > { %5415 = vmatprep.subr.bf16.mxu0 (!%p217_p9), %v6281_v17  ;;  %v6402_v29 = vsub.s32 (!%p217_p9), 0, %v305_v28  ;;  %v6408_v34 = vsub.s32 (!%p217_p9), 1, %v305_v28  ;;  %s7626_s15 = smov (!%p217_p9), 16   ;;  %s7624_s16 = smov (!%p217_p9), 24  }
  0x12   : > { %s6291_s23 = smov (!%p217_p9), [#allocation2]  }
  0x13   : > { %v307_v33 = vrot.slane (!%p217_p9), %v275_v30, %v6402_v29  ;;  %v313_v38 = vrot.slane (!%p217_p9), %v275_v30, %v6408_v34  ;;  %s6221_s25 = sshll.u32 (!%p217_p9), %s6291_s23, 4  ;;  %s6222_s25 = int_to_ptr.vmem [resolvable:$false] %s6221_s25 }
  0x14   : > { %5416 = vmatpush3.bf16.msra.mxu0 (!%p217_p9), %v322_v20 }
  0x15   : > { %s6372_s30 = scalar_select %p255_p10, %s6343_s22, 1  ;;  %5427 = vmatprep.subr.bf16.mxu0 %v6281_v17 }
  0x17   : > { %s5239_s6 = sshll.u32 %s6372_s30, 4  ;;  %s6468_s14 = scalar_lea.vmem %s7621_s3, %s6372_s30 }
  0x18   : > { %s259_s9 = scalar_lea.vmem %s7619_s1, %s5239_s6  ;;  %s7630_s17 = sshll.u32 %s6372_s30, 3 }
  0x19   : > { %v273_v0 = vld [vmem:[%s259_s9] sm:$0xff]  ;;  %v274_v1 = vld [vmem:[%s259_s9 + $0x8] sm:$0xff]  ;;  %s7635_s9 = smov 104   ;;  %s263_s26 = scalar_lea.vmem %s7620_s2, %s7630_s17 }
  0x1a   : > { %v277_v2 = vsel %vm276_vm0, %v273_v0, 0.0  ;;  %v280_v3 = vsel %vm276_vm0, %v274_v1, 0.0  ;;  %s7646_s6 = sshll.u32 %s6372_s30, 3  ;;  %s7647_s30 = smov 8  }
  0x1b   : > { %278 = vadd.xlane.f32.xlu0 %v277_v2  ;;  %s6938_s12 = scalar_lea.vmem %s7622_s4, %s7646_s6  ;;  %s7649_s6 = smov 96  }
  0x1f   : > { %281 = vadd.xlane.f32.xlu0 %v280_v3 }
  0xa8   : > { %v279_v4 = vpop.xlane.xlu0 %278 }
  0xa9   : > { %v284_v5 = vmul.f32 0.03125, %v279_v4 }
  0xab   : > { %v286_v6 = vsub.f32 %v273_v0, %v284_v5 }
  0xac   : > { %v282_v7 = vpop.xlane.xlu0 %281 }
  0xad   : > { %v285_v8 = vmul.f32 0.03125, %v282_v7  ;;  %v288_v9 = vmul.f32 %v286_v6, %v286_v6 }
  0xaf   : > { %v287_v10 = vsub.f32 %v274_v1, %v285_v8  ;;  %v290_v11 = vsel %vm276_vm0, %v288_v9, 0.0  ;;  %v6471_v9 = vld [vmem:[%s6468_s14] ss:$0 sm:$0xff] }
  0xb0   : > { %291 = vadd.xlane.f32.xlu1 %v290_v11 }
  0xb1   : > { %v289_v12 = vmul.f32 %v287_v10, %v287_v10 }
  0xb3   : > { %v293_v13 = vsel %vm276_vm0, %v289_v12, 0.0 }
  0xb4   : > { %294 = vadd.xlane.f32.xlu1 %v293_v13 }
 0x13d   : > { %v292_v21 = vpop.xlane.xlu1 %291 }
 0x13e   : > { %v296_v22 = vmul.f32 0.03125, %v292_v21 }
 0x140   : > { %v298_v23 = vadd.f32 1e-05, %v296_v22 }
 0x141   : > { %v295_v24 = vpop.xlane.xlu1 %294 }
 0x142   : > { %6040 = vrsqrt.f32 %v298_v23  ;;  %v297_v26 = vmul.f32 0.03125, %v295_v24 }
 0x144   : > { %v299_v27 = vadd.f32 1e-05, %v297_v26 }
 0x146   : > { %6042 = vrsqrt.f32 %v299_v27 }
 0x14c   : > { %v6041_v31 = vpop.eup %6040 }
 0x14d   : > { %v302_v32 = vmul.f32 %v6041_v31, %v286_v6 }
 0x14f   : > { %v308_v37 = vmul.f32 %v307_v33, %v302_v32 }
 0x150   : > { %v6043_v35 = vpop.eup %6042 }
 0x151   : > { %v303_v36 = vmul.f32 %v6043_v35, %v287_v10  ;;  %v6411_v40 = vadd.f32 %v313_v38, %v308_v37 }
 0x153   : > { %v309_v39 = vmul.f32 %v307_v33, %v303_v36 }
 0x155   : > { %v6413_v41 = vadd.f32 %v313_v38, %v309_v39 }
 0x157   : > { %v320_v42 = vpack.c.bf16 %v6413_v41, %v6411_v40 }
 0x159   : > { %5418 = vmatmul.mubr.msk.bf16.vlgmr.msra.gmra.mrb[0].mxu0 %vm276_vm0, %v320_v42 }
 0x15a   : > { %5429 = vmatprep.mubr.msk.bf16.mxu0 %vm6282_vm1, %v6281_v17 }
 0x22c   : > { %v365_v44 = vpop.f32.mrb[0].mxu0 }
 0x22d   : > { %v5419_v45 = vpop.f32.mrb[1].mxu0  ;;  %v366_v47 = vadd.f32 %v5140_v43, %v365_v44 }
 0x22e   : > { %v368_v46 = vpop.f32.mrb[2].mxu0 }
 0x22f   : > { %v369_v48 = vadd.f32 %v5140_v43, %v368_v46  ;;  %v5420_v49 = vpop.f32.mrb[3].mxu0 }
 0x231   : > { %v5955_v50 = vpack.i.bf16 %v369_v48, %v366_v47  ;;  %v397_v51 = vpack.c.bf16 %v369_v48, %v366_v47 }
 0x233   : > { %5956 = vrot.lane.b32.xlu1 %v5955_v50, %s7639_s7  ;;  %5951 = vrot.lane.b32.xlu0 %v5955_v50, %s7637_s8 }
 0x237   : > { %5961 = vrot.lane.b32.xlu1 %v5955_v50, %s7635_s9 }
 0x23b   : > { %402 = vrot.lane.b32.xlu1 %v397_v51, %s7633_s10 }
 0x2a5   : > { %v5957_v52 = vpop.permute.xlu1 %5956  ;;  %v5952_v53 = vpop.permute.xlu0 %5951 }
 0x2a6   : > { %v5959_v54 = vunpack.i.h.bf16 %v5957_v52  ;;  %v5958_v55 = vunpack.i.l.bf16 %v5957_v52  ;;  %v5954_v56 = vunpack.i.h.bf16 %v5952_v53  ;;  %v5953_v57 = vunpack.i.l.bf16 %v5952_v53 }
 0x2a8   : > { %v6427_v58 = vpack.c.bf16 %v5954_v56, %v5953_v57  ;;  %v6429_v59 = vpack.c.bf16 %v5959_v54, %v5958_v55 }
 0x2a9   : > { %v5962_v60 = vpop.permute.xlu1 %5961 }
 0x2aa   : > { %v5964_v61 = vunpack.i.h.bf16 %v5962_v60  ;;  %v5963_v62 = vunpack.i.l.bf16 %v5962_v60  ;;  %453 = vrot.lane.b32.xlu0 %v6427_v58, %s7633_s10  ;;  %503 = vrot.lane.b32.xlu1 %v6429_v59, %s7633_s10 }
 0x2ac   : > { %v6435_v63 = vpack.c.bf16 %v5964_v61, %v5963_v62 }
 0x2ad   : > { %v403_v0 = vpop.permute.xlu1 %402 }
 0x2ae   : > { %553 = vrot.lane.b32.xlu0 %v6435_v63, %s7633_s10  ;;  %701 = vrot.lane.b32.xlu1 %v397_v51, %s7631_s11  ;;  %v409_v1 = vsel %vm404_vm2, %v403_v0, 0 }
 0x2af   : > { %5422 = vmatpush3.bf16.xpose.msra.mxu1 %v409_v1 }
 0x2b0   : > { %5433 = vmatprep.subr.bf16.mxu1 %v6281_v17 }
 0x2b6   : > { %5424 = vmatmul.mubr.msk.bf16.vlgmr.msra.gmra.mrb[0].mxu1 %vm404_vm2, %v397_v51 }
 0x2b7   : > { %5435 = vmatprep.mubr.msk.bf16.mxu1 %vm6282_vm1, %v6281_v17 }
 0x31c   : > { %v454_v2 = vpop.permute.xlu0 %453  ;;  %v504_v3 = vpop.permute.xlu1 %503 }
 0x31d   : > { %v459_v4 = vsel %vm404_vm2, %v454_v2, 0  ;;  %v509_v5 = vsel %vm404_vm2, %v504_v3, 0 }
 0x31e   : > { %5428 = vmatpush3.bf16.xpose.msra.mxu0 %v459_v4  ;;  %5434 = vmatpush3.bf16.xpose.msra.mxu1 %v509_v5 }
 0x31f   : > { %5439 = vmatprep.subr.bf16.mxu0 %v6281_v17  ;;  %5445 = vmatprep.subr.bf16.mxu1 %v6281_v17 }
 0x320   : > { %v554_v6 = vpop.permute.xlu0 %553  ;;  %v702_v8 = vpop.permute.xlu1 %701 }
 0x321   : > { %v559_v7 = vsel %vm404_vm2, %v554_v6, 0 }
 0x325   : > { %5430 = vmatmul.mubr.msk.bf16.vlgmr.msra.gmra.mrb[4].mxu0 %vm404_vm2, %v6427_v58  ;;  %5436 = vmatmul.mubr.msk.bf16.vlgmr.msra.gmra.mrb[4].mxu1 %vm404_vm2, %v6429_v59 }
 0x326   : > { %5440 = vmatpush3.bf16.xpose.msra.mxu0 %v559_v7  ;;  %5446 = vmatpush3.bf16.msra.mxu1 %v702_v8 }
 0x327   : > { %5441 = vmatprep.mubr.msk.bf16.mxu0 %vm6282_vm1, %v6281_v17  ;;  %5447 = vmatprep.mubr.msk.bf16.mxu1 %vm6282_vm1, %v6281_v17 }
 0x328   : > { %5457 = vmatprep.subr.bf16.mxu1 %v6281_v17  ;;  %5451 = vmatprep.subr.bf16.mxu0 %v6281_v17 }
 0x32d   : > { %5442 = vmatmul.mubr.msk.bf16.vlgmr.msra.gmra.mrb[8].mxu0 %vm404_vm2, %v6435_v63 }
 0x32e   : > { %5453 = vmatprep.mubr.msk.bf16.mxu0 %vm6282_vm1, %v6281_v17 }
 0x389   : > { %v445_v10 = vpop.f32.mrb[0].mxu1 }
 0x38a   : > { %v602_v11 = vmul.f32 0.35355338, %v445_v10  ;;  %v5425_v12 = vpop.f32.mrb[1].mxu1 }
 0x38b   : > { %v448_v13 = vpop.f32.mrb[2].mxu1 }
 0x38c   : > { %v603_v14 = vmul.f32 0.35355338, %v448_v13  ;;  %v5426_v15 = vpop.f32.mrb[3].mxu1  ;;  %v616_v16 = vadd.f32 %v6471_v9, %v602_v11 }
 0x38e   : > { %v625_v18 = vsel %vm624_vm3, %v616_v16, -inf  ;;  %v617_v19 = vadd.f32 %v6471_v9, %v603_v14 }
 0x38f   : > { %626 = vmax.xlane.f32.xlu1 %v625_v18 }
 0x390   : > { %v628_v20 = vsel %vm624_vm3, %v617_v19, -inf }
 0x391   : > { %629 = vmax.xlane.f32.xlu0 %v628_v20 }
 0x3f8   : > { %v495_v21 = vpop.f32.mrb[4].mxu0  ;;  %v545_v22 = vpop.f32.mrb[4].mxu1 }
 0x3f9   : > { %v604_v23 = vmul.f32 0.35355338, %v495_v21  ;;  %v606_v24 = vmul.f32 0.35355338, %v545_v22  ;;  %v5431_v25 = vpop.f32.mrb[5].mxu0  ;;  %v5437_v26 = vpop.f32.mrb[5].mxu1 }
 0x3fa   : > { %v498_v27 = vpop.f32.mrb[6].mxu0  ;;  %v548_v28 = vpop.f32.mrb[6].mxu1 }
 0x3fb   : > { %v605_v30 = vmul.f32 0.35355338, %v498_v27  ;;  %v5432_v31 = vpop.f32.mrb[7].mxu0  ;;  %v5438_v32 = vpop.f32.mrb[7].mxu1  ;;  %v620_v33 = vadd.f32 %v6471_v9, %v606_v24  ;;  %v618_v35 = vadd.f32 %v6471_v9, %v604_v23  ;;  %v607_v36 = vmul.f32 0.35355338, %v548_v28 }
 0x3fd   : > { %v637_v37 = vsel %vm624_vm3, %v620_v33, -inf  ;;  %v631_v38 = vsel %vm624_vm3, %v618_v35, -inf  ;;  %v619_v39 = vadd.f32 %v6471_v9, %v605_v30  ;;  %v621_v46 = vadd.f32 %v6471_v9, %v607_v36 }
 0x3fe   : > { %638 = vmax.xlane.f32.xlu1 %v637_v37  ;;  %632 = vmax.xlane.f32.xlu0 %v631_v38 }
 0x3ff   : > { %v634_v45 = vsel %vm624_vm3, %v619_v39, -inf  ;;  %v640_v51 = vsel %vm624_vm3, %v621_v46, -inf }
 0x400   : > { %v595_v42 = vpop.f32.mrb[8].mxu0 }
 0x401   : > { %v608_v43 = vmul.f32 0.35355338, %v595_v42  ;;  %v5443_v44 = vpop.f32.mrb[9].mxu0 }
 0x402   : > { %635 = vmax.xlane.f32.xlu0 %v634_v45  ;;  %v598_v47 = vpop.f32.mrb[10].mxu0 }
 0x403   : > { %v609_v48 = vmul.f32 0.35355338, %v598_v47  ;;  %v5444_v49 = vpop.f32.mrb[11].mxu0  ;;  %v622_v50 = vadd.f32 %v6471_v9, %v608_v43 }
 0x405   : > { %v643_v52 = vsel %vm624_vm3, %v622_v50, -inf  ;;  %v623_v53 = vadd.f32 %v6471_v9, %v609_v48 }
 0x406   : > { %641 = vmax.xlane.f32.xlu0 %v640_v51  ;;  %644 = vmax.xlane.f32.xlu1 %v643_v52 }
 0x407   : > { %v646_v54 = vsel %vm624_vm3, %v623_v53, -inf }
 0x40a   : > { %647 = vmax.xlane.f32.xlu0 %v646_v54  ;;  %v372_v54 = vld [vmem:[%s7618_s0 + $0x38] sm:$0xff] }
 0x417   : > { %795 = vrot.lane.b32.xlu1 %v6429_v59, %s7631_s11 }
 0x41b   : > { %842 = vrot.lane.b32.xlu1 %v6435_v63, %s7631_s11 }
 0x41c   : > { %v627_v55 = vpop.xlane.xlu1 %626 }
 0x41d   : > { %v649_v56 = vsub.f32 %v616_v16, %v627_v55  ;;  %v373_v55 = vld [vmem:[%s7618_s0 + $0x40] sm:$0xff] }
 0x41e   : > { %v630_v57 = vpop.xlane.xlu0 %629 }
 0x41f   : > { %v657_v60 = vmul.f32 1.442695, %v649_v56  ;;  %v650_v61 = vsub.f32 %v617_v19, %v630_v57  ;;  %v937_v56 = vpack.c.bf16 %v373_v55, %v372_v54 }
 0x420   : > { %748 = vrot.lane.b32.xlu0 %v6427_v58, %s7631_s11 }
 0x421   : > { %v659_v62 = vmul.f32 1.442695, %v650_v61  ;;  %6044 = vpow2.f32 %v657_v60 }
 0x423   : > { %6046 = vpow2.f32 %v659_v62 }
 0x42b   : > { %v6045_v0 = vpop.eup %6044 }
 0x42c   : > { %v673_v42 = vsel %vm624_vm3, %v6045_v0, 0.0 }
 0x42d   : > { %v6495_v1 = vpop.eup %6046 }
 0x42e   : > { %v697_v2 = vpack.c.bf16 %v6495_v1, %v6045_v0  ;;  %v676_v43 = vsel %vm624_vm3, %v6495_v1, 0.0  ;;  %v374_v1 = vld [vmem:[%s7618_s0 + $0x48] sm:$0xff] }
 0x430   : > { %5448 = vmatmul.mubr.msk.bf16.vlgmr.msra.gmra.mrb[8].mxu1 %vm624_vm3, %v697_v2  ;;  %v375_v2 = vld [vmem:[%s7618_s0 + $0x50] sm:$0xff] }
 0x431   : > { %5459 = vmatprep.mubr.msk.bf16.mxu1 %vm6282_vm1, %v6281_v17 }
 0x48b   : > { %v639_v59 = vpop.xlane.xlu1 %638  ;;  %v633_v63 = vpop.xlane.xlu0 %632 }
 0x48c   : > { %v653_v3 = vsub.f32 %v620_v33, %v639_v59  ;;  %v651_v4 = vsub.f32 %v618_v35, %v633_v63 }
 0x48e   : > { %v665_v5 = vmul.f32 1.442695, %v653_v3  ;;  %v661_v6 = vmul.f32 1.442695, %v651_v4  ;;  %v938_v4 = vpack.c.bf16 %v375_v2, %v374_v1 }
 0x48f   : > { %v636_v58 = vpop.xlane.xlu0 %635 }
 0x490   : > { %6048 = vpow2.f32 %v665_v5  ;;  %v652_v7 = vsub.f32 %v619_v39, %v636_v58 }
 0x491   : > { %6050 = vpow2.f32 %v661_v6 }
 0x492   : > { %v663_v8 = vmul.f32 1.442695, %v652_v7 }
 0x493   : > { %v642_v10 = vpop.xlane.xlu0 %641  ;;  %v645_v11 = vpop.xlane.xlu1 %644 }
 0x494   : > { %6052 = vpow2.f32 %v663_v8  ;;  %v654_v12 = vsub.f32 %v621_v46, %v642_v10  ;;  %v655_v13 = vsub.f32 %v622_v50, %v645_v11 }
 0x496   : > { %v667_v14 = vmul.f32 1.442695, %v654_v12  ;;  %v669_v15 = vmul.f32 1.442695, %v655_v13 }
 0x497   : > { %v796_v16 = vpop.permute.xlu1 %795  ;;  %v648_v18 = vpop.xlane.xlu0 %647 }
 0x498   : > { %6054 = vpow2.f32 %v667_v14  ;;  %v656_v19 = vsub.f32 %v623_v53, %v648_v18  ;;  %5458 = vmatpush3.bf16.msra.mxu1 %v796_v16 }
 0x499   : > { %6056 = vpow2.f32 %v669_v15  ;;  %5469 = vmatprep.subr.bf16.mxu1 %v6281_v17 }
 0x49a   : > { %v6049_v20 = vpop.eup %6048  ;;  %v671_v21 = vmul.f32 1.442695, %v656_v19 }
 0x49b   : > { %v6051_v22 = vpop.eup %6050  ;;  %v749_v23 = vpop.permute.xlu0 %748  ;;  %v685_v24 = vsel %vm624_vm3, %v6049_v20, 0.0 }
 0x49c   : > { %6058 = vpow2.f32 %v671_v21  ;;  %v679_v25 = vsel %vm624_vm3, %v6051_v22, 0.0  ;;  %686 = vadd.xlane.f32.xlu0 %v685_v24  ;;  %5452 = vmatpush3.bf16.msra.mxu0 %v749_v23  ;;  %v843_v30 = vpop.permute.xlu1 %842 }
 0x49d   : > { %680 = vadd.xlane.f32.xlu1 %v679_v25  ;;  %5463 = vmatprep.subr.bf16.mxu0 %v6281_v17 }
 0x49e   : > { %v6053_v26 = vpop.eup %6052 }
 0x49f   : > { %v682_v27 = vsel %vm624_vm3, %v6053_v26, 0.0  ;;  %v698_v28 = vpack.c.bf16 %v6053_v26, %v6051_v22 }
 0x4a0   : > { %683 = vadd.xlane.f32.xlu0 %v682_v27 }
 0x4a1   : > { %5454 = vmatmul.mubr.msk.bf16.vlgmr.msra.gmra.mrb[12].mxu0 %vm624_vm3, %v698_v28 }
 0x4a2   : > { %v6055_v31 = vpop.eup %6054  ;;  %5464 = vmatpush3.bf16.msra.mxu0 %v843_v30  ;;  %5465 = vmatprep.mubr.msk.bf16.mxu0 %vm6282_vm1, %v6281_v17 }
 0x4a3   : > { %v6057_v32 = vpop.eup %6056  ;;  %v688_v33 = vsel %vm624_vm3, %v6055_v31, 0.0  ;;  %v699_v35 = vpack.c.bf16 %v6055_v31, %v6049_v20  ;;  %5477 = vmatprep.subr.bf16.mxu0 %v6281_v17 }
 0x4a4   : > { %v691_v36 = vsel %vm624_vm3, %v6057_v32, 0.0  ;;  %689 = vadd.xlane.f32.xlu0 %v688_v33 }
 0x4a5   : > { %692 = vadd.xlane.f32.xlu1 %v691_v36  ;;  %5460 = vmatmul.mubr.msk.bf16.vlgmr.msra.gmra.mrb[12].mxu1 %vm624_vm3, %v699_v35 }
 0x4a6   : > { %v6059_v37 = vpop.eup %6058  ;;  %5473 = vmatprep.mubr.msk.bf16.mxu1 %vm6282_vm1, %v6281_v17  ;;  %5470 = vmatpush3.bf16.msra.mxu1 %v937_v56 }
 0x4a7   : > { %v694_v38 = vsel %vm624_vm3, %v6059_v37, 0.0  ;;  %v700_v39 = vpack.c.bf16 %v6059_v37, %v6057_v32  ;;  %5471 = vmatprep.subr.bf16.mxu1 %v6281_v17 }
 0x4a8   : > { %695 = vadd.xlane.f32.xlu0 %v694_v38 }
 0x4a9   : > { %674 = vadd.xlane.f32.xlu1 %v673_v42  ;;  %5466 = vmatmul.mubr.msk.bf16.vlgmr.msra.gmra.mrb[16].mxu0 %vm624_vm3, %v700_v39 }
 0x4aa   : > { %5481 = vmatprep.mubr.msk.bf16.mxu0 %vm6282_vm1, %v6281_v17  ;;  %5472 = vmatpush3.bf16.msra.mxu1 %v938_v4 }
 0x4ab   : > { %5485 = vmatprep.subr.bf16.mxu1 %v6281_v17 }
 0x4ac   : > { %677 = vadd.xlane.f32.xlu0 %v676_v43 }
 0x503   : > { %v6522_v44 = vpop.f32.mrb[8].mxu1 }
 0x504   : > { %v5449_v45 = vpop.f32.mrb[9].mxu1 }
 0x505   : > { %v6524_v46 = vpop.f32.mrb[10].mxu1 }
 0x506   : > { %v5450_v47 = vpop.f32.mrb[11].mxu1 }
 0x529   : > { %v687_v48 = vpop.xlane.xlu0 %686 }
 0x52a   : > { %v681_v50 = vpop.xlane.xlu1 %680 }
 0x52b   : > { %6060 = vrcp.f32 %v681_v50 }
 0x52d   : > { %v684_v49 = vpop.xlane.xlu0 %683 }
 0x52e   : > { %6062 = vrcp.f32 %v684_v49 }
 0x52f   : > { %6064 = vrcp.f32 %v687_v48 }
 0x531   : > { %v690_v51 = vpop.xlane.xlu0 %689 }
 0x532   : > { %v693_v52 = vpop.xlane.xlu1 %692  ;;  %6066 = vrcp.f32 %v690_v51 }
 0x533   : > { %6068 = vrcp.f32 %v693_v52 }
 0x535   : > { %v696_v53 = vpop.xlane.xlu0 %695  ;;  %v6061_v60 = vpop.eup %6060 }
 0x536   : > { %6070 = vrcp.f32 %v696_v53  ;;  %v675_v25 = vpop.xlane.xlu1 %674 }
 0x537   : > { %6072 = vrcp.f32 %v675_v25 }
 0x538   : > { %v6063_v62 = vpop.eup %6062 }
 0x539   : > { %v6065_v6 = vpop.eup %6064  ;;  %v678_v26 = vpop.xlane.xlu0 %677 }
 0x53a   : > { %6074 = vrcp.f32 %v678_v26 }
 0x53c   : > { %v6067_v8 = vpop.eup %6066 }
 0x53d   : > { %v6069_v15 = vpop.eup %6068 }
 0x540   : > { %v6071_v19 = vpop.eup %6070 }
 0x541   : > { %v6073_v28 = vpop.eup %6072 }
 0x542   : > { %v897_v37 = vmul.f32 %v6073_v28, %v6522_v44  ;;  %v5151_v44 = vld [vmem:[%s7618_s0 + $0x58] ss:$0 sm:$0xff] }
 0x544   : > { %v6075_v30 = vpop.eup %6074 }
 0x545   : > { %v898_v38 = vmul.f32 %v6075_v30, %v6524_v46 }
 0x574   : > { %v788_v57 = vpop.f32.mrb[12].mxu0 }
 0x575   : > { %v5455_v61 = vpop.f32.mrb[13].mxu0  ;;  %v899_v59 = vmul.f32 %v6061_v60, %v788_v57 }
 0x576   : > { %v791_v0 = vpop.f32.mrb[14].mxu0 }
 0x577   : > { %v900_v63 = vmul.f32 %v6063_v62, %v791_v0  ;;  %v5456_v3 = vpop.f32.mrb[15].mxu0 }
 0x578   : > { %v835_v5 = vpop.f32.mrb[12].mxu1 }
 0x579   : > { %v5965_v58 = vpack.i.bf16 %v900_v63, %v899_v59  ;;  %v5461_v7 = vpop.f32.mrb[13].mxu1  ;;  %v901_v11 = vmul.f32 %v6065_v6, %v835_v5 }
 0x57a   : > { %v838_v10 = vpop.f32.mrb[14].mxu1  ;;  %v1029_v7 = vld [vmem:[%s7618_s0 + $0x70] sm:$0xff] }
 0x57b   : > { %v902_v12 = vmul.f32 %v6067_v8, %v838_v10  ;;  %v5462_v13 = vpop.f32.mrb[15].mxu1  ;;  %5966 = vrot.lane.b32.xlu1 %v5965_v58, %s7628_s13  ;;  %v1030_v10 = vld [vmem:[%s7618_s0 + $0x78] sm:$0xff] }
 0x57c   : > { %v882_v14 = vpop.f32.mrb[16].mxu0 }
 0x57d   : > { %v5970_v16 = vpack.i.bf16 %v902_v12, %v901_v11  ;;  %v5467_v18 = vpop.f32.mrb[17].mxu0  ;;  %v903_v21 = vmul.f32 %v6069_v15, %v882_v14  ;;  %v1031_v11 = vld [vmem:[%s7618_s0 + $0x80] sm:$0xff] }
 0x57e   : > { %v885_v20 = vpop.f32.mrb[18].mxu0  ;;  %v1044_v12 = vpack.c.bf16 %v1031_v11, %v1030_v10 }
 0x57f   : > { %v904_v22 = vmul.f32 %v6071_v19, %v885_v20  ;;  %5971 = vrot.lane.b32.xlu0 %v5970_v16, %s7626_s15  ;;  %v5468_v23 = vpop.f32.mrb[19].mxu0  ;;  %v989_v20 = vld [vmem:[%s7618_s0 + $0x60] sm:$0x3]  ;;  %s7643_s15 = smov 16  }
 0x581   : > { %v5975_v24 = vpack.i.bf16 %v904_v22, %v903_v21  ;;  %v1019_v21 = vrot.slane %v989_v20, %v6402_v29 }
 0x583   : > { %5976 = vrot.lane.b32.xlu1 %v5975_v24, %s7624_s16  ;;  %s7644_s16 = smov 24  }
 0x5ed   : > { %v5967_v27 = vpop.permute.xlu1 %5966 }
 0x5ee   : > { %v5969_v32 = vunpack.i.h.bf16 %v5967_v27  ;;  %v5968_v33 = vunpack.i.l.bf16 %v5967_v27  ;;  %v1025_v27 = vrot.slane %v989_v20, %v6408_v34 }
 0x5f0   : > { %v930_v42 = vsel %vm404_vm2, %v898_v38, %v5969_v32  ;;  %v929_v43 = vsel %vm404_vm2, %v897_v37, %v5968_v33  ;;  %v1033_v33 = vld [vmem:[%s7618_s0 + $0x90] sm:$0xff]  ;;  %v1035_v37 = vld [vmem:[%s7618_s0 + $0xa0] sm:$0xff]  ;;  %v1036_v38 = vld [vmem:[%s7618_s0 + $0xa8] sm:$0xff] }
 0x5f1   : > { %v5972_v31 = vpop.permute.xlu0 %5971 }
 0x5f2   : > { %v5974_v35 = vunpack.i.h.bf16 %v5972_v31  ;;  %v5973_v36 = vunpack.i.l.bf16 %v5972_v31 }
 0x5f4   : > { %v931_v48 = vsel %vm624_vm3, %v929_v43, %v5973_v36  ;;  %v932_v49 = vsel %vm624_vm3, %v930_v42, %v5974_v35  ;;  %v1034_v35 = vld [vmem:[%s7618_s0 + $0x98] sm:$0xff]  ;;  %v1037_v42 = vld [vmem:[%s7618_s0 + $0xb0] sm:$0xff] }
 0x5f5   : > { %v5977_v39 = vpop.permute.xlu1 %5976  ;;  %v1112_v36 = vpack.c.bf16 %v1034_v35, %v1033_v33  ;;  %v1038_v43 = vld [vmem:[%s7618_s0 + $0xb8] sm:$0xff] }
 0x5f6   : > { %v5979_v45 = vunpack.i.h.bf16 %v5977_v39  ;;  %v5978_v47 = vunpack.i.l.bf16 %v5977_v39  ;;  %v1113_v39 = vpack.c.bf16 %v1036_v38, %v1035_v37  ;;  %v1207_v33 = vld [vmem:[%s7618_s0 + $0x238] sm:$0xff]  ;;  %v1209_v37 = vld [vmem:[%s7618_s0 + $0x248] sm:$0xff] }
 0x5f8   : > { %v935_v50 = vsel %vm933_vm4, %v932_v49, %v5979_v45  ;;  %v934_v51 = vsel %vm933_vm4, %v931_v48, %v5978_v47  ;;  %v1114_v45 = vpack.c.bf16 %v1038_v43, %v1037_v42  ;;  %v1039_v47 = vld [vmem:[%s7618_s0 + $0xc0] sm:$0xff]  ;;  %v1040_v48 = vld [vmem:[%s7618_s0 + $0xc8] sm:$0xff] }
 0x5f9   : > { %v936_v52 = vpack.c.bf16 %v935_v50, %v934_v51  ;;  %v1115_v49 = vpack.c.bf16 %v1040_v48, %v1039_v47  ;;  %v5153_v50 = vld [vmem:[%s7618_s0 + $0x88] ss:$0 sm:$0xff] }
 0x5fb   : > { %5474 = vmatmul.mubr.msk.bf16.vlgmr.msra.gmra.mrb[16].mxu1 %vm276_vm0, %v936_v52 }
 0x5fc   : > { %5493 = vmatprep.mubr.msk.bf16.mxu1 %vm6282_vm1, %v6281_v17  ;;  %5486 = vmatpush3.bf16.msra.mxu1 %v1112_v36  ;;  %v1208_v36 = vld [vmem:[%s7618_s0 + $0x240] sm:$0xff] }
 0x5fd   : > { %5487 = vmatprep.subr.bf16.mxu1 %v6281_v17  ;;  %v1212_v38 = vpack.c.bf16 %v1209_v37, %v1208_v36 }
 0x600   : > { %5488 = vmatpush3.bf16.msra.mxu1 %v1113_v39 }
 0x601   : > { %5489 = vmatprep.subr.bf16.mxu1 %v6281_v17 }
 0x604   : > { %5490 = vmatpush3.bf16.msra.mxu1 %v1114_v45 }
 0x605   : > { %5491 = vmatprep.subr.bf16.mxu1 %v6281_v17 }
 0x608   : > { %5492 = vmatpush3.bf16.msra.mxu1 %v1115_v49  ;;  %v1167_v49 = vld [vmem:[%s7618_s0 + $0xd8] sm:$0x3] }
 0x609   : > { %5511 = vmatprep.subr.bf16.mxu1 %v6281_v17 }
 0x6ce   : > { %v980_v46 = vpop.f32.mrb[16].mxu1 }
 0x6cf   : > { %v981_v53 = vadd.f32 %v5151_v44, %v980_v46  ;;  %v5475_v54 = vpop.f32.mrb[17].mxu1 }
 0x6d0   : > { %v983_v55 = vpop.f32.mrb[18].mxu1 }
 0x6d1   : > { %v984_v56 = vadd.f32 %v5151_v44, %v983_v55  ;;  %v5476_v57 = vpop.f32.mrb[19].mxu1  ;;  %v987_v60 = vadd.f32 %v981_v53, %v6411_v40 }
 0x6d3   : > { %v990_v61 = vsel %vm276_vm0, %v987_v60, 0.0  ;;  %v988_v62 = vadd.f32 %v984_v56, %v6413_v41  ;;  %v1028_v41 = vld [vmem:[%s7618_s0 + $0x68] sm:$0xff] }
 0x6d4   : > { %991 = vadd.xlane.f32.xlu1 %v990_v61  ;;  %v1043_v8 = vpack.c.bf16 %v1029_v7, %v1028_v41 }
 0x6d5   : > { %v993_v0 = vsel %vm276_vm0, %v988_v62, 0.0 }
 0x6d6   : > { %994 = vadd.xlane.f32.xlu0 %v993_v0  ;;  %5478 = vmatpush3.bf16.msra.mxu0 %v1043_v8  ;;  %v5155_v8 = vld [vmem:[%s7618_s0 + $0xd0] ss:$0 sm:$0xff] }
 0x6d7   : > { %5479 = vmatprep.subr.bf16.mxu0 %v6281_v17 }
 0x6da   : > { %5480 = vmatpush3.bf16.msra.mxu0 %v1044_v12 }
 0x6db   : > { %5497 = vmatprep.subr.bf16.mxu0 %v6281_v17 }
 0x761   : > { %v992_v1 = vpop.xlane.xlu1 %991 }
 0x762   : > { %v996_v2 = vmul.f32 0.03125, %v992_v1 }
 0x763   : > { %v995_v59 = vpop.xlane.xlu0 %994 }
 0x764   : > { %v998_v63 = vsub.f32 %v987_v60, %v996_v2  ;;  %v997_v3 = vmul.f32 0.03125, %v995_v59 }
 0x766   : > { %v999_v4 = vsub.f32 %v988_v62, %v997_v3  ;;  %v1000_v5 = vmul.f32 %v998_v63, %v998_v63 }
 0x768   : > { %v1002_v6 = vsel %vm276_vm0, %v1000_v5, 0.0  ;;  %v1001_v58 = vmul.f32 %v999_v4, %v999_v4 }
 0x769   : > { %1003 = vadd.xlane.f32.xlu0 %v1002_v6 }
 0x76a   : > { %v1005_v40 = vsel %vm276_vm0, %v1001_v58, 0.0 }
 0x76b   : > { %1006 = vadd.xlane.f32.xlu1 %v1005_v40 }
 0x7f6   : > { %v1004_v13 = vpop.xlane.xlu0 %1003 }
 0x7f7   : > { %v1008_v14 = vmul.f32 0.03125, %v1004_v13 }
 0x7f8   : > { %v1007_v15 = vpop.xlane.xlu1 %1006 }
 0x7f9   : > { %v1010_v16 = vadd.f32 1e-05, %v1008_v14  ;;  %v1009_v18 = vmul.f32 0.03125, %v1007_v15 }
 0x7fb   : > { %6076 = vrsqrt.f32 %v1010_v16  ;;  %v1011_v19 = vadd.f32 1e-05, %v1009_v18 }
 0x7fd   : > { %6078 = vrsqrt.f32 %v1011_v19 }
 0x805   : > { %v6077_v22 = vpop.eup %6076 }
 0x806   : > { %v1014_v23 = vmul.f32 %v6077_v22, %v998_v63 }
 0x807   : > { %v6079_v24 = vpop.eup %6078 }
 0x808   : > { %v1020_v25 = vmul.f32 %v1019_v21, %v1014_v23  ;;  %v1015_v26 = vmul.f32 %v6079_v24, %v999_v4 }
 0x80a   : > { %v1021_v28 = vmul.f32 %v1019_v21, %v1015_v26  ;;  %v6582_v30 = vadd.f32 %v1025_v27, %v1020_v25 }
 0x80c   : > { %v6584_v31 = vadd.f32 %v1025_v27, %v1021_v28 }
 0x80e   : > { %v1042_v32 = vpack.c.bf16 %v6584_v31, %v6582_v30 }
 0x810   : > { %5482 = vmatmul.mubr.msk.bf16.vlgmr.msra.gmra.mrb[20].mxu0 %vm276_vm0, %v1042_v32 }
 0x811   : > { %5501 = vmatprep.mubr.msk.bf16.mxu0 %vm6282_vm1, %v6281_v17 }
 0x8e3   : > { %v1086_v51 = vpop.f32.mrb[20].mxu0 }
 0x8e4   : > { %v1087_v52 = vadd.f32 %v5153_v50, %v1086_v51  ;;  %v5483_v44 = vpop.f32.mrb[21].mxu0 }
 0x8e5   : > { %v1089_v46 = vpop.f32.mrb[22].mxu0 }
 0x8e6   : > { %v1093_v53 = vmul.f32 %v1087_v52, %v1087_v52  ;;  %v1090_v54 = vadd.f32 %v5153_v50, %v1089_v46  ;;  %v5484_v55 = vpop.f32.mrb[23].mxu0  ;;  %v1197_v50 = vrot.slane %v1167_v49, %v6402_v29 }
 0x8e8   : > { %v1095_v56 = vmul.f32 %v1093_v53, %v1087_v52  ;;  %v1094_v57 = vmul.f32 %v1090_v54, %v1090_v54 }
 0x8ea   : > { %v1097_v60 = vmul.f32 0.044715, %v1095_v56  ;;  %v1096_v61 = vmul.f32 %v1094_v57, %v1090_v54 }
 0x8ec   : > { %v1099_v62 = vadd.f32 %v1097_v60, %v1087_v52  ;;  %v1098_v0 = vmul.f32 0.044715, %v1096_v61  ;;  %v5157_v61 = vld [vmem:[%s7618_s0 + $0x250] ss:$0 sm:$0xff] }
 0x8ee   : > { %v1101_v1 = vmul.f32 0.7978846, %v1099_v62  ;;  %v1100_v2 = vadd.f32 %v1098_v0, %v1090_v54 }
 0x8f0   : > { %6080 = vtanh.f32 %v1101_v1  ;;  %v1102_v59 = vmul.f32 0.7978846, %v1100_v2 }
 0x8f2   : > { %6082 = vtanh.f32 %v1102_v59 }
 0x8fa   : > { %v6081_v63 = vpop.eup %6080 }
 0x8fb   : > { %v1105_v3 = vadd.f32 1.0, %v6081_v63 }
 0x8fc   : > { %v6083_v4 = vpop.eup %6082 }
 0x8fd   : > { %v1107_v5 = vmul.f32 0.5, %v1105_v3  ;;  %v1106_v6 = vadd.f32 1.0, %v6083_v4 }
 0x8ff   : > { %v1108_v58 = vmul.f32 0.5, %v1106_v6  ;;  %v1109_v40 = vmul.f32 %v1107_v5, %v1087_v52 }
 0x901   : > { %v1110_v41 = vmul.f32 %v1108_v58, %v1090_v54  ;;  %v1203_v54 = vrot.slane %v1167_v49, %v6408_v34 }
 0x903   : > { %v1111_v7 = vpack.c.bf16 %v1110_v41, %v1109_v40 }
 0x905   : > { %5494 = vmatmul.mubr.msk.bf16.vlgmr.msra.gmra.mrb[20].mxu1 %vm1120_vm5, %v1111_v7 }
 0x906   : > { %5513 = vmatprep.mubr.msk.bf16.mxu1 %vm6282_vm1, %v6281_v17 }
 0x9d8   : > { %v1158_v10 = vpop.f32.mrb[20].mxu1 }
 0x9d9   : > { %v1159_v11 = vadd.f32 %v5155_v8, %v1158_v10  ;;  %v5495_v12 = vpop.f32.mrb[21].mxu1 }
 0x9da   : > { %v1161_v13 = vpop.f32.mrb[22].mxu1 }
 0x9db   : > { %v1162_v14 = vadd.f32 %v5155_v8, %v1161_v13  ;;  %v5496_v15 = vpop.f32.mrb[23].mxu1  ;;  %v1165_v16 = vadd.f32 %v1159_v11, %v6582_v30 }
 0x9dd   : > { %v1168_v18 = vsel %vm276_vm0, %v1165_v16, 0.0  ;;  %v1166_v19 = vadd.f32 %v1162_v14, %v6584_v31  ;;  %v1206_v31 = vld [vmem:[%s7618_s0 + $0x230] sm:$0xff] }
 0x9de   : > { %1169 = vadd.xlane.f32.xlu0 %v1168_v18  ;;  %v1211_v35 = vpack.c.bf16 %v1207_v33, %v1206_v31 }
 0x9df   : > { %v1171_v20 = vsel %vm276_vm0, %v1166_v19, 0.0 }
 0x9e0   : > { %1172 = vadd.xlane.f32.xlu1 %v1171_v20  ;;  %5498 = vmatpush3.bf16.msra.mxu0 %v1211_v35 }
 0x9e1   : > { %5499 = vmatprep.subr.bf16.mxu0 %v6281_v17 }
 0x9e4   : > { %5500 = vmatpush3.bf16.msra.mxu0 %v1212_v38 }
 0x9e5   : > { %5505 = vmatprep.subr.bf16.mxu0 %v6281_v17 }
 0xa6b   : > { %v1170_v21 = vpop.xlane.xlu0 %1169 }
 0xa6c   : > { %v1174_v22 = vmul.f32 0.03125, %v1170_v21 }
 0xa6d   : > { %v1173_v23 = vpop.xlane.xlu1 %1172 }
 0xa6e   : > { %v1176_v24 = vsub.f32 %v1165_v16, %v1174_v22  ;;  %v1175_v25 = vmul.f32 0.03125, %v1173_v23 }
 0xa70   : > { %v1177_v26 = vsub.f32 %v1166_v19, %v1175_v25  ;;  %v1178_v27 = vmul.f32 %v1176_v24, %v1176_v24 }
 0xa72   : > { %v1180_v28 = vsel %vm276_vm0, %v1178_v27, 0.0  ;;  %v1179_v32 = vmul.f32 %v1177_v26, %v1177_v26 }
 0xa73   : > { %1181 = vadd.xlane.f32.xlu0 %v1180_v28 }
 0xa74   : > { %v1183_v30 = vsel %vm276_vm0, %v1179_v32, 0.0 }
 0xa75   : > { %1184 = vadd.xlane.f32.xlu1 %v1183_v30 }
 0xb00   : > { %v1182_v39 = vpop.xlane.xlu0 %1181 }
 0xb01   : > { %v1186_v42 = vmul.f32 0.03125, %v1182_v39 }
 0xb02   : > { %v1185_v43 = vpop.xlane.xlu1 %1184 }
 0xb03   : > { %v1188_v45 = vadd.f32 1e-05, %v1186_v42  ;;  %v1187_v47 = vmul.f32 0.03125, %v1185_v43 }
 0xb05   : > { %6084 = vrsqrt.f32 %v1188_v45  ;;  %v1189_v48 = vadd.f32 1e-05, %v1187_v47 }
 0xb07   : > { %6086 = vrsqrt.f32 %v1189_v48 }
 0xb0f   : > { %v6085_v51 = vpop.eup %6084 }
 0xb10   : > { %v1192_v52 = vmul.f32 %v6085_v51, %v1176_v24 }
 0xb11   : > { %v6087_v44 = vpop.eup %6086 }
 0xb12   : > { %v1198_v46 = vmul.f32 %v1197_v50, %v1192_v52  ;;  %v1193_v53 = vmul.f32 %v6087_v44, %v1177_v26 }
 0xb14   : > { %v1199_v55 = vmul.f32 %v1197_v50, %v1193_v53  ;;  %v6653_v56 = vadd.f32 %v1203_v54, %v1198_v46 }
 0xb16   : > { %v6655_v57 = vadd.f32 %v1203_v54, %v1199_v55 }
 0xb18   : > { %v1210_v60 = vpack.c.bf16 %v6655_v57, %v6653_v56 }
 0xb1a   : > { %5502 = vmatmul.mubr.msk.bf16.vlgmr.msra.gmra.mrb[24].mxu0 %vm276_vm0, %v1210_v60 }
 0xb1b   : > { %5507 = vmatprep.mubr.msk.bf16.mxu0 %vm6282_vm1, %v6281_v17 }
 0xbed   : > { %v1255_v62 = vpop.f32.mrb[24].mxu0 }
 0xbee   : > { %v5503_v0 = vpop.f32.mrb[25].mxu0  ;;  %v1256_v2 = vadd.f32 %v5157_v61, %v1255_v62 }
 0xbef   : > { %v1258_v1 = vpop.f32.mrb[26].mxu0 }
 0xbf0   : > { %v1259_v59 = vadd.f32 %v5157_v61, %v1258_v1  ;;  %v5504_v63 = vpop.f32.mrb[27].mxu0 }
 0xbf2   : > { %v5985_v3 = vpack.i.bf16 %v1259_v59, %v1256_v2  ;;  %v1287_v4 = vpack.c.bf16 %v1259_v59, %v1256_v2 }
 0xbf4   : > { %5986 = vrot.lane.b32.xlu1 %v5985_v3, %s7639_s7  ;;  %5981 = vrot.lane.b32.xlu0 %v5985_v3, %s7637_s8 }
 0xbf8   : > { %5991 = vrot.lane.b32.xlu1 %v5985_v3, %s7635_s9 }
 0xbfc   : > { %1292 = vrot.lane.b32.xlu1 %v1287_v4, %s7633_s10 }
 0xc66   : > { %v5987_v5 = vpop.permute.xlu1 %5986  ;;  %v5982_v6 = vpop.permute.xlu0 %5981 }
 0xc67   : > { %v5989_v58 = vunpack.i.h.bf16 %v5987_v5  ;;  %v5988_v40 = vunpack.i.l.bf16 %v5987_v5  ;;  %v5984_v41 = vunpack.i.h.bf16 %v5982_v6  ;;  %v5983_v7 = vunpack.i.l.bf16 %v5982_v6 }
 0xc69   : > { %v6669_v8 = vpack.c.bf16 %v5984_v41, %v5983_v7  ;;  %v6671_v10 = vpack.c.bf16 %v5989_v58, %v5988_v40 }
 0xc6a   : > { %v5992_v11 = vpop.permute.xlu1 %5991 }
 0xc6b   : > { %v5994_v12 = vunpack.i.h.bf16 %v5992_v11  ;;  %v5993_v13 = vunpack.i.l.bf16 %v5992_v11  ;;  %1342 = vrot.lane.b32.xlu0 %v6669_v8, %s7633_s10  ;;  %1392 = vrot.lane.b32.xlu1 %v6671_v10, %s7633_s10 }
 0xc6d   : > { %v6677_v14 = vpack.c.bf16 %v5994_v12, %v5993_v13 }
 0xc6e   : > { %v1293_v15 = vpop.permute.xlu1 %1292 }
 0xc6f   : > { %v1298_v16 = vsel %vm404_vm2, %v1293_v15, 0  ;;  %1442 = vrot.lane.b32.xlu0 %v6677_v14, %s7633_s10  ;;  %1583 = vrot.lane.b32.xlu1 %v1287_v4, %s7631_s11 }
 0xc70   : > { %5506 = vmatpush3.bf16.xpose.msra.mxu0 %v1298_v16 }
 0xc71   : > { %5517 = vmatprep.subr.bf16.mxu0 %v6281_v17 }
 0xc77   : > { %5508 = vmatmul.mubr.msk.bf16.vlgmr.msra.gmra.mrb[28].mxu0 %vm404_vm2, %v1287_v4 }
 0xc78   : > { %5519 = vmatprep.mubr.msk.bf16.mxu0 %vm6282_vm1, %v6281_v17 }
 0xcdd   : > { %v1343_v18 = vpop.permute.xlu0 %1342  ;;  %v1393_v19 = vpop.permute.xlu1 %1392 }
 0xcde   : > { %v1348_v20 = vsel %vm404_vm2, %v1343_v18, 0  ;;  %v1398_v21 = vsel %vm404_vm2, %v1393_v19, 0 }
 0xcdf   : > { %5512 = vmatpush3.bf16.xpose.msra.mxu1 %v1348_v20  ;;  %5518 = vmatpush3.bf16.xpose.msra.mxu0 %v1398_v21 }
 0xce0   : > { %5523 = vmatprep.subr.bf16.mxu1 %v6281_v17  ;;  %5529 = vmatprep.subr.bf16.mxu0 %v6281_v17 }
 0xce1   : > { %v1443_v22 = vpop.permute.xlu0 %1442  ;;  %v1584_v24 = vpop.permute.xlu1 %1583 }
 0xce2   : > { %v1448_v23 = vsel %vm404_vm2, %v1443_v22, 0 }
 0xce6   : > { %5514 = vmatmul.mubr.msk.bf16.vlgmr.msra.gmra.mrb[24].mxu1 %vm404_vm2, %v6669_v8  ;;  %5520 = vmatmul.mubr.msk.bf16.vlgmr.msra.gmra.mrb[32].mxu0 %vm404_vm2, %v6671_v10 }
 0xce7   : > { %5524 = vmatpush3.bf16.xpose.msra.mxu1 %v1448_v23  ;;  %5530 = vmatpush3.bf16.msra.mxu0 %v1584_v24 }
 0xce8   : > { %5525 = vmatprep.mubr.msk.bf16.mxu1 %vm6282_vm1, %v6281_v17  ;;  %5531 = vmatprep.mubr.msk.bf16.mxu0 %vm6282_vm1, %v6281_v17 }
 0xce9   : > { %5541 = vmatprep.subr.bf16.mxu0 %v6281_v17  ;;  %5535 = vmatprep.subr.bf16.mxu1 %v6281_v17 }
 0xcee   : > { %5526 = vmatmul.mubr.msk.bf16.vlgmr.msra.gmra.mrb[28].mxu1 %vm404_vm2, %v6677_v14 }
 0xcef   : > { %5537 = vmatprep.mubr.msk.bf16.mxu1 %vm6282_vm1, %v6281_v17 }
 0xd4a   : > { %v1334_v25 = vpop.f32.mrb[28].mxu0 }
 0xd4b   : > { %v1491_v26 = vmul.f32 0.35355338, %v1334_v25  ;;  %v5509_v27 = vpop.f32.mrb[29].mxu0 }
 0xd4c   : > { %v1337_v28 = vpop.f32.mrb[30].mxu0 }
 0xd4d   : > { %v1492_v32 = vmul.f32 0.35355338, %v1337_v28  ;;  %v5510_v30 = vpop.f32.mrb[31].mxu0  ;;  %v1499_v31 = vadd.f32 %v6471_v9, %v1491_v26 }
 0xd4f   : > { %v1507_v33 = vsel %vm624_vm3, %v1499_v31, -inf  ;;  %v1500_v35 = vadd.f32 %v6471_v9, %v1492_v32 }
 0xd50   : > { %1508 = vmax.xlane.f32.xlu1 %v1507_v33 }
 0xd51   : > { %v1510_v36 = vsel %vm624_vm3, %v1500_v35, -inf }
 0xd52   : > { %1511 = vmax.xlane.f32.xlu0 %v1510_v36 }
 0xdb9   : > { %v1384_v37 = vpop.f32.mrb[24].mxu1  ;;  %v1434_v38 = vpop.f32.mrb[32].mxu0 }
 0xdba   : > { %v1493_v39 = vmul.f32 0.35355338, %v1384_v37  ;;  %v1495_v42 = vmul.f32 0.35355338, %v1434_v38  ;;  %v5515_v43 = vpop.f32.mrb[25].mxu1  ;;  %v5521_v45 = vpop.f32.mrb[33].mxu0 }
 0xdbb   : > { %v1387_v47 = vpop.f32.mrb[26].mxu1  ;;  %v1437_v48 = vpop.f32.mrb[34].mxu0 }
 0xdbc   : > { %v1494_v49 = vmul.f32 0.35355338, %v1387_v47  ;;  %v5516_v50 = vpop.f32.mrb[27].mxu1  ;;  %v5522_v51 = vpop.f32.mrb[35].mxu0  ;;  %v1501_v52 = vadd.f32 %v6471_v9, %v1493_v39  ;;  %v1503_v44 = vadd.f32 %v6471_v9, %v1495_v42  ;;  %v1496_v46 = vmul.f32 0.35355338, %v1437_v48 }
 0xdbe   : > { %v1513_v53 = vsel %vm624_vm3, %v1501_v52, -inf  ;;  %v1519_v54 = vsel %vm624_vm3, %v1503_v44, -inf  ;;  %v1502_v55 = vadd.f32 %v6471_v9, %v1494_v49  ;;  %v1504_v1 = vadd.f32 %v6471_v9, %v1496_v46 }
 0xdbf   : > { %1514 = vmax.xlane.f32.xlu0 %v1513_v53  ;;  %1520 = vmax.xlane.f32.xlu1 %v1519_v54 }
 0xdc0   : > { %v1516_v0 = vsel %vm624_vm3, %v1502_v55, -inf  ;;  %v1522_v5 = vsel %vm624_vm3, %v1504_v1, -inf }
 0xdc1   : > { %v1484_v60 = vpop.f32.mrb[28].mxu1 }
 0xdc2   : > { %v1497_v61 = vmul.f32 0.35355338, %v1484_v60  ;;  %v5527_v62 = vpop.f32.mrb[29].mxu1 }
 0xdc3   : > { %v1487_v2 = vpop.f32.mrb[30].mxu1  ;;  %1517 = vmax.xlane.f32.xlu0 %v1516_v0 }
 0xdc4   : > { %v1498_v59 = vmul.f32 0.35355338, %v1487_v2  ;;  %v5528_v63 = vpop.f32.mrb[31].mxu1  ;;  %v1505_v3 = vadd.f32 %v6471_v9, %v1497_v61 }
 0xdc6   : > { %v1525_v4 = vsel %vm624_vm3, %v1505_v3, -inf  ;;  %v1506_v6 = vadd.f32 %v6471_v9, %v1498_v59 }
 0xdc7   : > { %1526 = vmax.xlane.f32.xlu1 %v1525_v4  ;;  %1523 = vmax.xlane.f32.xlu0 %v1522_v5 }
 0xdc8   : > { %v1528_v58 = vsel %vm624_vm3, %v1506_v6, -inf }
 0xdcb   : > { %1529 = vmax.xlane.f32.xlu0 %v1528_v58  ;;  %v1263_v58 = vld [vmem:[%s7618_s0 + $0x260] sm:$0xff] }
 0xdd8   : > { %1677 = vrot.lane.b32.xlu1 %v6671_v10, %s7631_s11 }
 0xddc   : > { %1724 = vrot.lane.b32.xlu1 %v6677_v14, %s7631_s11 }
 0xddd   : > { %v1509_v40 = vpop.xlane.xlu1 %1508 }
 0xdde   : > { %v1531_v41 = vsub.f32 %v1499_v31, %v1509_v40 }
 0xddf   : > { %v1512_v7 = vpop.xlane.xlu0 %1511 }
 0xde0   : > { %v1539_v11 = vmul.f32 1.442695, %v1531_v41  ;;  %v1532_v12 = vsub.f32 %v1500_v35, %v1512_v7 }
 0xde1   : > { %1630 = vrot.lane.b32.xlu0 %v6669_v8, %s7631_s11 }
 0xde2   : > { %v1541_v9 = vmul.f32 1.442695, %v1532_v12  ;;  %6088 = vpow2.f32 %v1539_v11 }
 0xde4   : > { %6090 = vpow2.f32 %v1541_v9 }
 0xdec   : > { %v6089_v13 = vpop.eup %6088 }
 0xded   : > { %v1555_v53 = vsel %vm624_vm3, %v6089_v13, 0.0 }
 0xdee   : > { %v6728_v15 = vpop.eup %6090 }
 0xdef   : > { %v1579_v16 = vpack.c.bf16 %v6728_v15, %v6089_v13  ;;  %v1558_v60 = vsel %vm624_vm3, %v6728_v15, 0.0  ;;  %v1264_v13 = vld [vmem:[%s7618_s0 + $0x268] sm:$0xff]  ;;  %v1265_v15 = vld [vmem:[%s7618_s0 + $0x270] sm:$0xff] }
 0xdf1   : > { %5532 = vmatmul.mubr.msk.bf16.vlgmr.msra.gmra.mrb[36].mxu0 %vm624_vm3, %v1579_v16 }
 0xdf2   : > { %5543 = vmatprep.mubr.msk.bf16.mxu0 %vm6282_vm1, %v6281_v17 }
 0xe4c   : > { %v1515_v10 = vpop.xlane.xlu0 %1514  ;;  %v1521_v14 = vpop.xlane.xlu1 %1520 }
 0xe4d   : > { %v1533_v18 = vsub.f32 %v1501_v52, %v1515_v10  ;;  %v1535_v19 = vsub.f32 %v1503_v44, %v1521_v14 }
 0xe4f   : > { %v1543_v20 = vmul.f32 1.442695, %v1533_v18  ;;  %v1547_v21 = vmul.f32 1.442695, %v1535_v19  ;;  %v1819_v18 = vpack.c.bf16 %v1265_v15, %v1264_v13 }
 0xe50   : > { %v1518_v8 = vpop.xlane.xlu0 %1517 }
 0xe51   : > { %6092 = vpow2.f32 %v1543_v20  ;;  %v1534_v22 = vsub.f32 %v1502_v55, %v1518_v8 }
 0xe52   : > { %6094 = vpow2.f32 %v1547_v21 }
 0xe53   : > { %v1545_v23 = vmul.f32 1.442695, %v1534_v22 }
 0xe54   : > { %v1527_v24 = vpop.xlane.xlu1 %1526  ;;  %v1524_v25 = vpop.xlane.xlu0 %1523 }
 0xe55   : > { %6096 = vpow2.f32 %v1545_v23  ;;  %v1537_v26 = vsub.f32 %v1505_v3, %v1527_v24  ;;  %v1536_v27 = vsub.f32 %v1504_v1, %v1524_v25 }
 0xe57   : > { %v1551_v28 = vmul.f32 1.442695, %v1537_v26  ;;  %v1549_v32 = vmul.f32 1.442695, %v1536_v27 }
 0xe58   : > { %v1678_v30 = vpop.permute.xlu1 %1677  ;;  %v1530_v31 = vpop.xlane.xlu0 %1529 }
 0xe59   : > { %6098 = vpow2.f32 %v1551_v28  ;;  %v1538_v33 = vsub.f32 %v1506_v6, %v1530_v31  ;;  %5542 = vmatpush3.bf16.msra.mxu0 %v1678_v30  ;;  %v1262_v6 = vld [vmem:[%s7618_s0 + $0x258] sm:$0xff] }
 0xe5a   : > { %6100 = vpow2.f32 %v1549_v32  ;;  %5553 = vmatprep.subr.bf16.mxu0 %v6281_v17  ;;  %v1818_v40 = vpack.c.bf16 %v1263_v58, %v1262_v6 }
 0xe5b   : > { %v6093_v35 = vpop.eup %6092  ;;  %v1553_v36 = vmul.f32 1.442695, %v1538_v33 }
 0xe5c   : > { %v6095_v37 = vpop.eup %6094  ;;  %v1631_v38 = vpop.permute.xlu0 %1630  ;;  %v1561_v39 = vsel %vm624_vm3, %v6093_v35, 0.0 }
 0xe5d   : > { %6102 = vpow2.f32 %v1553_v36  ;;  %1562 = vadd.xlane.f32.xlu1 %v1561_v39  ;;  %v1567_v42 = vsel %vm624_vm3, %v6095_v37, 0.0  ;;  %5536 = vmatpush3.bf16.msra.mxu1 %v1631_v38  ;;  %v1725_v48 = vpop.permute.xlu1 %1724 }
 0xe5e   : > { %1568 = vadd.xlane.f32.xlu0 %v1567_v42  ;;  %5547 = vmatprep.subr.bf16.mxu1 %v6281_v17 }
 0xe5f   : > { %v6097_v43 = vpop.eup %6096 }
 0xe60   : > { %v1564_v45 = vsel %vm624_vm3, %v6097_v43, 0.0  ;;  %v1580_v47 = vpack.c.bf16 %v6097_v43, %v6093_v35 }
 0xe62   : > { %1565 = vadd.xlane.f32.xlu0 %v1564_v45  ;;  %5538 = vmatmul.mubr.msk.bf16.vlgmr.msra.gmra.mrb[32].mxu1 %vm624_vm3, %v1580_v47 }
 0xe63   : > { %v6099_v49 = vpop.eup %6098  ;;  %5548 = vmatpush3.bf16.msra.mxu1 %v1725_v48  ;;  %5549 = vmatprep.mubr.msk.bf16.mxu1 %vm6282_vm1, %v6281_v17 }
 0xe64   : > { %v6101_v50 = vpop.eup %6100  ;;  %v1573_v51 = vsel %vm624_vm3, %v6099_v49, 0.0  ;;  %5561 = vmatprep.subr.bf16.mxu1 %v6281_v17 }
 0xe65   : > { %1574 = vadd.xlane.f32.xlu1 %v1573_v51  ;;  %v1570_v52 = vsel %vm624_vm3, %v6101_v50, 0.0  ;;  %v1581_v44 = vpack.c.bf16 %v6101_v50, %v6095_v37 }
 0xe66   : > { %1571 = vadd.xlane.f32.xlu0 %v1570_v52 }
 0xe67   : > { %v6103_v46 = vpop.eup %6102  ;;  %5544 = vmatmul.mubr.msk.bf16.vlgmr.msra.gmra.mrb[40].mxu0 %vm624_vm3, %v1581_v44 }
 0xe68   : > { %v1576_v54 = vsel %vm624_vm3, %v6103_v46, 0.0  ;;  %v1582_v55 = vpack.c.bf16 %v6103_v46, %v6099_v49  ;;  %5557 = vmatprep.mubr.msk.bf16.mxu0 %vm6282_vm1, %v6281_v17  ;;  %5554 = vmatpush3.bf16.msra.mxu0 %v1818_v40 }
 0xe69   : > { %1556 = vadd.xlane.f32.xlu1 %v1555_v53  ;;  %5555 = vmatprep.subr.bf16.mxu0 %v6281_v17 }
 0xe6a   : > { %1577 = vadd.xlane.f32.xlu0 %v1576_v54  ;;  %5550 = vmatmul.mubr.msk.bf16.vlgmr.msra.gmra.mrb[36].mxu1 %vm624_vm3, %v1582_v55 }
 0xe6b   : > { %5565 = vmatprep.mubr.msk.bf16.mxu1 %vm6282_vm1, %v6281_v17 }
 0xe6c   : > { %5556 = vmatpush3.bf16.msra.mxu0 %v1819_v18 }
 0xe6d   : > { %5569 = vmatprep.subr.bf16.mxu0 %v6281_v17 }
 0xe6e   : > { %1559 = vadd.xlane.f32.xlu0 %v1558_v60 }
 0xec4   : > { %v6755_v61 = vpop.f32.mrb[36].mxu0 }
 0xec5   : > { %v5533_v62 = vpop.f32.mrb[37].mxu0 }
 0xec6   : > { %v6757_v0 = vpop.f32.mrb[38].mxu0 }
 0xec7   : > { %v5534_v1 = vpop.f32.mrb[39].mxu0 }
 0xeea   : > { %v1563_v63 = vpop.xlane.xlu1 %1562 }
 0xeeb   : > { %v1569_v2 = vpop.xlane.xlu0 %1568  ;;  %6104 = vrcp.f32 %v1563_v63 }
 0xeef   : > { %v1566_v59 = vpop.xlane.xlu0 %1565 }
 0xef0   : > { %6106 = vrcp.f32 %v1566_v59 }
 0xef1   : > { %6108 = vrcp.f32 %v1569_v2 }
 0xef2   : > { %v1575_v4 = vpop.xlane.xlu1 %1574 }
 0xef3   : > { %v1572_v3 = vpop.xlane.xlu0 %1571 }
 0xef4   : > { %6110 = vrcp.f32 %v1572_v3 }
 0xef5   : > { %6112 = vrcp.f32 %v1575_v4  ;;  %v6105_v7 = vpop.eup %6104 }
 0xef6   : > { %v1557_v39 = vpop.xlane.xlu1 %1556 }
 0xef7   : > { %v1578_v5 = vpop.xlane.xlu0 %1577 }
 0xef8   : > { %6114 = vrcp.f32 %v1578_v5 }
 0xef9   : > { %6116 = vrcp.f32 %v1557_v39 }
 0xefa   : > { %v6107_v12 = vpop.eup %6106 }
 0xefb   : > { %v6109_v21 = vpop.eup %6108  ;;  %v1560_v42 = vpop.xlane.xlu0 %1559 }
 0xefc   : > { %6118 = vrcp.f32 %v1560_v42 }
 0xefe   : > { %v6111_v22 = vpop.eup %6110 }
 0xeff   : > { %v6113_v28 = vpop.eup %6112 }
 0xf02   : > { %v6115_v30 = vpop.eup %6114 }
 0xf03   : > { %v6117_v45 = vpop.eup %6116 }
 0xf04   : > { %v1779_v44 = vmul.f32 %v6117_v45, %v6755_v61 }
 0xf06   : > { %v6119_v47 = vpop.eup %6118 }
 0xf07   : > { %v1780_v46 = vmul.f32 %v6119_v47, %v6757_v0  ;;  %v5167_v0 = vld [vmem:[%s7618_s0 + $0x278] ss:$0 sm:$0xff]  ;;  %v1870_v47 = vld [vmem:[%s7618_s0 + $0x280] sm:$0x3] }
 0xf35   : > { %v1670_v41 = vpop.f32.mrb[32].mxu1 }
 0xf36   : > { %v5539_v11 = vpop.f32.mrb[33].mxu1  ;;  %v1781_v16 = vmul.f32 %v6105_v7, %v1670_v41 }
 0xf37   : > { %v1673_v9 = vpop.f32.mrb[34].mxu1 }
 0xf38   : > { %v1782_v10 = vmul.f32 %v6107_v12, %v1673_v9  ;;  %v5540_v14 = vpop.f32.mrb[35].mxu1  ;;  %v2087_v12 = vld [vmem:[%s263_s26] sm:$0xff]  ;;  %s6223_s26 = scalar_lea.vmem %s6222_s25, 256 }
 0xf39   : > { %v2089_v13 = vsel %vm276_vm0, %v2087_v12, 0.0 }
 0xf3a   : > { %v5995_v19 = vpack.i.bf16 %v1782_v10, %v1781_v16  ;;  %v1717_v20 = vpop.f32.mrb[40].mxu0 }
 0xf3b   : > { %v5545_v8 = vpop.f32.mrb[41].mxu0  ;;  %v1783_v24 = vmul.f32 %v6109_v21, %v1717_v20 }
 0xf3c   : > { %v1720_v23 = vpop.f32.mrb[42].mxu0  ;;  %5996 = vrot.lane.b32.xlu1 %v5995_v19, %s7628_s13  ;;  %s7645_s13 = smov 64  }
 0xf3d   : > { %v1784_v25 = vmul.f32 %v6111_v22, %v1720_v23  ;;  %v5546_v26 = vpop.f32.mrb[43].mxu0  ;;  %v1764_v27 = vpop.f32.mrb[36].mxu1 }
 0xf3e   : > { %v5551_v32 = vpop.f32.mrb[37].mxu1  ;;  %v1785_v35 = vmul.f32 %v6113_v28, %v1764_v27  ;;  %v1909_v26 = vld [vmem:[%s7618_s0 + $0x288] sm:$0xff]  ;;  %v1910_v27 = vld [vmem:[%s7618_s0 + $0x290] sm:$0xff] }
 0xf3f   : > { %v6000_v31 = vpack.i.bf16 %v1784_v25, %v1783_v24  ;;  %v1767_v33 = vpop.f32.mrb[38].mxu1  ;;  %v1924_v28 = vpack.c.bf16 %v1910_v27, %v1909_v26  ;;  %v1911_v32 = vld [vmem:[%s7618_s0 + $0x298] sm:$0xff] }
 0xf40   : > { %v1786_v36 = vmul.f32 %v6115_v30, %v1767_v33  ;;  %v5552_v37 = vpop.f32.mrb[39].mxu1  ;;  %v1912_v30 = vld [vmem:[%s7618_s0 + $0x2a0] sm:$0xff] }
 0xf41   : > { %6001 = vrot.lane.b32.xlu0 %v6000_v31, %s7643_s15  ;;  %5562 = vmatpush3.bf16.msra.mxu1 %v1924_v28  ;;  %v1925_v31 = vpack.c.bf16 %v1912_v30, %v1911_v32  ;;  %v5173_v28 = vld [vmem:[%s7618_s0 + $0x100] ss:$0 sm:$0xff] }
 0xf42   : > { %v6005_v38 = vpack.i.bf16 %v1786_v36, %v1785_v35  ;;  %5563 = vmatprep.subr.bf16.mxu1 %v6281_v17 }
 0xf44   : > { %6006 = vrot.lane.b32.xlu1 %v6005_v38, %s7644_s16 }
 0xf45   : > { %5564 = vmatpush3.bf16.msra.mxu1 %v1925_v31 }
 0xf46   : > { %5581 = vmatprep.subr.bf16.mxu1 %v6281_v17 }
 0xfae   : > { %v5997_v43 = vpop.permute.xlu1 %5996 }
 0xfaf   : > { %v5999_v48 = vunpack.i.h.bf16 %v5997_v43  ;;  %v5998_v49 = vunpack.i.l.bf16 %v5997_v43 }
 0xfb1   : > { %v1811_v54 = vsel %vm404_vm2, %v1779_v44, %v5998_v49  ;;  %v1812_v55 = vsel %vm404_vm2, %v1780_v46, %v5999_v48  ;;  %v1900_v48 = vrot.slane %v1870_v47, %v6402_v29 }
 0xfb3   : > { %v6002_v50 = vpop.permute.xlu0 %6001 }
 0xfb4   : > { %v6004_v51 = vunpack.i.h.bf16 %v6002_v50  ;;  %v6003_v52 = vunpack.i.l.bf16 %v6002_v50 }
 0xfb6   : > { %v6007_v53 = vpop.permute.xlu1 %6006  ;;  %v1814_v1 = vsel %vm624_vm3, %v1812_v55, %v6004_v51  ;;  %v1813_v2 = vsel %vm624_vm3, %v1811_v54, %v6003_v52  ;;  %v2088_v52 = vld [vmem:[%s7618_s0 + $0x8] sm:$0x3] }
 0xfb7   : > { %v6009_v60 = vunpack.i.h.bf16 %v6007_v53  ;;  %v6008_v62 = vunpack.i.l.bf16 %v6007_v53  ;;  %v1906_v53 = vrot.slane %v1870_v47, %v6408_v34  ;;  %v2105_v55 = vrot.slane %v2088_v52, %v6402_v29 }
 0xfb9   : > { %v1815_v59 = vsel %vm933_vm4, %v1813_v2, %v6008_v62  ;;  %v1816_v63 = vsel %vm933_vm4, %v1814_v1, %v6009_v60  ;;  %v2112_v60 = vld [vmem:[%s7618_s0 + $0xe0] sm:$0xff]  ;;  %v2113_v62 = vld [vmem:[%s7618_s0 + $0xe8] sm:$0xff] }
 0xfba   : > { %v1817_v61 = vpack.c.bf16 %v1816_v63, %v1815_v59 }
 0xfbc   : > { %5558 = vmatmul.mubr.msk.bf16.vlgmr.msra.gmra.mrb[44].mxu0 %vm276_vm0, %v1817_v61  ;;  %v2117_v61 = vpack.c.bf16 %v2113_v62, %v2112_v60 }
 0xfbd   : > { %5577 = vmatprep.mubr.msk.bf16.mxu0 %vm6282_vm1, %v6281_v17 }
0x108f   : > { %v1861_v3 = vpop.f32.mrb[44].mxu0 }
0x1090   : > { %v1862_v4 = vadd.f32 %v5167_v0, %v1861_v3  ;;  %v5559_v5 = vpop.f32.mrb[45].mxu0 }
0x1091   : > { %v1864_v6 = vpop.f32.mrb[46].mxu0  ;;  %v2115_v5 = vld [vmem:[%s7618_s0 + $0xf8] sm:$0xff] }
0x1092   : > { %v1865_v58 = vadd.f32 %v5167_v0, %v1864_v6  ;;  %v5560_v40 = vpop.f32.mrb[47].mxu0  ;;  %v1868_v41 = vadd.f32 %v1862_v4, %v6653_v56  ;;  %v2114_v4 = vld [vmem:[%s7618_s0 + $0xf0] sm:$0xff]  ;;  %v2110_v6 = vrot.slane %v2088_v52, %v6408_v34 }
0x1094   : > { %v1871_v7 = vsel %vm276_vm0, %v1868_v41, 0.0  ;;  %v1869_v11 = vadd.f32 %v1865_v58, %v6655_v57  ;;  %v2118_v58 = vpack.c.bf16 %v2115_v5, %v2114_v4 }
0x1095   : > { %1872 = vadd.xlane.f32.xlu1 %v1871_v7  ;;  %v1914_v7 = vld [vmem:[%s7618_s0 + $0x2b0] sm:$0xff] }
0x1096   : > { %v1874_v9 = vsel %vm276_vm0, %v1869_v11, 0.0 }
0x1097   : > { %1875 = vadd.xlane.f32.xlu0 %v1874_v9  ;;  %v1916_v9 = vld [vmem:[%s7618_s0 + $0x2c0] sm:$0xff] }
0x109b   : > { %2090 = vadd.xlane.f32.xlu0 %v2089_v13  ;;  %v1917_v13 = vld [vmem:[%s7618_s0 + $0x2c8] sm:$0xff] }
0x1122   : > { %v1873_v15 = vpop.xlane.xlu1 %1872 }
0x1123   : > { %v1877_v16 = vmul.f32 0.03125, %v1873_v15  ;;  %v1994_v15 = vpack.c.bf16 %v1917_v13, %v1916_v9 }
0x1124   : > { %v1876_v56 = vpop.xlane.xlu0 %1875 }
0x1125   : > { %v1879_v10 = vsub.f32 %v1868_v41, %v1877_v16  ;;  %v1878_v14 = vmul.f32 0.03125, %v1876_v56  ;;  %v1918_v16 = vld [vmem:[%s7618_s0 + $0x2d0] sm:$0xff]  ;;  %v1919_v56 = vld [vmem:[%s7618_s0 + $0x2d8] sm:$0xff] }
0x1127   : > { %v1880_v18 = vsub.f32 %v1869_v11, %v1878_v14  ;;  %v1881_v19 = vmul.f32 %v1879_v10, %v1879_v10  ;;  %v1915_v11 = vld [vmem:[%s7618_s0 + $0x2b8] sm:$0xff]  ;;  %v1920_v14 = vld [vmem:[%s7618_s0 + $0x2e0] sm:$0xff] }
0x1128   : > { %v2091_v20 = vpop.xlane.xlu0 %2090 }
0x1129   : > { %v2092_v21 = vmul.f32 0.03125, %v2091_v20  ;;  %v1883_v8 = vsel %vm276_vm0, %v1881_v19, 0.0  ;;  %v1882_v57 = vmul.f32 %v1880_v18, %v1880_v18  ;;  %v5169_v20 = vld [vmem:[%s7618_s0 + $0x2a8] ss:$0 sm:$0xff] }
0x112a   : > { %1884 = vadd.xlane.f32.xlu1 %v1883_v8 }
0x112b   : > { %v2093_v22 = vsub.f32 %v2087_v12, %v2092_v21  ;;  %v1886_v23 = vsel %vm276_vm0, %v1882_v57, 0.0  ;;  %v1993_v12 = vpack.c.bf16 %v1915_v11, %v1914_v7 }
0x112c   : > { %1887 = vadd.xlane.f32.xlu0 %v1886_v23 }
0x112d   : > { %v2094_v24 = vmul.f32 %v2093_v22, %v2093_v22  ;;  %5570 = vmatpush3.bf16.msra.mxu0 %v1993_v12 }
0x112e   : > { %5571 = vmatprep.subr.bf16.mxu0 %v6281_v17 }
0x112f   : > { %v2095_v25 = vsel %vm276_vm0, %v2094_v24, 0.0 }
0x1130   : > { %2096 = vadd.xlane.f32.xlu1 %v2095_v25 }
0x1131   : > { %5572 = vmatpush3.bf16.msra.mxu0 %v1994_v15 }
0x1132   : > { %5573 = vmatprep.subr.bf16.mxu0 %v6281_v17 }
0x11b7   : > { %v1885_v33 = vpop.xlane.xlu1 %1884 }
0x11b8   : > { %v1889_v35 = vmul.f32 0.03125, %v1885_v33 }
0x11b9   : > { %v1888_v36 = vpop.xlane.xlu0 %1887 }
0x11ba   : > { %v1891_v37 = vadd.f32 1e-05, %v1889_v35  ;;  %v1890_v38 = vmul.f32 0.03125, %v1888_v36 }
0x11bc   : > { %6120 = vrsqrt.f32 %v1891_v37  ;;  %v1892_v39 = vadd.f32 1e-05, %v1890_v38 }
0x11bd   : > { %v2097_v42 = vpop.xlane.xlu1 %2096 }
0x11be   : > { %6122 = vrsqrt.f32 %v1892_v39  ;;  %v2098_v43 = vmul.f32 0.03125, %v2097_v42 }
0x11c0   : > { %v2099_v45 = vadd.f32 1e-05, %v2098_v43 }
0x11c2   : > { %6124 = vrsqrt.f32 %v2099_v45 }
0x11c6   : > { %v6121_v49 = vpop.eup %6120 }
0x11c7   : > { %v1895_v50 = vmul.f32 %v6121_v49, %v1879_v10  ;;  %v1995_v10 = vpack.c.bf16 %v1919_v56, %v1918_v16  ;;  %v2086_v56 = vld [vmem:[%s6938_s12] sm:$0xff] }
0x11c8   : > { %v6123_v51 = vpop.eup %6122 }
0x11c9   : > { %v1901_v44 = vmul.f32 %v1900_v48, %v1895_v50  ;;  %v1896_v46 = vmul.f32 %v6123_v51, %v1880_v18  ;;  %5574 = vmatpush3.bf16.msra.mxu0 %v1995_v10  ;;  %v1921_v18 = vld [vmem:[%s7618_s0 + $0x2e8] sm:$0xff] }
0x11ca   : > { %5575 = vmatprep.subr.bf16.mxu0 %v6281_v17  ;;  %v1996_v19 = vpack.c.bf16 %v1921_v18, %v1920_v14 }
0x11cb   : > { %v1902_v54 = vmul.f32 %v1900_v48, %v1896_v46  ;;  %v6833_v59 = vadd.f32 %v1906_v53, %v1901_v44 }
0x11cc   : > { %v6125_v1 = vpop.eup %6124 }
0x11cd   : > { %v2101_v2 = vmul.f32 %v6125_v1, %v2093_v22  ;;  %v6835_v63 = vadd.f32 %v1906_v53, %v1902_v54  ;;  %5576 = vmatpush3.bf16.msra.mxu0 %v1996_v19 }
0x11ce   : > { %5595 = vmatprep.subr.bf16.mxu0 %v6281_v17 }
0x11cf   : > { %v2106_v0 = vmul.f32 %v2105_v55, %v2101_v2  ;;  %v1923_v3 = vpack.c.bf16 %v6835_v63, %v6833_v59 }
0x11d1   : > { %5566 = vmatmul.mubr.msk.bf16.vlgmr.msra.gmra.mrb[40].mxu1 %vm276_vm0, %v1923_v3  ;;  %v6850_v40 = vadd.f32 %v2110_v6, %v2106_v0 }
0x11d2   : > { %5582 = vmatpush3.bf16.msra.mxu1 %v2117_v61  ;;  %5585 = vmatprep.mubr.msk.bf16.mxu1 %vm6282_vm1, %v6281_v17 }
0x11d3   : > { %5583 = vmatprep.subr.bf16.mxu1 %v6281_v17  ;;  %v2116_v41 = vpack.c.bf16 %v6850_v40, %v6850_v40 }
0x11d6   : > { %5584 = vmatpush3.bf16.msra.mxu1 %v2118_v58 }
0x11d7   : > { %5589 = vmatprep.subr.bf16.mxu1 %v6281_v17 }
0x11d9   : > { %5586 = vmatmul.mubr.msk.bf16.vlgmr.msra.gmra.mrb[44].mxu1 %vm276_vm0, %v2116_v41 }
0x11da   : > { %5591 = vmatprep.mubr.msk.bf16.mxu1 %vm6282_vm1, %v6281_v17 }
0x12a4   : > { %v1967_v21 = vpop.f32.mrb[40].mxu1 }
0x12a5   : > { %v1968_v8 = vadd.f32 %v5169_v20, %v1967_v21  ;;  %v5567_v57 = vpop.f32.mrb[41].mxu1 }
0x12a6   : > { %v1970_v22 = vpop.f32.mrb[42].mxu1 }
0x12a7   : > { %v1974_v23 = vmul.f32 %v1968_v8, %v1968_v8  ;;  %v1971_v24 = vadd.f32 %v5169_v20, %v1970_v22  ;;  %v5568_v25 = vpop.f32.mrb[43].mxu1 }
0x12a9   : > { %v1976_v26 = vmul.f32 %v1974_v23, %v1968_v8  ;;  %v1975_v27 = vmul.f32 %v1971_v24, %v1971_v24 }
0x12ab   : > { %v1978_v32 = vmul.f32 0.044715, %v1976_v26  ;;  %v1977_v30 = vmul.f32 %v1975_v27, %v1971_v24 }
0x12ac   : > { %v2161_v31 = vpop.f32.mrb[44].mxu1 }
0x12ad   : > { %v1980_v33 = vadd.f32 %v1978_v32, %v1968_v8  ;;  %v1979_v35 = vmul.f32 0.044715, %v1977_v30  ;;  %v2162_v36 = vadd.f32 %v5173_v28, %v2161_v31  ;;  %v5587_v37 = vpop.f32.mrb[45].mxu1 }
0x12ae   : > { %v2164_v38 = vpop.f32.mrb[46].mxu1 }
0x12af   : > { %v1982_v39 = vmul.f32 0.7978846, %v1980_v33  ;;  %v1981_v42 = vadd.f32 %v1979_v35, %v1971_v24  ;;  %2176 = vrot.lane.b32.xlu1 %v2162_v36, %s7639_s7  ;;  %2173 = vrot.lane.b32.xlu0 %v2162_v36, %s7637_s8  ;;  %v5588_v43 = vpop.f32.mrb[47].mxu1  ;;  %v2182_v47 = vpack.c.bf16 %v2162_v36, %v2162_v36 }
0x12b1   : > { %6126 = vtanh.f32 %v1982_v39  ;;  %v1983_v45 = vmul.f32 0.7978846, %v1981_v42 }
0x12b3   : > { %6128 = vtanh.f32 %v1983_v45  ;;  %2179 = vrot.lane.b32.xlu1 %v2162_v36, %s7635_s9  ;;  %s7648_s9 = smov 104  }
0x12b7   : > { %2187 = vrot.lane.b32.xlu1 %v2182_v47, %s7633_s10 }
0x12bb   : > { %v6127_v48 = vpop.eup %6126 }
0x12bc   : > { %v1986_v49 = vadd.f32 1.0, %v6127_v48 }
0x12bd   : > { %v6129_v50 = vpop.eup %6128 }
0x12be   : > { %v1988_v51 = vmul.f32 0.5, %v1986_v49  ;;  %v1987_v52 = vadd.f32 1.0, %v6129_v50 }
0x12c0   : > { %v1989_v44 = vmul.f32 0.5, %v1987_v52  ;;  %v1990_v46 = vmul.f32 %v1988_v51, %v1968_v8 }
0x12c2   : > { %v1991_v53 = vmul.f32 %v1989_v44, %v1971_v24 }
0x12c4   : > { %v1992_v54 = vpack.c.bf16 %v1991_v53, %v1990_v46 }
0x12c6   : > { %5578 = vmatmul.mubr.msk.bf16.vlgmr.msra.gmra.mrb[48].mxu0 %vm1120_vm5, %v1992_v54 }
0x12c7   : > { %5597 = vmatprep.mubr.msk.bf16.mxu0 %vm6282_vm1, %v6281_v17 }
0x1321   : > { %v2177_v55 = vpop.permute.xlu1 %2176  ;;  %v2174_v60 = vpop.permute.xlu0 %2173 }
0x1322   : > { %v2184_v62 = vpack.c.bf16 %v2177_v55, %v2177_v55  ;;  %v6899_v1 = vpack.c.bf16 %v2174_v60, %v2174_v60 }
0x1324   : > { %2236 = vrot.lane.b32.xlu0 %v6899_v1, %s7633_s10  ;;  %2285 = vrot.lane.b32.xlu1 %v2184_v62, %s7633_s10 }
0x1325   : > { %v2180_v2 = vpop.permute.xlu1 %2179 }
0x1326   : > { %v2185_v61 = vpack.c.bf16 %v2180_v2, %v2180_v2 }
0x1328   : > { %2334 = vrot.lane.b32.xlu0 %v2185_v61, %s7633_s10  ;;  %2430 = vrot.lane.b32.xlu1 %v2182_v47, %s7645_s13 }
0x1329   : > { %v2188_v0 = vpop.permute.xlu1 %2187 }
0x132a   : > { %v2193_v3 = vsel %vm404_vm2, %v2188_v0, 0 }
0x132b   : > { %5590 = vmatpush3.bf16.xpose.msra.mxu1 %v2193_v3 }
0x132c   : > { %5601 = vmatprep.subr.bf16.mxu1 %v6281_v17 }
0x1332   : > { %5592 = vmatmul.mubr.msk.bf16.vlgmr.msra.gmra.mrb[48].mxu1 %vm404_vm2, %v2182_v47 }
0x1333   : > { %5603 = vmatprep.mubr.msk.bf16.mxu1 %vm6282_vm1, %v6281_v17 }
0x1396   : > { %v2237_v4 = vpop.permute.xlu0 %2236  ;;  %v2286_v5 = vpop.permute.xlu1 %2285 }
0x1397   : > { %v2242_v6 = vsel %vm404_vm2, %v2237_v4, 0  ;;  %v2291_v58 = vsel %vm404_vm2, %v2286_v5, 0 }
0x1398   : > { %5596 = vmatpush3.bf16.xpose.msra.mxu0 %v2242_v6  ;;  %5602 = vmatpush3.bf16.xpose.msra.mxu1 %v2291_v58 }
0x1399   : > { %v6913_v41 = vpop.f32.mrb[48].mxu0  ;;  %5607 = vmatprep.subr.bf16.mxu0 %v6281_v17  ;;  %5613 = vmatprep.subr.bf16.mxu1 %v6281_v17 }
0x139a   : > { %v2335_v7 = vpop.permute.xlu0 %2334  ;;  %v5579_v11 = vpop.f32.mrb[49].mxu0 }
0x139b   : > { %v2431_v12 = vpop.permute.xlu1 %2430  ;;  %v6917_v9 = vpop.f32.mrb[50].mxu0  ;;  %v2340_v15 = vsel %vm404_vm2, %v2335_v7, 0 }
0x139c   : > { %v5580_v13 = vpop.f32.mrb[51].mxu0  ;;  %v2437_v16 = vsel %vm2435_vm6, %v2431_v12, 0 }
0x139f   : > { %5598 = vmatmul.mubr.msk.bf16.vlgmr.msra.gmra.mrb[52].mxu0 %vm404_vm2, %v6899_v1  ;;  %5604 = vmatmul.mubr.msk.bf16.vlgmr.msra.gmra.mrb[52].mxu1 %vm404_vm2, %v2184_v62 }
0x13a0   : > { %5608 = vmatpush3.bf16.xpose.msra.mxu0 %v2340_v15  ;;  %5614 = vmatpush3.bf16.msra.mxu1 %v2437_v16 }
0x13a1   : > { %5609 = vmatprep.mubr.msk.bf16.mxu0 %vm6282_vm1, %v6281_v17  ;;  %5615 = vmatprep.mubr.msk.bf16.mxu1 %vm6282_vm1, %v6281_v17 }
0x13a2   : > { %5625 = vmatprep.subr.bf16.mxu1 %v6281_v17  ;;  %5619 = vmatprep.subr.bf16.mxu0 %v6281_v17 }
0x13a7   : > { %5610 = vmatmul.mubr.msk.bf16.vlgmr.msra.gmra.mrb[56].mxu0 %vm404_vm2, %v2185_v61 }
0x13a8   : > { %5621 = vmatprep.mubr.msk.bf16.mxu0 %vm6282_vm1, %v6281_v17 }
0x1405   : > { %v2229_v10 = vpop.f32.mrb[48].mxu1 }
0x1406   : > { %v2382_v14 = vmul.f32 0.35355338, %v2229_v10  ;;  %v5593_v18 = vpop.f32.mrb[49].mxu1 }
0x1407   : > { %v2232_v19 = vpop.f32.mrb[50].mxu1 }
0x1408   : > { %v5594_v20 = vpop.f32.mrb[51].mxu1  ;;  %v2386_v21 = vadd.f32 %v2382_v14, %v2086_v56 }
0x140a   : > { %v2390_v8 = vsel %vm404_vm2, %v2386_v21, -inf }
0x140b   : > { %2391 = vmax.xlane.f32.xlu1 %v2390_v8 }
0x141c   : > { %2527 = vrot.lane.b32.xlu1 %v2184_v62, %s7645_s13 }
0x1420   : > { %2575 = vrot.lane.b32.xlu1 %v2185_v61, %s7645_s13 }
0x1472   : > { %v2278_v57 = vpop.f32.mrb[52].mxu0  ;;  %v2327_v22 = vpop.f32.mrb[52].mxu1 }
0x1473   : > { %v2383_v23 = vmul.f32 0.35355338, %v2278_v57  ;;  %v2384_v24 = vmul.f32 0.35355338, %v2327_v22  ;;  %v5599_v25 = vpop.f32.mrb[53].mxu0  ;;  %v5605_v26 = vpop.f32.mrb[53].mxu1 }
0x1474   : > { %v2281_v27 = vpop.f32.mrb[54].mxu0  ;;  %v2330_v28 = vpop.f32.mrb[54].mxu1  ;;  %v2167_v22 = vld [vmem:[%s7618_s0 + $0x108] sm:$0xff]  ;;  %v2169_v26 = vld [vmem:[%s7618_s0 + $0x118] sm:$0xff] }
0x1475   : > { %v5600_v32 = vpop.f32.mrb[55].mxu0  ;;  %v5606_v30 = vpop.f32.mrb[55].mxu1  ;;  %v2387_v31 = vadd.f32 %v2383_v23, %v2086_v56  ;;  %v2388_v35 = vadd.f32 %v2384_v24, %v2086_v56  ;;  %v2168_v23 = vld [vmem:[%s7618_s0 + $0x110] sm:$0xff]  ;;  %v2170_v27 = vld [vmem:[%s7618_s0 + $0x120] sm:$0xff] }
0x1476   : > { %v2647_v24 = vpack.c.bf16 %v2168_v23, %v2167_v22  ;;  %v2648_v28 = vpack.c.bf16 %v2170_v27, %v2169_v26  ;;  %v2776_v22 = vld [vmem:[%s7618_s0 + $0x160] sm:$0xff]  ;;  %v2777_v23 = vld [vmem:[%s7618_s0 + $0x168] sm:$0xff] }
0x1477   : > { %v2393_v33 = vsel %vm404_vm2, %v2387_v31, -inf  ;;  %v2396_v39 = vsel %vm404_vm2, %v2388_v35, -inf }
0x1478   : > { %2394 = vmax.xlane.f32.xlu0 %v2393_v33 }
0x147a   : > { %v2376_v36 = vpop.f32.mrb[56].mxu0 }
0x147b   : > { %v2385_v37 = vmul.f32 0.35355338, %v2376_v36  ;;  %v5611_v38 = vpop.f32.mrb[57].mxu0 }
0x147c   : > { %2397 = vmax.xlane.f32.xlu0 %v2396_v39  ;;  %v2379_v42 = vpop.f32.mrb[58].mxu0 }
0x147d   : > { %v5612_v43 = vpop.f32.mrb[59].mxu0  ;;  %v2389_v45 = vadd.f32 %v2385_v37, %v2086_v56 }
0x147f   : > { %v2399_v47 = vsel %vm404_vm2, %v2389_v45, -inf }
0x1480   : > { %2400 = vmax.xlane.f32.xlu0 %v2399_v47 }
0x1496   : > { %2479 = vrot.lane.b32.xlu0 %v6899_v1, %s7645_s13 }
0x1498   : > { %v2392_v48 = vpop.xlane.xlu1 %2391 }
0x1499   : > { %v2402_v49 = vsub.f32 %v2386_v21, %v2392_v48 }
0x149b   : > { %v2406_v50 = vmul.f32 1.442695, %v2402_v49 }
0x149c   : > { %v2528_v52 = vpop.permute.xlu1 %2527 }
0x149d   : > { %6130 = vpow2.f32 %v2406_v50  ;;  %v2533_v46 = vsel %vm2435_vm6, %v2528_v52, 0 }
0x14a0   : > { %v2576_v6 = vpop.permute.xlu1 %2575 }
0x14a1   : > { %v2581_v11 = vsel %vm2435_vm6, %v2576_v6, 0 }
0x14a7   : > { %v6131_v51 = vpop.eup %6130 }
0x14a8   : > { %v2426_v44 = vpack.c.bf16 %v6131_v51, %v6131_v51  ;;  %v2414_v14 = vsel %vm404_vm2, %v6131_v51, 0.0 }
0x14aa   : > { %5616 = vmatmul.mubr.msk.bf16.vlgmr.msra.gmra.mrb[56].mxu1 %vm404_vm2, %v2426_v44  ;;  %v5171_v44 = vld [vmem:[%s7618_s0 + $0x2f0] ss:$0 sm:$0xff] }
0x14ab   : > { %5626 = vmatpush3.bf16.msra.mxu1 %v2533_v46  ;;  %5627 = vmatprep.mubr.msk.bf16.mxu1 %vm6282_vm1, %v6281_v17  ;;  %v2042_v46 = vadd.f32 %v5171_v44, %v6917_v9 }
0x14ac   : > { %5637 = vmatprep.subr.bf16.mxu1 %v6281_v17 }
0x1505   : > { %v2395_v53 = vpop.xlane.xlu0 %2394 }
0x1506   : > { %v2403_v54 = vsub.f32 %v2387_v31, %v2395_v53  ;;  %v2046_v53 = vadd.f32 %v2042_v46, %v6835_v63 }
0x1508   : > { %v2408_v55 = vmul.f32 1.442695, %v2403_v54  ;;  %v2051_v54 = vsel %vm276_vm0, %v2046_v53, 0.0 }
0x1509   : > { %v2398_v60 = vpop.xlane.xlu0 %2397 }
0x150a   : > { %6132 = vpow2.f32 %v2408_v55  ;;  %v2404_v62 = vsub.f32 %v2388_v35, %v2398_v60  ;;  %v2039_v55 = vadd.f32 %v5171_v44, %v6913_v41 }
0x150c   : > { %v2410_v1 = vmul.f32 1.442695, %v2404_v62  ;;  %v2045_v60 = vadd.f32 %v2039_v55, %v6833_v59  ;;  %v2722_v55 = vld [vmem:[%s7618_s0 + $0x140] sm:$0xff] }
0x150d   : > { %v2401_v2 = vpop.xlane.xlu0 %2400 }
0x150e   : > { %6134 = vpow2.f32 %v2410_v1  ;;  %v2405_v61 = vsub.f32 %v2389_v45, %v2401_v2  ;;  %v2048_v62 = vsel %vm276_vm0, %v2045_v60, 0.0 }
0x1510   : > { %v2412_v0 = vmul.f32 1.442695, %v2405_v61 }
0x1511   : > { %v2480_v3 = vpop.permute.xlu0 %2479 }
0x1512   : > { %6136 = vpow2.f32 %v2412_v0  ;;  %v2485_v4 = vsel %vm2435_vm6, %v2480_v3, 0 }
0x1513   : > { %5620 = vmatpush3.bf16.msra.mxu0 %v2485_v4 }
0x1514   : > { %v6133_v5 = vpop.eup %6132  ;;  %5631 = vmatprep.subr.bf16.mxu0 %v6281_v17 }
0x1515   : > { %v2417_v58 = vsel %vm404_vm2, %v6133_v5, 0.0  ;;  %v2427_v7 = vpack.c.bf16 %v6133_v5, %v6133_v5 }
0x1516   : > { %2418 = vadd.xlane.f32.xlu1 %v2417_v58 }
0x1517   : > { %5622 = vmatmul.mubr.msk.bf16.vlgmr.msra.gmra.mrb[60].mxu0 %vm404_vm2, %v2427_v7 }
0x1518   : > { %v6135_v12 = vpop.eup %6134  ;;  %5632 = vmatpush3.bf16.msra.mxu0 %v2581_v11  ;;  %5633 = vmatprep.mubr.msk.bf16.mxu0 %vm6282_vm1, %v6281_v17 }
0x1519   : > { %v2420_v13 = vsel %vm404_vm2, %v6135_v12, 0.0  ;;  %v2428_v15 = vpack.c.bf16 %v6135_v12, %v6135_v12  ;;  %5645 = vmatprep.subr.bf16.mxu0 %v6281_v17 }
0x151a   : > { %2421 = vadd.xlane.f32.xlu0 %v2420_v13 }
0x151b   : > { %5628 = vmatmul.mubr.msk.bf16.vlgmr.msra.gmra.mrb[60].mxu1 %vm404_vm2, %v2428_v15  ;;  %v5183_v15 = vld [vmem:[%s7618_s0 + $0x128] ss:$0 sm:$0xff] }
0x151c   : > { %v6137_v16 = vpop.eup %6136  ;;  %5641 = vmatprep.mubr.msk.bf16.mxu1 %vm6282_vm1, %v6281_v17  ;;  %5638 = vmatpush3.bf16.msra.mxu1 %v2647_v24  ;;  %v2781_v24 = vpack.c.bf16 %v2777_v23, %v2776_v22 }
0x151d   : > { %v2423_v56 = vsel %vm404_vm2, %v6137_v16, 0.0  ;;  %v2429_v10 = vpack.c.bf16 %v6137_v16, %v6137_v16  ;;  %5639 = vmatprep.subr.bf16.mxu1 %v6281_v17 }
0x151e   : > { %2424 = vadd.xlane.f32.xlu0 %v2423_v56 }
0x151f   : > { %5634 = vmatmul.mubr.msk.bf16.vlgmr.msra.gmra.mrb[64].mxu0 %vm404_vm2, %v2429_v10 }
0x1520   : > { %5649 = vmatprep.mubr.msk.bf16.mxu0 %vm6282_vm1, %v6281_v17  ;;  %5640 = vmatpush3.bf16.msra.mxu1 %v2648_v28 }
0x1521   : > { %5653 = vmatprep.subr.bf16.mxu1 %v6281_v17 }
0x1522   : > { %2415 = vadd.xlane.f32.xlu0 %v2414_v14 }
0x157d   : > { %v2473_v18 = vpop.f32.mrb[56].mxu1 }
0x157e   : > { %v5617_v19 = vpop.f32.mrb[57].mxu1 }
0x157f   : > { %v2476_v20 = vpop.f32.mrb[58].mxu1 }
0x1580   : > { %v5618_v21 = vpop.f32.mrb[59].mxu1 }
0x15a3   : > { %v2419_v8 = vpop.xlane.xlu1 %2418 }
0x15a4   : > { %6138 = vrcp.f32 %v2419_v8 }
0x15a7   : > { %v2422_v57 = vpop.xlane.xlu0 %2421 }
0x15a8   : > { %6140 = vrcp.f32 %v2422_v57 }
0x15ab   : > { %v2425_v25 = vpop.xlane.xlu0 %2424 }
0x15ac   : > { %6142 = vrcp.f32 %v2425_v25  ;;  %v2779_v25 = vld [vmem:[%s7618_s0 + $0x178] sm:$0xff] }
0x15ae   : > { %v6139_v32 = vpop.eup %6138 }
0x15af   : > { %v2416_v1 = vpop.xlane.xlu0 %2415 }
0x15b0   : > { %6144 = vrcp.f32 %v2416_v1  ;;  %v2724_v1 = vld [vmem:[%s7618_s0 + $0x150] sm:$0xff] }
0x15b2   : > { %v6141_v37 = vpop.eup %6140 }
0x15b6   : > { %v6143_v47 = vpop.eup %6142 }
0x15ba   : > { %v6145_v2 = vpop.eup %6144 }
0x15bb   : > { %v2627_v0 = vmul.f32 %v6145_v2, %v2473_v18 }
0x15ea   : > { %v2521_v30 = vpop.f32.mrb[60].mxu0 }
0x15eb   : > { %v2628_v31 = vmul.f32 %v6139_v32, %v2521_v30  ;;  %v5623_v33 = vpop.f32.mrb[61].mxu0 }
0x15ec   : > { %v2524_v35 = vpop.f32.mrb[62].mxu0 }
0x15ed   : > { %2632 = vrot.lane.b32.xlu1 %v2628_v31, %s7647_s30  ;;  %v5624_v36 = vpop.f32.mrb[63].mxu0 }
0x15ee   : > { %v2569_v38 = vpop.f32.mrb[60].mxu1 }
0x15ef   : > { %v2629_v39 = vmul.f32 %v6141_v37, %v2569_v38  ;;  %v5629_v42 = vpop.f32.mrb[61].mxu1 }
0x15f0   : > { %v2572_v43 = vpop.f32.mrb[62].mxu1 }
0x15f1   : > { %v5630_v45 = vpop.f32.mrb[63].mxu1  ;;  %2636 = vrot.lane.b32.xlu0 %v2629_v39, %s7643_s15  ;;  %v2047_v43 = vld [vmem:[%s7618_s0 + $0x2f8] sm:$0x3] }
0x15f2   : > { %v2617_v48 = vpop.f32.mrb[64].mxu0  ;;  %v2077_v45 = vrot.slane %v2047_v43, %v6402_v29 }
0x15f3   : > { %v2630_v49 = vmul.f32 %v6143_v47, %v2617_v48  ;;  %v5635_v50 = vpop.f32.mrb[65].mxu0 }
0x15f4   : > { %v2620_v51 = vpop.f32.mrb[66].mxu0 }
0x15f5   : > { %2640 = vrot.lane.b32.xlu1 %v2630_v49, %s7644_s16  ;;  %v5636_v52 = vpop.f32.mrb[67].mxu0  ;;  %v2083_v51 = vrot.slane %v2047_v43, %v6408_v34 }
0x1610   : > { %2052 = vadd.xlane.f32.xlu0 %v2051_v54  ;;  %v2721_v54 = vld [vmem:[%s7618_s0 + $0x138] sm:$0xff] }
0x1619   : > { %2049 = vadd.xlane.f32.xlu1 %v2048_v62  ;;  %v2723_v62 = vld [vmem:[%s7618_s0 + $0x148] sm:$0xff] }
0x161a   : > { %v2727_v2 = vpack.c.bf16 %v2724_v1, %v2723_v62 }
0x165f   : > { %v2633_v61 = vpop.permute.xlu1 %2632 }
0x1660   : > { %v2643_v9 = vsel %vm404_vm2, %v2627_v0, %v2633_v61 }
0x1663   : > { %v2637_v3 = vpop.permute.xlu0 %2636 }
0x1664   : > { %v2644_v63 = vsel %vm624_vm3, %v2643_v9, %v2637_v3  ;;  %v2697_v9 = vld [vmem:[%s7618_s0 + $0x130] sm:$0x3] }
0x1667   : > { %v2641_v4 = vpop.permute.xlu1 %2640 }
0x1668   : > { %v2645_v5 = vsel %vm933_vm4, %v2644_v63, %v2641_v4  ;;  %v2714_v63 = vrot.slane %v2697_v9, %v6402_v29 }
0x1669   : > { %v2646_v41 = vpack.c.bf16 %v2645_v5, %v2645_v5 }
0x166b   : > { %5642 = vmatmul.mubr.msk.bf16.vlgmr.msra.gmra.mrb[64].mxu1 %vm276_vm0, %v2646_v41  ;;  %v2719_v41 = vrot.slane %v2697_v9, %v6408_v34 }
0x166c   : > { %5657 = vmatprep.mubr.msk.bf16.mxu1 %vm6282_vm1, %v6281_v17  ;;  %5654 = vmatpush3.bf16.msra.mxu1 %v2781_v24 }
0x166d   : > { %5655 = vmatprep.subr.bf16.mxu1 %v6281_v17 }
0x169d   : > { %v2053_v12 = vpop.xlane.xlu0 %2052 }
0x169e   : > { %v2055_v13 = vmul.f32 0.03125, %v2053_v12 }
0x16a0   : > { %v2057_v56 = vsub.f32 %v2046_v53, %v2055_v13 }
0x16a2   : > { %v2059_v8 = vmul.f32 %v2057_v56, %v2057_v56 }
0x16a4   : > { %v2063_v57 = vsel %vm276_vm0, %v2059_v8, 0.0 }
0x16a6   : > { %v2050_v59 = vpop.xlane.xlu1 %2049 }
0x16a7   : > { %v2054_v6 = vmul.f32 0.03125, %v2050_v59 }
0x16a9   : > { %v2056_v58 = vsub.f32 %v2045_v60, %v2054_v6  ;;  %v2726_v60 = vpack.c.bf16 %v2722_v55, %v2721_v54 }
0x16ab   : > { %v2058_v7 = vmul.f32 %v2056_v58, %v2056_v58  ;;  %5646 = vmatpush3.bf16.msra.mxu0 %v2726_v60 }
0x16ac   : > { %5647 = vmatprep.subr.bf16.mxu0 %v6281_v17 }
0x16ad   : > { %v2060_v11 = vsel %vm276_vm0, %v2058_v7, 0.0  ;;  %v5187_v7 = vld [vmem:[%s7618_s0 + $0x180] ss:$0 sm:$0xff] }
0x16ae   : > { %2061 = vadd.xlane.f32.xlu1 %v2060_v11 }
0x16af   : > { %5648 = vmatpush3.bf16.msra.mxu0 %v2727_v2 }
0x16b0   : > { %5661 = vmatprep.subr.bf16.mxu0 %v6281_v17 }
0x173b   : > { %v2062_v27 = vpop.xlane.xlu1 %2061 }
0x173c   : > { %v2066_v28 = vmul.f32 0.03125, %v2062_v27 }
0x173e   : > { %v2690_v16 = vpop.f32.mrb[64].mxu1  ;;  %v2068_v32 = vadd.f32 1e-05, %v2066_v28 }
0x173f   : > { %v2691_v10 = vadd.f32 %v5183_v15, %v2690_v16  ;;  %v5643_v14 = vpop.f32.mrb[65].mxu1 }
0x1740   : > { %v2693_v18 = vpop.f32.mrb[66].mxu1  ;;  %6146 = vrsqrt.f32 %v2068_v32 }
0x1741   : > { %v2696_v19 = vadd.f32 %v2691_v10, %v6850_v40  ;;  %v5644_v20 = vpop.f32.mrb[67].mxu1  ;;  %v2778_v40 = vld [vmem:[%s7618_s0 + $0x170] sm:$0xff] }
0x1742   : > { %v2782_v26 = vpack.c.bf16 %v2779_v25, %v2778_v40  ;;  %v5185_v40 = vld [vmem:[%s7618_s0 + $0x158] ss:$0 sm:$0xff] }
0x1743   : > { %v2698_v21 = vsel %vm276_vm0, %v2696_v19, 0.0 }
0x1744   : > { %2699 = vadd.xlane.f32.xlu0 %v2698_v21  ;;  %5656 = vmatpush3.bf16.msra.mxu1 %v2782_v26 }
0x1745   : > { %5667 = vmatprep.subr.bf16.mxu1 %v6281_v17 }
0x1748   : > { %2064 = vadd.xlane.f32.xlu0 %v2063_v57 }
0x174a   : > { %v6147_v42 = vpop.eup %6146 }
0x174b   : > { %v2072_v47 = vmul.f32 %v6147_v42, %v2056_v58 }
0x174d   : > { %v2078_v49 = vmul.f32 %v2077_v45, %v2072_v47 }
0x174f   : > { %v2084_v44 = vadd.f32 %v2083_v51, %v2078_v49 }
0x17d1   : > { %v2700_v30 = vpop.xlane.xlu0 %2699 }
0x17d2   : > { %v2701_v31 = vmul.f32 0.03125, %v2700_v30 }
0x17d4   : > { %v2702_v33 = vsub.f32 %v2696_v19, %v2701_v31 }
0x17d5   : > { %v2065_v35 = vpop.xlane.xlu0 %2064 }
0x17d6   : > { %v2067_v36 = vmul.f32 0.03125, %v2065_v35  ;;  %v2703_v37 = vmul.f32 %v2702_v33, %v2702_v33 }
0x17d8   : > { %v2069_v38 = vadd.f32 1e-05, %v2067_v36  ;;  %v2704_v39 = vsel %vm276_vm0, %v2703_v37, 0.0 }
0x17d9   : > { %2705 = vadd.xlane.f32.xlu1 %v2704_v39 }
0x17da   : > { %6148 = vrsqrt.f32 %v2069_v38 }
0x17e4   : > { %v6149_v48 = vpop.eup %6148 }
0x17e5   : > { %v2073_v50 = vmul.f32 %v6149_v48, %v2057_v56 }
0x17e7   : > { %v2079_v52 = vmul.f32 %v2077_v45, %v2073_v50 }
0x17e9   : > { %v2085_v46 = vadd.f32 %v2083_v51, %v2079_v52 }
0x17eb   : > { %v7030_v53 = vpack.c.bf16 %v2085_v46, %v2084_v44  ;;  %v6214_v46 = vld [vmem:[%s6468_s14] ss:$0 sm:$0xff] }
0x17ed   : > { %5658 = vmatmul.mubr.msk.bf16.vlgmr.msra.gmra.mrb[68].mxu1 %vm276_vm0, %v7030_v53 }
0x17ee   : > { %5669 = vmatprep.mubr.msk.bf16.mxu1 %vm6282_vm1, %v6281_v17 }
0x1866   : > { %v2706_v61 = vpop.xlane.xlu1 %2705 }
0x1867   : > { %v2707_v0 = vmul.f32 0.03125, %v2706_v61 }
0x1869   : > { %v2708_v3 = vadd.f32 1e-05, %v2707_v0 }
0x186b   : > { %6150 = vrsqrt.f32 %v2708_v3 }
0x1875   : > { %v6151_v4 = vpop.eup %6150 }
0x1876   : > { %v2710_v5 = vmul.f32 %v6151_v4, %v2702_v33 }
0x1878   : > { %v2715_v59 = vmul.f32 %v2714_v63, %v2710_v5 }
0x187a   : > { %v7055_v6 = vadd.f32 %v2719_v41, %v2715_v59 }
0x187c   : > { %v2725_v58 = vpack.c.bf16 %v7055_v6, %v7055_v6 }
0x187e   : > { %5650 = vmatmul.mubr.msk.bf16.vlgmr.msra.gmra.mrb[68].mxu0 %vm276_vm0, %v2725_v58 }
0x187f   : > { %5663 = vmatprep.mubr.msk.bf16.mxu0 %vm6282_vm1, %v6281_v17 }
0x18c0   : > { %v2825_v11 = vpop.f32.mrb[68].mxu1 }
0x18c1   : > { %v5659_v12 = vpop.f32.mrb[69].mxu1  ;;  %v2826_v15 = vadd.f32 %v5187_v7, %v2825_v11 }
0x18c2   : > { %v2828_v13 = vpop.f32.mrb[70].mxu1 }
0x18c3   : > { %v2829_v16 = vadd.f32 %v5187_v7, %v2828_v13  ;;  %v5660_v56 = vpop.f32.mrb[71].mxu1 }
0x18c5   : > { %v6015_v10 = vpack.i.bf16 %v2829_v16, %v2826_v15  ;;  %v7065_v14 = vpack.c.bf16 %v2829_v16, %v2826_v15 }
0x18c7   : > { %6016 = vrot.lane.b32.xlu1 %v6015_v10, %s7639_s7  ;;  %6011 = vrot.lane.b32.xlu0 %v6015_v10, %s7637_s8  ;;  %v2879_v18 = vsel %vm404_vm2, %v7065_v14, 0 }
0x18c8   : > { %5662 = vmatpush3.bf16.xpose.msra.mxu0 %v2879_v18 }
0x18c9   : > { %5673 = vmatprep.subr.bf16.mxu0 %v6281_v17 }
0x1939   : > { %v6012_v19 = vpop.permute.xlu0 %6011  ;;  %v6017_v22 = vpop.permute.xlu1 %6016 }
0x193a   : > { %v6014_v20 = vunpack.i.h.bf16 %v6012_v19  ;;  %v6013_v21 = vunpack.i.l.bf16 %v6012_v19  ;;  %v6019_v23 = vunpack.i.h.bf16 %v6017_v22  ;;  %v6018_v24 = vunpack.i.l.bf16 %v6017_v22 }
0x193c   : > { %v7072_v8 = vpack.c.bf16 %v6014_v20, %v6013_v21  ;;  %v7080_v26 = vpack.c.bf16 %v6019_v23, %v6018_v24 }
0x193e   : > { %v2925_v57 = vsel %vm404_vm2, %v7072_v8, 0  ;;  %v2971_v33 = vsel %vm404_vm2, %v7080_v26, 0 }
0x193f   : > { %5668 = vmatpush3.bf16.xpose.msra.mxu1 %v2925_v57 }
0x1940   : > { %5679 = vmatprep.subr.bf16.mxu1 %v6281_v17 }
0x1951   : > { %v2770_v25 = vpop.f32.mrb[68].mxu0 }
0x1952   : > { %v2771_v27 = vadd.f32 %v5185_v40, %v2770_v25  ;;  %v5651_v28 = vpop.f32.mrb[69].mxu0 }
0x1953   : > { %v2773_v32 = vpop.f32.mrb[70].mxu0 }
0x1954   : > { %v2847_v30 = vpack.c.bf16 %v2771_v27, %v2771_v27  ;;  %2841 = vrot.lane.b32.xlu0 %v2771_v27, %s7639_s7  ;;  %2838 = vrot.lane.b32.xlu1 %v2771_v27, %s7637_s8  ;;  %v5652_v31 = vpop.f32.mrb[71].mxu0  ;;  %s7650_s7 = smov 112   ;;  %s7651_s8 = smov 120  }
0x1956   : > { %5664 = vmatmul.mubr.msk.bf16.vlgmr.msra.gmra.mrb[72].mxu0 %vm404_vm2, %v2847_v30 }
0x1957   : > { %5674 = vmatpush3.bf16.xpose.msra.mxu0 %v2971_v33  ;;  %5675 = vmatprep.mubr.msk.bf16.mxu0 %vm6282_vm1, %v6281_v17 }
0x1958   : > { %6021 = vrot.lane.b32.xlu1 %v6015_v10, %s7648_s9  ;;  %5685 = vmatprep.subr.bf16.mxu0 %v6281_v17 }
0x195c   : > { %2844 = vrot.lane.b32.xlu1 %v2771_v27, %s7648_s9 }
0x19c6   : > { %v2842_v35 = vpop.permute.xlu0 %2841  ;;  %v2839_v36 = vpop.permute.xlu1 %2838 }
0x19c7   : > { %v2849_v37 = vpack.c.bf16 %v2842_v35, %v2842_v35  ;;  %v2848_v38 = vpack.c.bf16 %v2839_v36, %v2839_v36 }
0x19c9   : > { %5670 = vmatmul.mubr.msk.bf16.vlgmr.msra.gmra.mrb[72].mxu1 %vm404_vm2, %v2848_v38  ;;  %5676 = vmatmul.mubr.msk.bf16.vlgmr.msra.gmra.mrb[76].mxu0 %vm404_vm2, %v2849_v37 }
0x19ca   : > { %v6022_v39 = vpop.permute.xlu1 %6021  ;;  %5681 = vmatprep.mubr.msk.bf16.mxu1 %vm6282_vm1, %v6281_v17  ;;  %5687 = vmatprep.mubr.msk.bf16.mxu0 %vm6282_vm1, %v6281_v17 }
0x19cb   : > { %v6024_v42 = vunpack.i.h.bf16 %v6022_v39  ;;  %v6023_v43 = vunpack.i.l.bf16 %v6022_v39 }
0x19cd   : > { %v2874_v45 = vpack.c.bf16 %v6024_v42, %v6023_v43 }
0x19ce   : > { %v2845_v48 = vpop.permute.xlu1 %2844 }
0x19cf   : > { %v3017_v47 = vsel %vm404_vm2, %v2874_v45, 0  ;;  %v2850_v49 = vpack.c.bf16 %v2845_v48, %v2845_v48 }
0x19d0   : > { %5680 = vmatpush3.bf16.xpose.msra.mxu1 %v3017_v47 }
0x19d1   : > { %5691 = vmatprep.subr.bf16.mxu1 %v6281_v17 }
0x19d7   : > { %5682 = vmatmul.mubr.msk.bf16.vlgmr.msra.gmra.mrb[76].mxu1 %vm404_vm2, %v2850_v49 }
0x19d8   : > { %5693 = vmatprep.mubr.msk.bf16.mxu1 %vm6282_vm1, %v6281_v17 }
0x1a29   : > { %v2915_v50 = vpop.f32.mrb[72].mxu0 }
0x1a2a   : > { %v3059_v51 = vmul.f32 0.35355338, %v2915_v50  ;;  %v5665_v52 = vpop.f32.mrb[73].mxu0 }
0x1a2b   : > { %v2918_v44 = vpop.f32.mrb[74].mxu0  ;;  %v2832_v52 = vld [vmem:[%s7618_s0 + $0x188] sm:$0xff] }
0x1a2c   : > { %v3063_v54 = vadd.f32 %v6214_v46, %v3059_v51  ;;  %v5666_v55 = vpop.f32.mrb[75].mxu0  ;;  %v2833_v44 = vld [vmem:[%s7618_s0 + $0x190] sm:$0xff] }
0x1a2d   : > { %v3319_v55 = vpack.c.bf16 %v2833_v44, %v2832_v52 }
0x1a2e   : > { %v3067_v60 = vsel %vm624_vm3, %v3063_v54, -inf }
0x1a2f   : > { %3068 = vmax.xlane.f32.xlu0 %v3067_v60 }
0x1a9c   : > { %v2961_v62 = vpop.f32.mrb[72].mxu1  ;;  %v3007_v1 = vpop.f32.mrb[76].mxu0 }
0x1a9d   : > { %v3060_v2 = vmul.f32 0.35355338, %v2961_v62  ;;  %v3061_v61 = vmul.f32 0.35355338, %v3007_v1  ;;  %v5671_v0 = vpop.f32.mrb[73].mxu1  ;;  %v5677_v3 = vpop.f32.mrb[77].mxu0 }
0x1a9e   : > { %v2964_v9 = vpop.f32.mrb[74].mxu1  ;;  %v3010_v63 = vpop.f32.mrb[78].mxu0  ;;  %v2835_v0 = vld [vmem:[%s7618_s0 + $0x1a0] sm:$0xff] }
0x1a9f   : > { %v3064_v4 = vadd.f32 %v6214_v46, %v3060_v2  ;;  %v3065_v5 = vadd.f32 %v6214_v46, %v3061_v61  ;;  %v5672_v41 = vpop.f32.mrb[75].mxu1  ;;  %v5678_v59 = vpop.f32.mrb[79].mxu0  ;;  %v2834_v61 = vld [vmem:[%s7618_s0 + $0x198] sm:$0xff] }
0x1aa0   : > { %v3320_v9 = vpack.c.bf16 %v2835_v0, %v2834_v61  ;;  %v3400_v0 = vld [vmem:[%s7618_s0 + $0x1f0] sm:$0xff] }
0x1aa1   : > { %v3070_v58 = vsel %vm624_vm3, %v3064_v4, -inf  ;;  %v3073_v7 = vsel %vm624_vm3, %v3065_v5, -inf }
0x1aa2   : > { %3071 = vmax.xlane.f32.xlu1 %v3070_v58  ;;  %3074 = vmax.xlane.f32.xlu0 %v3073_v7 }
0x1aaa   : > { %v3053_v11 = vpop.f32.mrb[76].mxu1 }
0x1aab   : > { %v3062_v12 = vmul.f32 0.35355338, %v3053_v11  ;;  %v5683_v13 = vpop.f32.mrb[77].mxu1 }
0x1aac   : > { %v3056_v15 = vpop.f32.mrb[78].mxu1 }
0x1aad   : > { %v3066_v16 = vadd.f32 %v6214_v46, %v3062_v12  ;;  %v5684_v56 = vpop.f32.mrb[79].mxu1 }
0x1aaf   : > { %v3076_v10 = vsel %vm624_vm3, %v3066_v16, -inf }
0x1ab0   : > { %3077 = vmax.xlane.f32.xlu0 %v3076_v10 }
0x1ab3   : > { %3155 = vrot.lane.b32.xlu1 %v7072_v8, %s7649_s6 }
0x1ab7   : > { %3202 = vrot.lane.b32.xlu1 %v7080_v26, %s7649_s6 }
0x1abb   : > { %3249 = vrot.lane.b32.xlu1 %v2874_v45, %s7649_s6 }
0x1abc   : > { %v3069_v18 = vpop.xlane.xlu0 %3068 }
0x1abd   : > { %v3079_v19 = vsub.f32 %v3063_v54, %v3069_v18 }
0x1abf   : > { %v3083_v23 = vmul.f32 1.442695, %v3079_v19 }
0x1ac6   : > { %3108 = vrot.lane.b32.xlu0 %v7065_v14, %s7649_s6 }
0x1b2f   : > { %v3072_v20 = vpop.xlane.xlu1 %3071  ;;  %v3075_v21 = vpop.xlane.xlu0 %3074 }
0x1b30   : > { %v3080_v57 = vsub.f32 %v3064_v4, %v3072_v20  ;;  %v3081_v22 = vsub.f32 %v3065_v5, %v3075_v21 }
0x1b32   : > { %v3085_v24 = vmul.f32 1.442695, %v3080_v57  ;;  %v3087_v40 = vmul.f32 1.442695, %v3081_v22 }
0x1b33   : > { %v3156_v25 = vpop.permute.xlu1 %3155 }
0x1b34   : > { %6152 = vpow2.f32 %v3085_v24  ;;  %5692 = vmatpush3.bf16.msra.mxu1 %v3156_v25 }
0x1b35   : > { %6154 = vpow2.f32 %v3087_v40  ;;  %5703 = vmatprep.subr.bf16.mxu1 %v6281_v17 }
0x1b36   : > { %6156 = vpow2.f32 %v3083_v23 }
0x1b37   : > { %v3203_v8 = vpop.permute.xlu1 %3202 }
0x1b3b   : > { %v3250_v36 = vpop.permute.xlu1 %3249 }
0x1b3d   : > { %v3078_v26 = vpop.xlane.xlu0 %3077 }
0x1b3e   : > { %v6153_v27 = vpop.eup %6152  ;;  %v3082_v14 = vsub.f32 %v3066_v16, %v3078_v26 }
0x1b3f   : > { %v6155_v28 = vpop.eup %6154  ;;  %v3094_v32 = vsel %vm624_vm3, %v6153_v27, 0.0  ;;  %v3104_v30 = vpack.c.bf16 %v6153_v27, %v6153_v27 }
0x1b40   : > { %v6157_v31 = vpop.eup %6156  ;;  %v3089_v33 = vmul.f32 1.442695, %v3082_v14  ;;  %3095 = vadd.xlane.f32.xlu0 %v3094_v32  ;;  %v3097_v35 = vsel %vm624_vm3, %v6155_v28, 0.0  ;;  %v3105_v39 = vpack.c.bf16 %v6155_v28, %v6155_v28 }
0x1b41   : > { %3098 = vadd.xlane.f32.xlu1 %v3097_v35  ;;  %5694 = vmatmul.mubr.msk.bf16.vlgmr.msra.gmra.mrb[80].mxu1 %vm624_vm3, %v3104_v30  ;;  %v3109_v37 = vpop.permute.xlu0 %3108  ;;  %v3103_v38 = vpack.c.bf16 %v6157_v31, %v6157_v31  ;;  %v3091_v47 = vsel %vm624_vm3, %v6157_v31, 0.0 }
0x1b42   : > { %6158 = vpow2.f32 %v3089_v33  ;;  %5704 = vmatpush3.bf16.msra.mxu1 %v3250_v36  ;;  %5686 = vmatpush3.bf16.msra.mxu0 %v3109_v37 }
0x1b43   : > { %5697 = vmatprep.subr.bf16.mxu0 %v6281_v17  ;;  %5705 = vmatprep.mubr.msk.bf16.mxu1 %vm6282_vm1, %v6281_v17 }
0x1b44   : > { %5717 = vmatprep.subr.bf16.mxu1 %v6281_v17 }
0x1b45   : > { %5688 = vmatmul.mubr.msk.bf16.vlgmr.msra.gmra.mrb[80].mxu0 %vm624_vm3, %v3103_v38 }
0x1b46   : > { %5698 = vmatpush3.bf16.msra.mxu0 %v3203_v8  ;;  %5699 = vmatprep.mubr.msk.bf16.mxu0 %vm6282_vm1, %v6281_v17  ;;  %v5197_v8 = vld [vmem:[%s7618_s0 + $0x1a8] ss:$0 sm:$0xff] }
0x1b47   : > { %5709 = vmatprep.subr.bf16.mxu0 %v6281_v17 }
0x1b4c   : > { %v6159_v42 = vpop.eup %6158 }
0x1b4d   : > { %5700 = vmatmul.mubr.msk.bf16.vlgmr.msra.gmra.mrb[84].mxu0 %vm624_vm3, %v3105_v39  ;;  %v3100_v43 = vsel %vm624_vm3, %v6159_v42, 0.0  ;;  %v3106_v45 = vpack.c.bf16 %v6159_v42, %v6159_v42  ;;  %v3393_v39 = vld [vmem:[%s7618_s0 + $0x1b8] sm:$0xff]  ;;  %v3394_v42 = vld [vmem:[%s7618_s0 + $0x1c0] sm:$0xff] }
0x1b4e   : > { %3101 = vadd.xlane.f32.xlu0 %v3100_v43  ;;  %5713 = vmatprep.mubr.msk.bf16.mxu0 %vm6282_vm1, %v6281_v17  ;;  %v3395_v43 = vld [vmem:[%s7618_s0 + $0x1c8] sm:$0xff] }
0x1b4f   : > { %5706 = vmatmul.mubr.msk.bf16.vlgmr.msra.gmra.mrb[84].mxu1 %vm624_vm3, %v3106_v45  ;;  %5710 = vmatpush3.bf16.msra.mxu0 %v3319_v55  ;;  %v3396_v45 = vld [vmem:[%s7618_s0 + $0x1d0] sm:$0xff] }
0x1b50   : > { %5721 = vmatprep.mubr.msk.bf16.mxu1 %vm6282_vm1, %v6281_v17  ;;  %5711 = vmatprep.subr.bf16.mxu0 %v6281_v17 }
0x1b52   : > { %3092 = vadd.xlane.f32.xlu0 %v3091_v47  ;;  %v3409_v47 = vpack.c.bf16 %v3396_v45, %v3395_v43 }
0x1b53   : > { %5712 = vmatpush3.bf16.msra.mxu0 %v3320_v9 }
0x1b54   : > { %5725 = vmatprep.subr.bf16.mxu0 %v6281_v17 }
0x1bcd   : > { %v3096_v48 = vpop.xlane.xlu0 %3095 }
0x1bce   : > { %6160 = vrcp.f32 %v3096_v48  ;;  %v3099_v49 = vpop.xlane.xlu1 %3098 }
0x1bcf   : > { %6162 = vrcp.f32 %v3099_v49 }
0x1bd8   : > { %v6161_v50 = vpop.eup %6160 }
0x1bd9   : > { %v6163_v5 = vpop.eup %6162 }
0x1bdb   : > { %v3102_v62 = vpop.xlane.xlu0 %3101 }
0x1bdc   : > { %6164 = vrcp.f32 %v3102_v62 }
0x1bdf   : > { %v3093_v18 = vpop.xlane.xlu0 %3092 }
0x1be0   : > { %6166 = vrcp.f32 %v3093_v18 }
0x1be6   : > { %v6165_v15 = vpop.eup %6164 }
0x1bea   : > { %v6167_v19 = vpop.eup %6166 }
0x1c14   : > { %v3195_v51 = vpop.f32.mrb[80].mxu1 }
0x1c15   : > { %v3300_v46 = vmul.f32 %v6161_v50, %v3195_v51  ;;  %v5695_v54 = vpop.f32.mrb[81].mxu1  ;;  %v3369_v51 = vld [vmem:[%s7618_s0 + $0x1b0] sm:$0x3] }
0x1c16   : > { %v3198_v60 = vpop.f32.mrb[82].mxu1  ;;  %v3386_v52 = vrot.slane %v3369_v51, %v6402_v29  ;;  %v3391_v54 = vrot.slane %v3369_v51, %v6408_v34 }
0x1c17   : > { %v5696_v1 = vpop.f32.mrb[83].mxu1  ;;  %3304 = vrot.lane.b32.xlu0 %v3300_v46, %s7647_s30 }
0x1c18   : > { %v3148_v2 = vpop.f32.mrb[80].mxu0  ;;  %v3398_v1 = vld [vmem:[%s7618_s0 + $0x1e0] sm:$0xff] }
0x1c19   : > { %v5689_v3 = vpop.f32.mrb[81].mxu0  ;;  %v3299_v57 = vmul.f32 %v6167_v19, %v3148_v2  ;;  %v3399_v2 = vld [vmem:[%s7618_s0 + $0x1e8] sm:$0xff] }
0x1c1a   : > { %v3151_v63 = vpop.f32.mrb[82].mxu0  ;;  %v3467_v61 = vpack.c.bf16 %v3399_v2, %v3398_v1  ;;  %v3401_v3 = vld [vmem:[%s7618_s0 + $0x1f8] sm:$0xff] }
0x1c1b   : > { %v5690_v4 = vpop.f32.mrb[83].mxu0  ;;  %v3468_v9 = vpack.c.bf16 %v3401_v3, %v3400_v0  ;;  %v3402_v63 = vld [vmem:[%s7618_s0 + $0x200] sm:$0xff] }
0x1c1c   : > { %v3403_v4 = vld [vmem:[%s7618_s0 + $0x208] sm:$0xff] }
0x1c20   : > { %v3242_v41 = vpop.f32.mrb[84].mxu0 }
0x1c21   : > { %v3301_v59 = vmul.f32 %v6163_v5, %v3242_v41  ;;  %v5701_v58 = vpop.f32.mrb[85].mxu0  ;;  %v3469_v5 = vpack.c.bf16 %v3403_v4, %v3402_v63  ;;  %v3404_v41 = vld [vmem:[%s7618_s0 + $0x210] sm:$0xff] }
0x1c22   : > { %v3245_v7 = vpop.f32.mrb[86].mxu0  ;;  %v3289_v11 = vpop.f32.mrb[84].mxu1 }
0x1c23   : > { %v5707_v12 = vpop.f32.mrb[85].mxu1  ;;  %3308 = vrot.lane.b32.xlu1 %v3301_v59, %s7643_s15  ;;  %v5702_v13 = vpop.f32.mrb[87].mxu0  ;;  %v3302_v56 = vmul.f32 %v6165_v15, %v3289_v11  ;;  %v3405_v59 = vld [vmem:[%s7618_s0 + $0x218] sm:$0xff] }
0x1c24   : > { %v3292_v16 = vpop.f32.mrb[86].mxu1  ;;  %v3470_v58 = vpack.c.bf16 %v3405_v59, %v3404_v41  ;;  %v5199_v7 = vld [vmem:[%s7618_s0 + $0x1d8] ss:$0 sm:$0xff] }
0x1c25   : > { %v5708_v10 = vpop.f32.mrb[87].mxu1 }
0x1c27   : > { %3312 = vrot.lane.b32.xlu1 %v3302_v56, %s7644_s16 }
0x1c89   : > { %v3305_v20 = vpop.permute.xlu0 %3304 }
0x1c8a   : > { %v3315_v22 = vsel %vm404_vm2, %v3299_v57, %v3305_v20 }
0x1c95   : > { %v3309_v21 = vpop.permute.xlu1 %3308 }
0x1c96   : > { %v3316_v23 = vsel %vm624_vm3, %v3315_v22, %v3309_v21 }
0x1c99   : > { %v3313_v24 = vpop.permute.xlu1 %3312 }
0x1c9a   : > { %v3317_v40 = vsel %vm933_vm4, %v3316_v23, %v3313_v24 }
0x1c9b   : > { %v3318_v25 = vpack.c.bf16 %v3317_v40, %v3317_v40  ;;  %v5201_v40 = vld [vmem:[%s7618_s0 + $0x220] ss:$0 sm:$0xff] }
0x1c9d   : > { %5714 = vmatmul.mubr.msk.bf16.vlgmr.msra.gmra.mrb[88].mxu0 %vm276_vm0, %v3318_v25 }
0x1c9e   : > { %5733 = vmatprep.mubr.msk.bf16.mxu0 %vm6282_vm1, %v6281_v17  ;;  %5726 = vmatpush3.bf16.msra.mxu0 %v3467_v61 }
0x1c9f   : > { %5727 = vmatprep.subr.bf16.mxu0 %v6281_v17 }
0x1ca2   : > { %5728 = vmatpush3.bf16.msra.mxu0 %v3468_v9 }
0x1ca3   : > { %5729 = vmatprep.subr.bf16.mxu0 %v6281_v17 }
0x1ca6   : > { %5730 = vmatpush3.bf16.msra.mxu0 %v3469_v5 }
0x1ca7   : > { %5731 = vmatprep.subr.bf16.mxu0 %v6281_v17 }
0x1caa   : > { %5732 = vmatpush3.bf16.msra.mxu0 %v3470_v58 }
0x1cab   : > { %5751 = vmatprep.subr.bf16.mxu0 %v6281_v17 }
0x1d70   : > { %v3362_v26 = vpop.f32.mrb[88].mxu0 }
0x1d71   : > { %v3363_v27 = vadd.f32 %v5197_v8, %v3362_v26  ;;  %v5715_v14 = vpop.f32.mrb[89].mxu0 }
0x1d72   : > { %v3365_v28 = vpop.f32.mrb[90].mxu0 }
0x1d73   : > { %v3368_v32 = vadd.f32 %v3363_v27, %v7055_v6  ;;  %v5716_v30 = vpop.f32.mrb[91].mxu0  ;;  %v3408_v6 = vpack.c.bf16 %v3394_v42, %v3393_v39  ;;  %v3545_v42 = vld [vmem:[%s7618_s0 + $0x310] sm:$0xff] }
0x1d75   : > { %v3370_v31 = vsel %vm276_vm0, %v3368_v32, 0.0  ;;  %5718 = vmatpush3.bf16.msra.mxu1 %v3408_v6  ;;  %v3546_v6 = vld [vmem:[%s7618_s0 + $0x318] sm:$0xff] }
0x1d76   : > { %3371 = vadd.xlane.f32.xlu1 %v3370_v31  ;;  %5719 = vmatprep.subr.bf16.mxu1 %v6281_v17  ;;  %v3549_v43 = vpack.c.bf16 %v3546_v6, %v3545_v42 }
0x1d79   : > { %5720 = vmatpush3.bf16.msra.mxu1 %v3409_v47 }
0x1d7a   : > { %5737 = vmatprep.subr.bf16.mxu1 %v6281_v17 }
0x1e03   : > { %v3372_v33 = vpop.xlane.xlu1 %3371 }
0x1e04   : > { %v3373_v35 = vmul.f32 0.03125, %v3372_v33 }
0x1e06   : > { %v3374_v36 = vsub.f32 %v3368_v32, %v3373_v35 }
0x1e08   : > { %v3375_v37 = vmul.f32 %v3374_v36, %v3374_v36 }
0x1e0a   : > { %v3376_v38 = vsel %vm276_vm0, %v3375_v37, 0.0  ;;  %v3543_v37 = vld [vmem:[%s7618_s0 + $0x300] sm:$0xff] }
0x1e0b   : > { %3377 = vadd.xlane.f32.xlu0 %v3376_v38  ;;  %v3544_v38 = vld [vmem:[%s7618_s0 + $0x308] sm:$0xff] }
0x1e0c   : > { %v3548_v39 = vpack.c.bf16 %v3544_v38, %v3543_v37 }
0x1e98   : > { %v3378_v48 = vpop.xlane.xlu0 %3377 }
0x1e99   : > { %v3379_v49 = vmul.f32 0.03125, %v3378_v48 }
0x1e9b   : > { %v3380_v50 = vadd.f32 1e-05, %v3379_v49  ;;  %v3519_v49 = vld [vmem:[%s7618_s0 + $0x228] sm:$0x3] }
0x1e9d   : > { %6168 = vrsqrt.f32 %v3380_v50  ;;  %v3536_v50 = vrot.slane %v3519_v49, %v6402_v29 }
0x1ea7   : > { %v6169_v44 = vpop.eup %6168 }
0x1ea8   : > { %v3382_v46 = vmul.f32 %v6169_v44, %v3374_v36  ;;  %v3541_v44 = vrot.slane %v3519_v49, %v6408_v34 }
0x1eaa   : > { %v3387_v55 = vmul.f32 %v3386_v52, %v3382_v46 }
0x1eac   : > { %v3392_v60 = vadd.f32 %v3391_v54, %v3387_v55 }
0x1eae   : > { %v3407_v62 = vpack.c.bf16 %v3392_v60, %v3392_v60 }
0x1eb0   : > { %5722 = vmatmul.mubr.msk.bf16.vlgmr.msra.gmra.mrb[88].mxu1 %vm276_vm0, %v3407_v62 }
0x1eb1   : > { %5741 = vmatprep.mubr.msk.bf16.mxu1 %vm6282_vm1, %v6281_v17  ;;  %5738 = vmatpush3.bf16.msra.mxu1 %v3548_v39 }
0x1eb2   : > { %5739 = vmatprep.subr.bf16.mxu1 %v6281_v17 }
0x1eb5   : > { %5740 = vmatpush3.bf16.msra.mxu1 %v3549_v43 }
0x1eb6   : > { %5745 = vmatprep.subr.bf16.mxu1 %v6281_v17 }
0x1f83   : > { %v3451_v11 = vpop.f32.mrb[88].mxu1 }
0x1f84   : > { %v3452_v12 = vadd.f32 %v5199_v7, %v3451_v11  ;;  %v5723_v13 = vpop.f32.mrb[89].mxu1 }
0x1f85   : > { %v3454_v15 = vpop.f32.mrb[90].mxu1 }
0x1f86   : > { %v3457_v16 = vmul.f32 %v3452_v12, %v3452_v12  ;;  %v5724_v56 = vpop.f32.mrb[91].mxu1 }
0x1f88   : > { %v3458_v10 = vmul.f32 %v3457_v16, %v3452_v12 }
0x1f8a   : > { %v3459_v18 = vmul.f32 0.044715, %v3458_v10 }
0x1f8c   : > { %v3460_v19 = vadd.f32 %v3459_v18, %v3452_v12 }
0x1f8e   : > { %v3461_v20 = vmul.f32 0.7978846, %v3460_v19 }
0x1f90   : > { %6170 = vtanh.f32 %v3461_v20 }
0x1f9a   : > { %v6171_v21 = vpop.eup %6170 }
0x1f9b   : > { %v3463_v57 = vadd.f32 1.0, %v6171_v21  ;;  %v6215_v21 = vld [vmem:[%s6938_s12] sm:$0xff]  ;;  %s5236_s12 = sshll.u32 %s6343_s22, 7 }
0x1f9c   : > { %s7576_s17 = scalar_lea.hbm %s7623_s5, %s5236_s12 }
0x1f9d   : > { %v3464_v22 = vmul.f32 0.5, %v3463_v57 }
0x1f9f   : > { %v3465_v23 = vmul.f32 %v3464_v22, %v3452_v12 }
0x1fa1   : > { %v3466_v24 = vpack.c.bf16 %v3465_v23, %v3465_v23 }
0x1fa3   : > { %5734 = vmatmul.mubr.msk.bf16.vlgmr.msra.gmra.mrb[92].mxu0 %vm1120_vm5, %v3466_v24 }
0x1fa4   : > { %5753 = vmatprep.mubr.msk.bf16.mxu0 %vm6282_vm1, %v6281_v17 }
0x2076   : > { %v3512_v25 = vpop.f32.mrb[92].mxu0 }
0x2077   : > { %v3513_v8 = vadd.f32 %v5201_v40, %v3512_v25  ;;  %v5735_v26 = vpop.f32.mrb[93].mxu0 }
0x2078   : > { %v3515_v27 = vpop.f32.mrb[94].mxu0 }
0x2079   : > { %v3518_v14 = vadd.f32 %v3513_v8, %v3392_v60  ;;  %v5736_v28 = vpop.f32.mrb[95].mxu0  ;;  %v5203_v60 = vld [vmem:[%s7618_s0 + $0x320] ss:$0 sm:$0xff] }
0x207b   : > { %v3520_v32 = vsel %vm276_vm0, %v3518_v14, 0.0 }
0x207c   : > { %3521 = vadd.xlane.f32.xlu0 %v3520_v32 }
0x2109   : > { %v3522_v30 = vpop.xlane.xlu0 %3521 }
0x210a   : > { %v3523_v31 = vmul.f32 0.03125, %v3522_v30 }
0x210c   : > { %v3524_v33 = vsub.f32 %v3518_v14, %v3523_v31 }
0x210e   : > { %v3525_v35 = vmul.f32 %v3524_v33, %v3524_v33 }
0x2110   : > { %v3526_v36 = vsel %vm276_vm0, %v3525_v35, 0.0 }
0x2111   : > { %3527 = vadd.xlane.f32.xlu0 %v3526_v36 }
0x219e   : > { %v3528_v45 = vpop.xlane.xlu0 %3527 }
0x219f   : > { %v3529_v47 = vmul.f32 0.03125, %v3528_v45 }
0x21a1   : > { %v3530_v48 = vadd.f32 1e-05, %v3529_v47 }
0x21a3   : > { %6172 = vrsqrt.f32 %v3530_v48 }
0x21ad   : > { %v6173_v51 = vpop.eup %6172 }
0x21ae   : > { %v3532_v52 = vmul.f32 %v6173_v51, %v3524_v33 }
0x21b0   : > { %v3537_v46 = vmul.f32 %v3536_v50, %v3532_v52 }
0x21b2   : > { %v7244_v54 = vadd.f32 %v3541_v44, %v3537_v46 }
0x21b4   : > { %v3547_v55 = vpack.c.bf16 %v7244_v54, %v7244_v54 }
0x21b6   : > { %5742 = vmatmul.mubr.msk.bf16.vlgmr.msra.gmra.mrb[92].mxu1 %vm276_vm0, %v3547_v55 }
0x21b7   : > { %5747 = vmatprep.mubr.msk.bf16.mxu1 %vm6282_vm1, %v6281_v17 }
0x2289   : > { %v3592_v62 = vpop.f32.mrb[92].mxu1 }
0x228a   : > { %v3593_v1 = vadd.f32 %v5203_v60, %v3592_v62  ;;  %v5743_v2 = vpop.f32.mrb[93].mxu1 }
0x228b   : > { %v3595_v61 = vpop.f32.mrb[94].mxu1 }
0x228c   : > { %3607 = vrot.lane.b32.xlu0 %v3593_v1, %s7650_s7  ;;  %3604 = vrot.lane.b32.xlu1 %v3593_v1, %s7651_s8  ;;  %v5744_v0 = vpop.f32.mrb[95].mxu1  ;;  %v7257_v3 = vpack.c.bf16 %v3593_v1, %v3593_v1 }
0x2290   : > { %3610 = vrot.lane.b32.xlu1 %v3593_v1, %s7648_s9 }
0x2294   : > { %3618 = vrot.lane.b32.xlu1 %v7257_v3, %s7649_s6 }
0x22fe   : > { %v3608_v9 = vpop.permute.xlu0 %3607  ;;  %v3605_v63 = vpop.permute.xlu1 %3604 }
0x22ff   : > { %v7261_v4 = vpack.c.bf16 %v3608_v9, %v3608_v9  ;;  %v3614_v5 = vpack.c.bf16 %v3605_v63, %v3605_v63 }
0x2301   : > { %3716 = vrot.lane.b32.xlu0 %v7261_v4, %s7649_s6  ;;  %3667 = vrot.lane.b32.xlu1 %v3614_v5, %s7649_s6 }
0x2302   : > { %v3611_v41 = vpop.permute.xlu1 %3610 }
0x2303   : > { %v3616_v59 = vpack.c.bf16 %v3611_v41, %v3611_v41 }
0x2305   : > { %3765 = vrot.lane.b32.xlu1 %v3616_v59, %s7649_s6 }
0x2306   : > { %v3619_v58 = vpop.permute.xlu1 %3618 }
0x2307   : > { %v3624_v7 = vsel %vm404_vm2, %v3619_v58, 0 }
0x2308   : > { %5746 = vmatpush3.bf16.xpose.msra.mxu1 %v3624_v7 }
0x2309   : > { %5757 = vmatprep.subr.bf16.mxu1 %v6281_v17 }
0x230f   : > { %5748 = vmatmul.mubr.msk.bf16.vlgmr.msra.gmra.mrb[96].mxu1 %vm404_vm2, %v7257_v3 }
0x2310   : > { %5759 = vmatprep.mubr.msk.bf16.mxu1 %vm6282_vm1, %v6281_v17 }
0x2373   : > { %v3717_v11 = vpop.permute.xlu0 %3716  ;;  %v3668_v12 = vpop.permute.xlu1 %3667 }
0x2374   : > { %v3722_v13 = vsel %vm404_vm2, %v3717_v11, 0  ;;  %v3673_v15 = vsel %vm404_vm2, %v3668_v12, 0 }
0x2375   : > { %5752 = vmatpush3.bf16.xpose.msra.mxu0 %v3673_v15  ;;  %5758 = vmatpush3.bf16.xpose.msra.mxu1 %v3722_v13 }
0x2376   : > { %5763 = vmatprep.subr.bf16.mxu0 %v6281_v17  ;;  %5769 = vmatprep.subr.bf16.mxu1 %v6281_v17 }
0x2377   : > { %v3766_v16 = vpop.permute.xlu1 %3765 }
0x2378   : > { %v3771_v56 = vsel %vm404_vm2, %v3766_v16, 0 }
0x237c   : > { %5754 = vmatmul.mubr.msk.bf16.vlgmr.msra.gmra.mrb[96].mxu0 %vm404_vm2, %v3614_v5  ;;  %5760 = vmatmul.mubr.msk.bf16.vlgmr.msra.gmra.mrb[100].mxu1 %vm404_vm2, %v7261_v4 }
0x237d   : > { %5764 = vmatpush3.bf16.xpose.msra.mxu0 %v3771_v56  ;;  %5765 = vmatprep.mubr.msk.bf16.mxu0 %vm6282_vm1, %v6281_v17 }
0x237e   : > { %5775 = vmatprep.subr.bf16.mxu0 %v6281_v17  ;;  %5771 = vmatprep.mubr.msk.bf16.mxu1 %vm6282_vm1, %v6281_v17 }
0x2384   : > { %5766 = vmatmul.mubr.msk.bf16.vlgmr.msra.gmra.mrb[100].mxu0 %vm404_vm2, %v3616_v59 }
0x2385   : > { %5777 = vmatprep.mubr.msk.bf16.mxu0 %vm6282_vm1, %v6281_v17 }
0x23e2   : > { %v3660_v10 = vpop.f32.mrb[96].mxu1 }
0x23e3   : > { %v3813_v18 = vmul.f32 0.35355338, %v3660_v10  ;;  %v5749_v19 = vpop.f32.mrb[97].mxu1 }
0x23e4   : > { %v3663_v20 = vpop.f32.mrb[98].mxu1 }
0x23e5   : > { %v3817_v57 = vadd.f32 %v6215_v21, %v3813_v18  ;;  %v5750_v22 = vpop.f32.mrb[99].mxu1 }
0x23e7   : > { %v3821_v23 = vsel %vm404_vm2, %v3817_v57, -inf }
0x23e8   : > { %3822 = vmax.xlane.f32.xlu0 %v3821_v23 }
0x244f   : > { %v3709_v24 = vpop.f32.mrb[96].mxu0  ;;  %v3758_v40 = vpop.f32.mrb[100].mxu1 }
0x2450   : > { %v3814_v25 = vmul.f32 0.35355338, %v3709_v24  ;;  %v3815_v8 = vmul.f32 0.35355338, %v3758_v40  ;;  %v5755_v26 = vpop.f32.mrb[97].mxu0  ;;  %v5761_v27 = vpop.f32.mrb[101].mxu1 }
0x2451   : > { %v3712_v14 = vpop.f32.mrb[98].mxu0  ;;  %v3761_v28 = vpop.f32.mrb[102].mxu1 }
0x2452   : > { %v3818_v32 = vadd.f32 %v6215_v21, %v3814_v25  ;;  %v3819_v30 = vadd.f32 %v6215_v21, %v3815_v8  ;;  %v5756_v31 = vpop.f32.mrb[99].mxu0  ;;  %v5762_v33 = vpop.f32.mrb[103].mxu1  ;;  %v3600_v25 = vld [vmem:[%s7618_s0 + $0x338] sm:$0xff]  ;;  %v3601_v8 = vld [vmem:[%s7618_s0 + $0x340] sm:$0xff] }
0x2453   : > { %v4078_v28 = vpack.c.bf16 %v3601_v8, %v3600_v25  ;;  %v4151_v25 = vld [vmem:[%s7618_s0 + $0x358] sm:$0xff]  ;;  %v4152_v8 = vld [vmem:[%s7618_s0 + $0x360] sm:$0xff] }
0x2454   : > { %v3827_v35 = vsel %vm404_vm2, %v3819_v30, -inf  ;;  %v3824_v36 = vsel %vm404_vm2, %v3818_v32, -inf }
0x2455   : > { %3828 = vmax.xlane.f32.xlu0 %v3827_v35  ;;  %3825 = vmax.xlane.f32.xlu1 %v3824_v36 }
0x2457   : > { %v3807_v37 = vpop.f32.mrb[100].mxu0 }
0x2458   : > { %v3816_v38 = vmul.f32 0.35355338, %v3807_v37  ;;  %v5767_v39 = vpop.f32.mrb[101].mxu0 }
0x2459   : > { %v3810_v42 = vpop.f32.mrb[102].mxu0 }
0x245a   : > { %v3820_v6 = vadd.f32 %v6215_v21, %v3816_v38  ;;  %v5768_v43 = vpop.f32.mrb[103].mxu0  ;;  %v3598_v21 = vld [vmem:[%s7618_s0 + $0x328] sm:$0xff] }
0x245c   : > { %v3830_v45 = vsel %vm404_vm2, %v3820_v6, -inf }
0x245d   : > { %3831 = vmax.xlane.f32.xlu0 %v3830_v45 }
0x2466   : > { %3909 = vrot.lane.b32.xlu1 %v3614_v5, %s7645_s13 }
0x246a   : > { %3957 = vrot.lane.b32.xlu1 %v7261_v4, %s7645_s13 }
0x246e   : > { %4005 = vrot.lane.b32.xlu1 %v3616_v59, %s7645_s13 }
0x2473   : > { %3861 = vrot.lane.b32.xlu0 %v7257_v3, %s7645_s13 }
0x2475   : > { %v3823_v47 = vpop.xlane.xlu0 %3822 }
0x2476   : > { %v3833_v48 = vsub.f32 %v3817_v57, %v3823_v47  ;;  %v3599_v57 = vld [vmem:[%s7618_s0 + $0x330] sm:$0xff] }
0x2477   : > { %v4077_v22 = vpack.c.bf16 %v3599_v57, %v3598_v21 }
0x2478   : > { %v3837_v49 = vmul.f32 1.442695, %v3833_v48 }
0x247a   : > { %6174 = vpow2.f32 %v3837_v49 }
0x2484   : > { %v6175_v3 = vpop.eup %6174 }
0x2485   : > { %v3857_v5 = vpack.c.bf16 %v6175_v3, %v6175_v3  ;;  %v3845_v18 = vsel %vm404_vm2, %v6175_v3, 0.0 }
0x24e2   : > { %v3829_v50 = vpop.xlane.xlu0 %3828  ;;  %v3826_v51 = vpop.xlane.xlu1 %3825 }
0x24e3   : > { %v3835_v52 = vsub.f32 %v3819_v30, %v3829_v50  ;;  %v3834_v44 = vsub.f32 %v3818_v32, %v3826_v51 }
0x24e5   : > { %v3841_v46 = vmul.f32 1.442695, %v3835_v52  ;;  %v3839_v55 = vmul.f32 1.442695, %v3834_v44 }
0x24e6   : > { %v3910_v60 = vpop.permute.xlu1 %3909 }
0x24e7   : > { %6176 = vpow2.f32 %v3841_v46  ;;  %v3915_v62 = vsel %vm2435_vm6, %v3910_v60, 0  ;;  %v4206_v60 = vld [vmem:[%s7618_s0 + $0x380] sm:$0xff] }
0x24e8   : > { %6178 = vpow2.f32 %v3839_v55  ;;  %5776 = vmatpush3.bf16.msra.mxu0 %v3915_v62  ;;  %v4207_v62 = vld [vmem:[%s7618_s0 + $0x388] sm:$0xff] }
0x24e9   : > { %5787 = vmatprep.subr.bf16.mxu0 %v6281_v17  ;;  %v4210_v3 = vpack.c.bf16 %v4207_v62, %v4206_v60 }
0x24ea   : > { %v3832_v1 = vpop.xlane.xlu0 %3831  ;;  %v3958_v61 = vpop.permute.xlu1 %3957 }
0x24eb   : > { %v3836_v2 = vsub.f32 %v3820_v6, %v3832_v1  ;;  %v3963_v7 = vsel %vm2435_vm6, %v3958_v61, 0 }
0x24ed   : > { %v3843_v0 = vmul.f32 1.442695, %v3836_v2 }
0x24ee   : > { %v3862_v9 = vpop.permute.xlu0 %3861  ;;  %v4006_v59 = vpop.permute.xlu1 %4005 }
0x24ef   : > { %6180 = vpow2.f32 %v3843_v0  ;;  %v3867_v63 = vsel %vm2435_vm6, %v3862_v9, 0  ;;  %v4011_v13 = vsel %vm2435_vm6, %v4006_v59, 0 }
0x24f0   : > { %5770 = vmatpush3.bf16.msra.mxu1 %v3867_v63  ;;  %v4208_v63 = vld [vmem:[%s7618_s0 + $0x390] sm:$0xff] }
0x24f1   : > { %v6177_v4 = vpop.eup %6176  ;;  %5781 = vmatprep.subr.bf16.mxu1 %v6281_v17 }
0x24f2   : > { %v6179_v41 = vpop.eup %6178  ;;  %v3851_v58 = vsel %vm404_vm2, %v6177_v4, 0.0  ;;  %v3859_v16 = vpack.c.bf16 %v6177_v4, %v6177_v4  ;;  %v4209_v4 = vld [vmem:[%s7618_s0 + $0x398] sm:$0xff] }
0x24f3   : > { %3852 = vadd.xlane.f32.xlu1 %v3851_v58  ;;  %v3848_v11 = vsel %vm404_vm2, %v6179_v41, 0.0  ;;  %5772 = vmatmul.mubr.msk.bf16.vlgmr.msra.gmra.mrb[104].mxu1 %vm404_vm2, %v3857_v5  ;;  %v3858_v12 = vpack.c.bf16 %v6179_v41, %v6179_v41  ;;  %v4211_v5 = vpack.c.bf16 %v4209_v4, %v4208_v63  ;;  %v5213_v41 = vld [vmem:[%s7618_s0 + $0x348] ss:$0 sm:$0xff] }
0x24f4   : > { %3849 = vadd.xlane.f32.xlu0 %v3848_v11  ;;  %5782 = vmatpush3.bf16.msra.mxu1 %v3963_v7 }
0x24f5   : > { %5778 = vmatmul.mubr.msk.bf16.vlgmr.msra.gmra.mrb[104].mxu0 %vm404_vm2, %v3858_v12  ;;  %5783 = vmatprep.mubr.msk.bf16.mxu1 %vm6282_vm1, %v6281_v17 }
0x24f6   : > { %5788 = vmatpush3.bf16.msra.mxu0 %v4011_v13  ;;  %5789 = vmatprep.mubr.msk.bf16.mxu0 %vm6282_vm1, %v6281_v17 }
0x24f7   : > { %5793 = vmatprep.subr.bf16.mxu1 %v6281_v17  ;;  %5801 = vmatprep.subr.bf16.mxu0 %v6281_v17 }
0x24f9   : > { %v6181_v15 = vpop.eup %6180 }
0x24fa   : > { %v3854_v56 = vsel %vm404_vm2, %v6181_v15, 0.0  ;;  %v3860_v10 = vpack.c.bf16 %v6181_v15, %v6181_v15 }
0x24fb   : > { %3855 = vadd.xlane.f32.xlu0 %v3854_v56  ;;  %5784 = vmatmul.mubr.msk.bf16.vlgmr.msra.gmra.mrb[108].mxu1 %vm404_vm2, %v3859_v16 }
0x24fc   : > { %5797 = vmatprep.mubr.msk.bf16.mxu1 %vm6282_vm1, %v6281_v17  ;;  %5794 = vmatpush3.bf16.msra.mxu1 %v4077_v22 }
0x24fd   : > { %5790 = vmatmul.mubr.msk.bf16.vlgmr.msra.gmra.mrb[108].mxu0 %vm404_vm2, %v3860_v10  ;;  %5795 = vmatprep.subr.bf16.mxu1 %v6281_v17 }
0x24fe   : > { %5805 = vmatprep.mubr.msk.bf16.mxu0 %vm6282_vm1, %v6281_v17 }
0x24ff   : > { %3846 = vadd.xlane.f32.xlu0 %v3845_v18 }
0x2500   : > { %5796 = vmatpush3.bf16.msra.mxu1 %v4078_v28 }
0x2501   : > { %5809 = vmatprep.subr.bf16.mxu1 %v6281_v17 }
0x2580   : > { %v3853_v20 = vpop.xlane.xlu1 %3852 }
0x2581   : > { %v3850_v19 = vpop.xlane.xlu0 %3849 }
0x2582   : > { %6182 = vrcp.f32 %v3850_v19 }
0x2583   : > { %6184 = vrcp.f32 %v3853_v20 }
0x2588   : > { %v3856_v23 = vpop.xlane.xlu0 %3855 }
0x2589   : > { %6186 = vrcp.f32 %v3856_v23 }
0x258c   : > { %v6183_v26 = vpop.eup %6182  ;;  %v3847_v51 = vpop.xlane.xlu0 %3846 }
0x258d   : > { %v6185_v36 = vpop.eup %6184  ;;  %6188 = vrcp.f32 %v3847_v51 }
0x2593   : > { %v6187_v47 = vpop.eup %6186 }
0x2597   : > { %v6189_v52 = vpop.eup %6188 }
0x25c6   : > { %v3903_v24 = vpop.f32.mrb[104].mxu1 }
0x25c7   : > { %v5773_v40 = vpop.f32.mrb[105].mxu1  ;;  %v4057_v55 = vmul.f32 %v6189_v52, %v3903_v24 }
0x25c8   : > { %v3951_v27 = vpop.f32.mrb[104].mxu0  ;;  %v3906_v14 = vpop.f32.mrb[106].mxu1 }
0x25c9   : > { %v4058_v32 = vmul.f32 %v6183_v26, %v3951_v27  ;;  %v5779_v30 = vpop.f32.mrb[105].mxu0  ;;  %v5774_v31 = vpop.f32.mrb[107].mxu1  ;;  %v4156_v26 = vpack.c.bf16 %v4152_v8, %v4151_v25  ;;  %v4153_v27 = vld [vmem:[%s7618_s0 + $0x368] sm:$0xff]  ;;  %v4154_v14 = vld [vmem:[%s7618_s0 + $0x370] sm:$0xff] }
0x25ca   : > { %v3954_v33 = vpop.f32.mrb[106].mxu0  ;;  %v4157_v28 = vpack.c.bf16 %v4154_v14, %v4153_v27 }
0x25cb   : > { %4062 = vrot.lane.b32.xlu0 %v4058_v32, %s7647_s30  ;;  %v5780_v35 = vpop.f32.mrb[107].mxu0  ;;  %5802 = vmatpush3.bf16.msra.mxu0 %v4156_v26 }
0x25cc   : > { %5803 = vmatprep.subr.bf16.mxu0 %v6281_v17 }
0x25ce   : > { %v3999_v37 = vpop.f32.mrb[108].mxu1 }
0x25cf   : > { %v4059_v38 = vmul.f32 %v6185_v36, %v3999_v37  ;;  %v5785_v39 = vpop.f32.mrb[109].mxu1  ;;  %5804 = vmatpush3.bf16.msra.mxu0 %v4157_v28 }
0x25d0   : > { %v4047_v42 = vpop.f32.mrb[108].mxu0  ;;  %v4002_v6 = vpop.f32.mrb[110].mxu1  ;;  %5817 = vmatprep.subr.bf16.mxu0 %v6281_v17  ;;  %v4127_v39 = vld [vmem:[%s7618_s0 + $0x350] sm:$0x3] }
0x25d1   : > { %v5791_v43 = vpop.f32.mrb[109].mxu0  ;;  %4066 = vrot.lane.b32.xlu1 %v4059_v38, %s7643_s15  ;;  %v5786_v45 = vpop.f32.mrb[111].mxu1  ;;  %v4060_v49 = vmul.f32 %v6187_v47, %v4047_v42  ;;  %v4144_v42 = vrot.slane %v4127_v39, %v6402_v29 }
0x25d2   : > { %v4050_v48 = vpop.f32.mrb[110].mxu0  ;;  %v4149_v45 = vrot.slane %v4127_v39, %v6408_v34 }
0x25d3   : > { %v5792_v50 = vpop.f32.mrb[111].mxu0 }
0x25d5   : > { %4070 = vrot.lane.b32.xlu1 %v4060_v49, %s7644_s16 }
0x263d   : > { %v4063_v44 = vpop.permute.xlu0 %4062 }
0x263e   : > { %v4073_v1 = vsel %vm404_vm2, %v4057_v55, %v4063_v44 }
0x2643   : > { %v4067_v46 = vpop.permute.xlu1 %4066 }
0x2644   : > { %v4074_v2 = vsel %vm624_vm3, %v4073_v1, %v4067_v46  ;;  %v5215_v46 = vld [vmem:[%s7618_s0 + $0x378] ss:$0 sm:$0xff] }
0x2647   : > { %v4071_v61 = vpop.permute.xlu1 %4070 }
0x2648   : > { %v4075_v0 = vsel %vm933_vm4, %v4074_v2, %v4071_v61 }
0x2649   : > { %v4076_v9 = vpack.c.bf16 %v4075_v0, %v4075_v0 }
0x264b   : > { %5798 = vmatmul.mubr.msk.bf16.vlgmr.msra.gmra.mrb[112].mxu1 %vm276_vm0, %v4076_v9 }
0x264c   : > { %5810 = vmatpush3.bf16.msra.mxu1 %v4210_v3  ;;  %5813 = vmatprep.mubr.msk.bf16.mxu1 %vm6282_vm1, %v6281_v17 }
0x264d   : > { %5811 = vmatprep.subr.bf16.mxu1 %v6281_v17 }
0x2650   : > { %5812 = vmatpush3.bf16.msra.mxu1 %v4211_v5 }
0x2651   : > { %5823 = vmatprep.subr.bf16.mxu1 %v6281_v17 }
0x2653   : > { %5814 = vmatmul.mubr.msk.bf16.vlgmr.msra.gmra.mrb[116].mxu1 %vm276_vm0, %v7030_v53  ;;  %v5217_v53 = vld [vmem:[%s7618_s0 + $0x3a0] ss:$0 sm:$0xff] }
0x2654   : > { %5825 = vmatprep.mubr.msk.bf16.mxu1 %vm6282_vm1, %v6281_v17 }
0x271e   : > { %v4120_v59 = vpop.f32.mrb[112].mxu1 }
0x271f   : > { %v4121_v58 = vadd.f32 %v5213_v41, %v4120_v59  ;;  %v5799_v7 = vpop.f32.mrb[113].mxu1 }
0x2720   : > { %v4123_v11 = vpop.f32.mrb[114].mxu1 }
0x2721   : > { %v4126_v12 = vadd.f32 %v4121_v58, %v7244_v54  ;;  %v5800_v13 = vpop.f32.mrb[115].mxu1 }
0x2723   : > { %v4128_v15 = vsel %vm276_vm0, %v4126_v12, 0.0 }
0x2724   : > { %4129 = vadd.xlane.f32.xlu1 %v4128_v15 }
0x2726   : > { %v4251_v16 = vpop.f32.mrb[116].mxu1 }
0x2727   : > { %v5815_v56 = vpop.f32.mrb[117].mxu1  ;;  %v4252_v18 = vadd.f32 %v5217_v53, %v4251_v16 }
0x2728   : > { %v4254_v10 = vpop.f32.mrb[118].mxu1 }
0x2729   : > { %v4255_v19 = vadd.f32 %v5217_v53, %v4254_v10  ;;  %v5816_v20 = vpop.f32.mrb[119].mxu1 }
0x272b   : > { %v6030_v21 = vpack.i.bf16 %v4255_v19, %v4252_v18  ;;  %v4297_v57 = vpack.c.bf16 %v4255_v19, %v4252_v18  ;;  %v6216_v18 = vld [vmem:[%s6468_s14] ss:$0 sm:$0xff] }
0x272d   : > { %v4305_v50 = vsel %vm404_vm2, %v4297_v57, 0 }
0x2735   : > { %6031 = vrot.lane.b32.xlu1 %v6030_v21, %s7650_s7 }
0x27b1   : > { %v4130_v22 = vpop.xlane.xlu1 %4129 }
0x27b2   : > { %v4131_v54 = vmul.f32 0.03125, %v4130_v22 }
0x27b4   : > { %v4132_v23 = vsub.f32 %v4126_v12, %v4131_v54 }
0x27b5   : > { %v6032_v51 = vpop.permute.xlu1 %6031 }
0x27b6   : > { %v4133_v24 = vmul.f32 %v4132_v23, %v4132_v23  ;;  %v6034_v52 = vunpack.i.h.bf16 %v6032_v51  ;;  %v6033_v44 = vunpack.i.l.bf16 %v6032_v51 }
0x27b8   : > { %v4134_v40 = vsel %vm276_vm0, %v4133_v24, 0.0  ;;  %v4299_v60 = vpack.c.bf16 %v6034_v52, %v6033_v44 }
0x27b9   : > { %4135 = vadd.xlane.f32.xlu0 %v4134_v40 }
0x27ba   : > { %v4397_v3 = vsel %vm404_vm2, %v4299_v60, 0 }
0x27cf   : > { %6026 = vrot.lane.b32.xlu0 %v6030_v21, %s7651_s8 }
0x27d3   : > { %6036 = vrot.lane.b32.xlu0 %v6030_v21, %s7648_s9 }
0x2846   : > { %v4136_v32 = vpop.xlane.xlu0 %4135 }
0x2847   : > { %v4137_v30 = vmul.f32 0.03125, %v4136_v32 }
0x2849   : > { %v4138_v31 = vadd.f32 1e-05, %v4137_v30 }
0x284a   : > { %v6027_v33 = vpop.permute.xlu0 %6026 }
0x284b   : > { %6190 = vrsqrt.f32 %v4138_v31  ;;  %v6029_v35 = vunpack.i.h.bf16 %v6027_v33  ;;  %v6028_v36 = vunpack.i.l.bf16 %v6027_v33 }
0x284d   : > { %v7391_v37 = vpack.c.bf16 %v6029_v35, %v6028_v36 }
0x284e   : > { %v6037_v9 = vpop.permute.xlu0 %6036 }
0x284f   : > { %v4351_v38 = vsel %vm404_vm2, %v7391_v37, 0  ;;  %v6039_v63 = vunpack.i.h.bf16 %v6037_v9  ;;  %v6038_v4 = vunpack.i.l.bf16 %v6037_v9 }
0x2850   : > { %5824 = vmatpush3.bf16.xpose.msra.mxu1 %v4351_v38 }
0x2851   : > { %5835 = vmatprep.subr.bf16.mxu1 %v6281_v17  ;;  %v4300_v5 = vpack.c.bf16 %v6039_v63, %v6038_v4 }
0x2853   : > { %v4443_v58 = vsel %vm404_vm2, %v4300_v5, 0 }
0x2855   : > { %v6191_v6 = vpop.eup %6190 }
0x2856   : > { %v4140_v43 = vmul.f32 %v6191_v6, %v4132_v23 }
0x2858   : > { %v4145_v47 = vmul.f32 %v4144_v42, %v4140_v43 }
0x285a   : > { %v7401_v48 = vadd.f32 %v4149_v45, %v4145_v47 }
0x285c   : > { %v4155_v49 = vpack.c.bf16 %v7401_v48, %v7401_v48 }
0x285e   : > { %5806 = vmatmul.mubr.msk.bf16.vlgmr.msra.gmra.mrb[112].mxu0 %vm276_vm0, %v4155_v49 }
0x285f   : > { %5818 = vmatpush3.bf16.xpose.msra.mxu0 %v4305_v50  ;;  %5819 = vmatprep.mubr.msk.bf16.mxu0 %vm6282_vm1, %v6281_v17 }
0x2860   : > { %5829 = vmatprep.subr.bf16.mxu0 %v6281_v17 }
0x2931   : > { %v4200_v55 = vpop.f32.mrb[112].mxu0 }
0x2932   : > { %v4201_v62 = vadd.f32 %v5215_v46, %v4200_v55  ;;  %v5807_v1 = vpop.f32.mrb[113].mxu0 }
0x2933   : > { %v4203_v2 = vpop.f32.mrb[114].mxu0 }
0x2934   : > { %v4273_v61 = vpack.c.bf16 %v4201_v62, %v4201_v62  ;;  %4270 = vrot.lane.b32.xlu0 %v4201_v62, %s7648_s9  ;;  %4264 = vrot.lane.b32.xlu1 %v4201_v62, %s7651_s8  ;;  %v5808_v0 = vpop.f32.mrb[115].mxu0 }
0x2936   : > { %5820 = vmatmul.mubr.msk.bf16.vlgmr.msra.gmra.mrb[116].mxu0 %vm404_vm2, %v4273_v61 }
0x2937   : > { %5830 = vmatpush3.bf16.xpose.msra.mxu0 %v4397_v3  ;;  %5831 = vmatprep.mubr.msk.bf16.mxu0 %vm6282_vm1, %v6281_v17 }
0x2938   : > { %4267 = vrot.lane.b32.xlu1 %v4201_v62, %s7650_s7  ;;  %5841 = vmatprep.subr.bf16.mxu0 %v6281_v17 }
0x293c   : > { %4534 = vrot.lane.b32.xlu1 %v4297_v57, %s7649_s6 }
0x29a6   : > { %v4265_v41 = vpop.permute.xlu1 %4264  ;;  %v4271_v12 = vpop.permute.xlu0 %4270 }
0x29a7   : > { %v4274_v59 = vpack.c.bf16 %v4265_v41, %v4265_v41  ;;  %v4276_v15 = vpack.c.bf16 %v4271_v12, %v4271_v12 }
0x29a9   : > { %5826 = vmatmul.mubr.msk.bf16.vlgmr.msra.gmra.mrb[120].mxu1 %vm404_vm2, %v4274_v59 }
0x29aa   : > { %5836 = vmatpush3.bf16.xpose.msra.mxu1 %v4443_v58  ;;  %v4268_v7 = vpop.permute.xlu1 %4267  ;;  %5837 = vmatprep.mubr.msk.bf16.mxu1 %vm6282_vm1, %v6281_v17 }
0x29ab   : > { %v4275_v11 = vpack.c.bf16 %v4268_v7, %v4268_v7  ;;  %5847 = vmatprep.subr.bf16.mxu1 %v6281_v17 }
0x29ad   : > { %5832 = vmatmul.mubr.msk.bf16.vlgmr.msra.gmra.mrb[120].mxu0 %vm404_vm2, %v4275_v11 }
0x29ae   : > { %v4535_v13 = vpop.permute.xlu1 %4534  ;;  %5843 = vmatprep.mubr.msk.bf16.mxu0 %vm6282_vm1, %v6281_v17 }
0x29af   : > { %5842 = vmatpush3.bf16.msra.mxu0 %v4535_v13 }
0x29b0   : > { %5853 = vmatprep.subr.bf16.mxu0 %v6281_v17 }
0x29b1   : > { %5838 = vmatmul.mubr.msk.bf16.vlgmr.msra.gmra.mrb[124].mxu1 %vm404_vm2, %v4276_v15 }
0x29b2   : > { %5849 = vmatprep.mubr.msk.bf16.mxu1 %vm6282_vm1, %v6281_v17 }
0x2a09   : > { %v4341_v53 = vpop.f32.mrb[116].mxu0 }
0x2a0a   : > { %v4485_v16 = vmul.f32 0.35355338, %v4341_v53  ;;  %v5821_v56 = vpop.f32.mrb[117].mxu0 }
0x2a0b   : > { %v4344_v10 = vpop.f32.mrb[118].mxu0  ;;  %v4258_v56 = vld [vmem:[%s7618_s0 + $0x3a8] sm:$0xff] }
0x2a0c   : > { %v4489_v19 = vadd.f32 %v6216_v18, %v4485_v16  ;;  %v5822_v20 = vpop.f32.mrb[119].mxu0  ;;  %v4259_v10 = vld [vmem:[%s7618_s0 + $0x3b0] sm:$0xff] }
0x2a0d   : > { %v4260_v20 = vld [vmem:[%s7618_s0 + $0x3b8] sm:$0xff] }
0x2a0e   : > { %v4493_v21 = vsel %vm624_vm3, %v4489_v19, -inf }
0x2a0f   : > { %4494 = vmax.xlane.f32.xlu1 %v4493_v21  ;;  %v4261_v21 = vld [vmem:[%s7618_s0 + $0x3c0] sm:$0xff] }
0x2a20   : > { %4628 = vrot.lane.b32.xlu1 %v4299_v60, %s7649_s6 }
0x2a24   : > { %4675 = vrot.lane.b32.xlu1 %v4300_v5, %s7649_s6 }
0x2a7c   : > { %v4387_v57 = vpop.f32.mrb[120].mxu1 }
0x2a7d   : > { %v4486_v22 = vmul.f32 0.35355338, %v4387_v57  ;;  %v5827_v54 = vpop.f32.mrb[121].mxu1  ;;  %v4746_v57 = vpack.c.bf16 %v4261_v21, %v4260_v20  ;;  %v4824_v20 = vld [vmem:[%s7618_s0 + $0x400] sm:$0xff]  ;;  %v4825_v21 = vld [vmem:[%s7618_s0 + $0x408] sm:$0xff] }
0x2a7e   : > { %v4390_v23 = vpop.f32.mrb[122].mxu1 }
0x2a7f   : > { %v4490_v24 = vadd.f32 %v6216_v18, %v4486_v22  ;;  %v5828_v40 = vpop.f32.mrb[123].mxu1 }
0x2a80   : > { %v4433_v25 = vpop.f32.mrb[120].mxu0 }
0x2a81   : > { %v4487_v8 = vmul.f32 0.35355338, %v4433_v25  ;;  %v5833_v26 = vpop.f32.mrb[121].mxu0  ;;  %v4496_v27 = vsel %vm624_vm3, %v4490_v24, -inf }
0x2a82   : > { %4497 = vmax.xlane.f32.xlu0 %v4496_v27  ;;  %v4436_v14 = vpop.f32.mrb[122].mxu0 }
0x2a83   : > { %v4491_v28 = vadd.f32 %v6216_v18, %v4487_v8  ;;  %v5834_v32 = vpop.f32.mrb[123].mxu0 }
0x2a84   : > { %v4479_v30 = vpop.f32.mrb[124].mxu1 }
0x2a85   : > { %v4488_v31 = vmul.f32 0.35355338, %v4479_v30  ;;  %v5839_v33 = vpop.f32.mrb[125].mxu1  ;;  %v4499_v35 = vsel %vm624_vm3, %v4491_v28, -inf }
0x2a86   : > { %v4482_v36 = vpop.f32.mrb[126].mxu1  ;;  %4500 = vmax.xlane.f32.xlu0 %v4499_v35 }
0x2a87   : > { %v4492_v38 = vadd.f32 %v6216_v18, %v4488_v31  ;;  %v5840_v39 = vpop.f32.mrb[127].mxu1  ;;  %v4745_v18 = vpack.c.bf16 %v4259_v10, %v4258_v56 }
0x2a89   : > { %v4502_v42 = vsel %vm624_vm3, %v4492_v38, -inf }
0x2a8a   : > { %4503 = vmax.xlane.f32.xlu0 %v4502_v42 }
0x2a9c   : > { %v4495_v6 = vpop.xlane.xlu1 %4494 }
0x2a9d   : > { %v4505_v43 = vsub.f32 %v4489_v19, %v4495_v6 }
0x2a9f   : > { %v4509_v45 = vmul.f32 1.442695, %v4505_v43 }
0x2aa0   : > { %4581 = vrot.lane.b32.xlu0 %v7391_v37, %s7649_s6  ;;  %v4629_v50 = vpop.permute.xlu1 %4628  ;;  %s252_s6 = sand.u32 1, %s6271_s19  }
0x2aa1   : > { %6192 = vpow2.f32 %v4509_v45  ;;  %s5135_s7 = sshll.u32 %s252_s6, 3  ;;  %s5026_s10 = scalar_lea.sflag [#allocation3], %s252_s6 }
0x2aa2   : > { %s254_s11 = scalar_lea.vmem [#allocation2], %s5135_s7 }
0x2aa4   : > { %v4676_v9 = vpop.permute.xlu1 %4675 }
0x2aab   : > { %v6193_v47 = vpop.eup %6192 }
0x2aac   : > { %v4529_v49 = vpack.c.bf16 %v6193_v47, %v6193_v47  ;;  %v4517_v7 = vsel %vm624_vm3, %v6193_v47, 0.0 }
0x2aae   : > { %5844 = vmatmul.mubr.msk.bf16.vlgmr.msra.gmra.mrb[124].mxu0 %vm624_vm3, %v4529_v49 }
0x2aaf   : > { %5854 = vmatpush3.bf16.msra.mxu0 %v4629_v50  ;;  %5855 = vmatprep.mubr.msk.bf16.mxu0 %vm6282_vm1, %v6281_v17 }
0x2ab0   : > { %5865 = vmatprep.subr.bf16.mxu0 %v6281_v17 }
0x2b0f   : > { %v4498_v51 = vpop.xlane.xlu0 %4497 }
0x2b10   : > { %v4506_v52 = vsub.f32 %v4490_v24, %v4498_v51 }
0x2b12   : > { %v4511_v44 = vmul.f32 1.442695, %v4506_v52 }
0x2b13   : > { %v4501_v46 = vpop.xlane.xlu0 %4500 }
0x2b14   : > { %6194 = vpow2.f32 %v4511_v44  ;;  %v4507_v55 = vsub.f32 %v4491_v28, %v4501_v46  ;;  %v5227_v44 = vld [vmem:[%s7618_s0 + $0x3c8] ss:$0 sm:$0xff] }
0x2b16   : > { %v4513_v60 = vmul.f32 1.442695, %v4507_v55 }
0x2b17   : > { %v4504_v37 = vpop.xlane.xlu0 %4503 }
0x2b18   : > { %6196 = vpow2.f32 %v4513_v60  ;;  %v4508_v62 = vsub.f32 %v4492_v38, %v4504_v37 }
0x2b1a   : > { %v4515_v1 = vmul.f32 1.442695, %v4508_v62 }
0x2b1b   : > { %v4582_v2 = vpop.permute.xlu0 %4581 }
0x2b1c   : > { %6198 = vpow2.f32 %v4515_v1  ;;  %5848 = vmatpush3.bf16.msra.mxu1 %v4582_v2 }
0x2b1d   : > { %5859 = vmatprep.subr.bf16.mxu1 %v6281_v17 }
0x2b1e   : > { %v6195_v61 = vpop.eup %6194 }
0x2b1f   : > { %v4520_v0 = vsel %vm624_vm3, %v6195_v61, 0.0  ;;  %v4530_v3 = vpack.c.bf16 %v6195_v61, %v6195_v61 }
0x2b20   : > { %4521 = vadd.xlane.f32.xlu1 %v4520_v0 }
0x2b21   : > { %5850 = vmatmul.mubr.msk.bf16.vlgmr.msra.gmra.mrb[128].mxu1 %vm624_vm3, %v4530_v3 }
0x2b22   : > { %v6197_v63 = vpop.eup %6196  ;;  %5860 = vmatpush3.bf16.msra.mxu1 %v4676_v9  ;;  %5861 = vmatprep.mubr.msk.bf16.mxu1 %vm6282_vm1, %v6281_v17 }
0x2b23   : > { %v4523_v4 = vsel %vm624_vm3, %v6197_v63, 0.0  ;;  %v4531_v5 = vpack.c.bf16 %v6197_v63, %v6197_v63  ;;  %5873 = vmatprep.subr.bf16.mxu1 %v6281_v17 }
0x2b24   : > { %4524 = vadd.xlane.f32.xlu0 %v4523_v4  ;;  %v4819_v4 = vld [vmem:[%s7618_s0 + $0x3d8] sm:$0xff] }
0x2b25   : > { %5856 = vmatmul.mubr.msk.bf16.vlgmr.msra.gmra.mrb[128].mxu0 %vm624_vm3, %v4531_v5  ;;  %v4820_v5 = vld [vmem:[%s7618_s0 + $0x3e0] sm:$0xff] }
0x2b26   : > { %v6199_v41 = vpop.eup %6198  ;;  %5869 = vmatprep.mubr.msk.bf16.mxu0 %vm6282_vm1, %v6281_v17  ;;  %5866 = vmatpush3.bf16.msra.mxu0 %v4745_v18 }
0x2b27   : > { %v4526_v59 = vsel %vm624_vm3, %v6199_v41, 0.0  ;;  %v4532_v58 = vpack.c.bf16 %v6199_v41, %v6199_v41  ;;  %5867 = vmatprep.subr.bf16.mxu0 %v6281_v17  ;;  %v4821_v41 = vld [vmem:[%s7618_s0 + $0x3e8] sm:$0xff] }
0x2b28   : > { %4527 = vadd.xlane.f32.xlu0 %v4526_v59  ;;  %v4822_v59 = vld [vmem:[%s7618_s0 + $0x3f0] sm:$0xff] }
0x2b29   : > { %5862 = vmatmul.mubr.msk.bf16.vlgmr.msra.gmra.mrb[132].mxu1 %vm624_vm3, %v4532_v58  ;;  %v4835_v58 = vpack.c.bf16 %v4822_v59, %v4821_v41 }
0x2b2a   : > { %5877 = vmatprep.mubr.msk.bf16.mxu1 %vm6282_vm1, %v6281_v17  ;;  %5868 = vmatpush3.bf16.msra.mxu0 %v4746_v57  ;;  %v4893_v57 = vpack.c.bf16 %v4825_v21, %v4824_v20 }
0x2b2b   : > { %5881 = vmatprep.subr.bf16.mxu0 %v6281_v17 }
0x2b2c   : > { %4518 = vadd.xlane.f32.xlu0 %v4517_v7 }
0x2b81   : > { %v4574_v11 = vpop.f32.mrb[124].mxu0 }
0x2b82   : > { %v5845_v12 = vpop.f32.mrb[125].mxu0 }
0x2b83   : > { %v4577_v13 = vpop.f32.mrb[126].mxu0 }
0x2b84   : > { %v5846_v15 = vpop.f32.mrb[127].mxu0  ;;  %v4795_v13 = vld [vmem:[%s7618_s0 + $0x3d0] sm:$0x3] }
0x2b85   : > { %v4812_v15 = vrot.slane %v4795_v13, %v6402_v29  ;;  %v4817_v56 = vrot.slane %v4795_v13, %v6408_v34 }
0x2bad   : > { %v4522_v53 = vpop.xlane.xlu1 %4521 }
0x2bae   : > { %6200 = vrcp.f32 %v4522_v53 }
0x2bb1   : > { %v4525_v16 = vpop.xlane.xlu0 %4524 }
0x2bb2   : > { %6202 = vrcp.f32 %v4525_v16 }
0x2bb5   : > { %v4528_v19 = vpop.xlane.xlu0 %4527 }
0x2bb6   : > { %6204 = vrcp.f32 %v4528_v19 }
0x2bb8   : > { %v6201_v22 = vpop.eup %6200 }
0x2bb9   : > { %v4519_v39 = vpop.xlane.xlu0 %4518 }
0x2bba   : > { %6206 = vrcp.f32 %v4519_v39 }
0x2bbc   : > { %v6203_v8 = vpop.eup %6202 }
0x2bc0   : > { %v6205_v30 = vpop.eup %6204 }
0x2bc4   : > { %v6207_v42 = vpop.eup %6206 }
0x2bc5   : > { %v4725_v43 = vmul.f32 %v6207_v42, %v4574_v11 }
0x2bf4   : > { %v4621_v54 = vpop.f32.mrb[128].mxu1 }
0x2bf5   : > { %v4726_v23 = vmul.f32 %v6201_v22, %v4621_v54  ;;  %v5851_v24 = vpop.f32.mrb[129].mxu1  ;;  %v4826_v22 = vld [vmem:[%s7618_s0 + $0x410] sm:$0xff]  ;;  %v4827_v54 = vld [vmem:[%s7618_s0 + $0x418] sm:$0xff] }
0x2bf6   : > { %v4624_v40 = vpop.f32.mrb[130].mxu1  ;;  %v4828_v24 = vld [vmem:[%s7618_s0 + $0x420] sm:$0xff] }
0x2bf7   : > { %4730 = vrot.lane.b32.xlu1 %v4726_v23, %s7647_s30  ;;  %v5852_v25 = vpop.f32.mrb[131].mxu1  ;;  %v4894_v23 = vpack.c.bf16 %v4827_v54, %v4826_v22  ;;  %v4829_v40 = vld [vmem:[%s7618_s0 + $0x428] sm:$0xff] }
0x2bf8   : > { %v4668_v26 = vpop.f32.mrb[128].mxu0  ;;  %v4895_v25 = vpack.c.bf16 %v4829_v40, %v4828_v24 }
0x2bf9   : > { %v4727_v27 = vmul.f32 %v6203_v8, %v4668_v26  ;;  %v5857_v14 = vpop.f32.mrb[129].mxu0  ;;  %v4830_v8 = vld [vmem:[%s7618_s0 + $0x430] sm:$0xff]  ;;  %v4831_v26 = vld [vmem:[%s7618_s0 + $0x438] sm:$0xff] }
0x2bfa   : > { %v4671_v28 = vpop.f32.mrb[130].mxu0  ;;  %v5229_v14 = vld [vmem:[%s7618_s0 + $0x3f8] ss:$0 sm:$0xff] }
0x2bfb   : > { %4734 = vrot.lane.b32.xlu0 %v4727_v27, %s7643_s15  ;;  %v5858_v32 = vpop.f32.mrb[131].mxu0  ;;  %v4896_v27 = vpack.c.bf16 %v4831_v26, %v4830_v8  ;;  %s5039_s15 = sshll.u32 %s254_s11, 4  ;;  %s7578_s15 = int_to_ptr.vmem [resolvable:$true] %s5039_s15 }
0x2bfc   : > { %v4715_v31 = vpop.f32.mrb[132].mxu1  ;;  %s6217_s22 = scalar_lea.vmem %s7578_s15, 128  ;;  %p6224_p0 = scmp.lt.s32.totalorder %s7578_s15, %s6222_s25 }
0x2bfd   : > { %v4728_v33 = vmul.f32 %v6205_v30, %v4715_v31  ;;  %v5863_v35 = vpop.f32.mrb[133].mxu1  ;;  %p6218_p11 = scmp.ne.s32.totalorder %s7578_s15, %s6217_s22  ;;  %p6225_p1 = scmp.lt.s32.totalorder %s6223_s26, %s6217_s22 }
0x2bfe   : > { %v4718_v36 = vpop.f32.mrb[134].mxu1 }
0x2bff   : > { %v5864_v38 = vpop.f32.mrb[135].mxu1  ;;  %4738 = vrot.lane.b32.xlu1 %v4728_v33, %s7644_s16  ;;  %p6219_p12 = pnand %p6218_p11, %p6360_p5  ;;  %p6226_p2 = por %p6225_p1, %p6224_p0 }
0x2c01   : > { %p6220_p13 = pneg %p6219_p12 }
0x2c03   : > { %p6227_p3 = pnand %p6226_p2, %p6220_p13 }
0x2c69   : > { %v4731_v6 = vpop.permute.xlu1 %4730 }
0x2c6a   : > { %v4741_v47 = vsel %vm404_vm2, %v4725_v43, %v4731_v6 }
0x2c6d   : > { %v4735_v45 = vpop.permute.xlu0 %4734 }
0x2c6e   : > { %v4742_v49 = vsel %vm624_vm3, %v4741_v47, %v4735_v45 }
0x2c71   : > { %v4739_v50 = vpop.permute.xlu1 %4738 }
0x2c72   : > { %v4743_v51 = vsel %vm933_vm4, %v4742_v49, %v4739_v50  ;;  %v5231_v50 = vld [vmem:[%s7618_s0 + $0x440] ss:$0 sm:$0xff] }
0x2c73   : > { %v4744_v52 = vpack.c.bf16 %v4743_v51, %v4743_v51 }
0x2c75   : > { %5870 = vmatmul.mubr.msk.bf16.vlgmr.msra.gmra.mrb[132].mxu0 %vm276_vm0, %v4744_v52 }
0x2c76   : > { %5889 = vmatprep.mubr.msk.bf16.mxu0 %vm6282_vm1, %v6281_v17  ;;  %5882 = vmatpush3.bf16.msra.mxu0 %v4893_v57 }
0x2c77   : > { %5883 = vmatprep.subr.bf16.mxu0 %v6281_v17 }
0x2c7a   : > { %5884 = vmatpush3.bf16.msra.mxu0 %v4894_v23 }
0x2c7b   : > { %5885 = vmatprep.subr.bf16.mxu0 %v6281_v17 }
0x2c7e   : > { %5886 = vmatpush3.bf16.msra.mxu0 %v4895_v25 }
0x2c7f   : > { %5887 = vmatprep.subr.bf16.mxu0 %v6281_v17 }
0x2c82   : > { %5888 = vmatpush3.bf16.msra.mxu0 %v4896_v27 }
0x2d48   : > { %v4788_v46 = vpop.f32.mrb[132].mxu0 }
0x2d49   : > { %v4789_v55 = vadd.f32 %v5227_v44, %v4788_v46  ;;  %v5871_v60 = vpop.f32.mrb[133].mxu0 }
0x2d4a   : > { %v4791_v37 = vpop.f32.mrb[134].mxu0 }
0x2d4b   : > { %v4794_v62 = vadd.f32 %v4789_v55, %v7401_v48  ;;  %v5872_v1 = vpop.f32.mrb[135].mxu0  ;;  %v4834_v48 = vpack.c.bf16 %v4820_v5, %v4819_v4  ;;  %v4971_v4 = vld [vmem:[%s7618_s0 + $0x460] sm:$0xff]  ;;  %v4972_v5 = vld [vmem:[%s7618_s0 + $0x468] sm:$0xff] }
0x2d4d   : > { %v4796_v2 = vsel %vm276_vm0, %v4794_v62, 0.0  ;;  %5874 = vmatpush3.bf16.msra.mxu1 %v4834_v48  ;;  %v4975_v48 = vpack.c.bf16 %v4972_v5, %v4971_v4 }
0x2d4e   : > { %4797 = vadd.xlane.f32.xlu1 %v4796_v2  ;;  %5875 = vmatprep.subr.bf16.mxu1 %v6281_v17 }
0x2d51   : > { %5876 = vmatpush3.bf16.msra.mxu1 %v4835_v58 }
0x2d52   : > { %5893 = vmatprep.subr.bf16.mxu1 %v6281_v17 }
0x2ddb   : > { %v4798_v61 = vpop.xlane.xlu1 %4797 }
0x2ddc   : > { %v4799_v0 = vmul.f32 0.03125, %v4798_v61 }
0x2dde   : > { %v4800_v3 = vsub.f32 %v4794_v62, %v4799_v0 }
0x2de0   : > { %v4801_v9 = vmul.f32 %v4800_v3, %v4800_v3 }
0x2de2   : > { %v4802_v63 = vsel %vm276_vm0, %v4801_v9, 0.0  ;;  %v4970_v9 = vld [vmem:[%s7618_s0 + $0x458] sm:$0xff] }
0x2de3   : > { %4803 = vadd.xlane.f32.xlu0 %v4802_v63 }
0x2e70   : > { %v4804_v7 = vpop.xlane.xlu0 %4803 }
0x2e71   : > { %v4805_v11 = vmul.f32 0.03125, %v4804_v7  ;;  %v4945_v7 = vld [vmem:[%s7618_s0 + $0x448] sm:$0x3] }
0x2e73   : > { %v4806_v12 = vadd.f32 1e-05, %v4805_v11  ;;  %v4962_v11 = vrot.slane %v4945_v7, %v6402_v29 }
0x2e75   : > { %6208 = vrsqrt.f32 %v4806_v12 }
0x2e7f   : > { %v6209_v53 = vpop.eup %6208 }
0x2e80   : > { %v4808_v16 = vmul.f32 %v6209_v53, %v4800_v3  ;;  %v4969_v3 = vld [vmem:[%s7618_s0 + $0x450] sm:$0xff] }
0x2e81   : > { %v4974_v63 = vpack.c.bf16 %v4970_v9, %v4969_v3 }
0x2e82   : > { %v4813_v10 = vmul.f32 %v4812_v15, %v4808_v16  ;;  %v4967_v15 = vrot.slane %v4945_v7, %v6408_v34 }
0x2e84   : > { %v4818_v18 = vadd.f32 %v4817_v56, %v4813_v10 }
0x2e86   : > { %v4833_v19 = vpack.c.bf16 %v4818_v18, %v4818_v18 }
0x2e88   : > { %5878 = vmatmul.mubr.msk.bf16.vlgmr.msra.gmra.mrb[136].mxu1 %vm276_vm0, %v4833_v19 }
0x2e89   : > { %5897 = vmatprep.mubr.msk.bf16.mxu1 %vm6282_vm1, %v6281_v17  ;;  %5894 = vmatpush3.bf16.msra.mxu1 %v4974_v63 }
0x2e8a   : > { %5895 = vmatprep.subr.bf16.mxu1 %v6281_v17  ;;  %v5233_v17 = vld [vmem:[%s7618_s0 + $0x470] ss:$0 sm:$0xff] }
0x2e8d   : > { %5896 = vmatpush3.bf16.msra.mxu1 %v4975_v48 }
0x2f5b   : > { %v4877_v28 = vpop.f32.mrb[136].mxu1 }
0x2f5c   : > { %v4878_v32 = vadd.f32 %v5229_v14, %v4877_v28  ;;  %v5879_v30 = vpop.f32.mrb[137].mxu1 }
0x2f5d   : > { %v4880_v31 = vpop.f32.mrb[138].mxu1 }
0x2f5e   : > { %v4883_v33 = vmul.f32 %v4878_v32, %v4878_v32  ;;  %v5880_v35 = vpop.f32.mrb[139].mxu1 }
0x2f60   : > { %v4884_v36 = vmul.f32 %v4883_v33, %v4878_v32 }
0x2f62   : > { %v4885_v38 = vmul.f32 0.044715, %v4884_v36 }
0x2f64   : > { %v4886_v39 = vadd.f32 %v4885_v38, %v4878_v32 }
0x2f66   : > { %v4887_v42 = vmul.f32 0.7978846, %v4886_v39 }
0x2f68   : > { %6210 = vtanh.f32 %v4887_v42 }
0x2f72   : > { %v6211_v6 = vpop.eup %6210 }
0x2f73   : > { %v4889_v43 = vadd.f32 1.0, %v6211_v6 }
0x2f75   : > { %v4890_v45 = vmul.f32 0.5, %v4889_v43 }
0x2f77   : > { %v4891_v47 = vmul.f32 %v4890_v45, %v4878_v32 }
0x2f79   : > { %v4892_v49 = vpack.c.bf16 %v4891_v47, %v4891_v47 }
0x2f7b   : > { %5890 = vmatmul.mubr.msk.bf16.vlgmr.msra.gmra.mrb[136].mxu0 %vm1120_vm5, %v4892_v49 }
0x304e   : > { %v4938_v51 = vpop.f32.mrb[136].mxu0 }
0x304f   : > { %v4939_v52 = vadd.f32 %v5231_v50, %v4938_v51  ;;  %v5891_v44 = vpop.f32.mrb[137].mxu0 }
0x3050   : > { %v4941_v46 = vpop.f32.mrb[138].mxu0 }
0x3051   : > { %v4944_v55 = vadd.f32 %v4939_v52, %v4818_v18  ;;  %v5892_v60 = vpop.f32.mrb[139].mxu0 }
0x3053   : > { %v4946_v37 = vsel %vm276_vm0, %v4944_v55, 0.0 }
0x3054   : > { %4947 = vadd.xlane.f32.xlu0 %v4946_v37 }
0x30e1   : > { %v4948_v62 = vpop.xlane.xlu0 %4947 }
0x30e2   : > { %v4949_v1 = vmul.f32 0.03125, %v4948_v62 }
0x30e4   : > { %v4950_v2 = vsub.f32 %v4944_v55, %v4949_v1 }
0x30e6   : > { %v4951_v61 = vmul.f32 %v4950_v2, %v4950_v2 }
0x30e8   : > { %v4952_v0 = vsel %vm276_vm0, %v4951_v61, 0.0 }
0x30e9   : > { %4953 = vadd.xlane.f32.xlu1 %v4952_v0 }
0x3176   : > { %v4954_v41 = vpop.xlane.xlu1 %4953 }
0x3177   : > { %v4955_v59 = vmul.f32 0.03125, %v4954_v41 }
0x3179   : > { %v4956_v58 = vadd.f32 1e-05, %v4955_v59 }
0x317b   : > { %6212 = vrsqrt.f32 %v4956_v58 }
0x3185   : > { %v6213_v12 = vpop.eup %6212 }
0x3186   : > { %v4958_v13 = vmul.f32 %v6213_v12, %v4950_v2 }
0x3188   : > { %v4963_v53 = vmul.f32 %v4962_v11, %v4958_v13 }
0x318a   : > { %v4968_v16 = vadd.f32 %v4967_v15, %v4963_v53 }
0x318c   : > { %v4973_v56 = vpack.c.bf16 %v4968_v16, %v4968_v16 }
0x318e   : > { %5898 = vmatmul.mubr.msk.bf16.vlgmr.msra.gmra.mrb[140].mxu1 %vm276_vm0, %v4973_v56 }
0x3261   : > { %v5018_v29 = vpop.f32.mrb[140].mxu1 }
0x3262   : > { %v5019_v10 = vadd.f32 %v5233_v17, %v5018_v29  ;;  %v5899_v18 = vpop.f32.mrb[141].mxu1 }
0x3263   : > { %v5021_v34 = vpop.f32.mrb[142].mxu1 }
0x3264   : > { %5024 = vst [vmem:[%s254_s11] sm:$0xff] %v5019_v10  ;;  %v5900_v19 = vpop.f32.mrb[143].mxu1 }
0x3265   : > { %6230 = shalt.err (!%p6227_p3)
}
0x3266   : > { %s6231_s14 = scalar_lea.hbm %s7576_s17, 128  ;;  %s6235_s7 = scalar_lea.hbm %s7623_s5, 256 }
0x3267   : > { %p6232_p4 = scmp.ne.s32.totalorder %s7576_s17, %s6231_s14  ;;  %p6236_p9 = scmp.lt.u32.totalorder %s7576_s17, %s7623_s5 }
0x3268   : > { %p6237_p10 = scmp.lt.u32.totalorder %s6235_s7, %s6231_s14  ;;  %p6239_p12 = scmp.lt.u32.totalorder %s6231_s14, %s7576_s17 }
0x3269   : > { %p6233_p7 = pnand %p6232_p4, %p6360_p5 }
0x326a   : > { %p6238_p11 = por %p6237_p10, %p6236_p9 }
0x326b   : > { %p6234_p8 = pneg %p6233_p7 }
0x326c   : > { %p6240_p13 = por %p6239_p12, %p6238_p11 }
0x326e   : > { %p6241_p0 = pnand %p6240_p13, %p6234_p8 }
0x3270   : > { %6244 = shalt.err (!%p6241_p0)
}
0x3271   : > { %5901 = dma.vmem_to_hbm [thread:$0]  (%p6360_p5), %s7578_s15, 128, %s7576_s17, %s5026_s10  }
0x3272 PF: > { %p5907_p1 = scmp.ge.s32.totalorder %s6279_s21, 2  ;;  %s5051_s12 = sand.u32 1, %s6267_s18  }
0x3273   : > { %s5052_s11 = scalar_lea.sflag [#allocation3], %s5051_s12 }
0x3274   : > { %p5904_p2 = pnand %p5907_p1, %p6364_p6 }
0x3276   : > { %6262 = dma.done.wait (!%p5904_p2), %s5052_s11, 128  }
0x3277   : > { %6264 = vsyncadd (!%p5904_p2), %s5052_s11, 4294967168  ;;  %p15_p3 = scmp.ge.s32.totalorder %s6347_s24, 4   ;;  %s7652_s18 = smov %s6271_s19 }
0x3278   : > { %s7653_s19 = smov %s6275_s20  ;;  %s7654_s20 = smov %s6358_s27 }
0x3279   : > { %s7655_s21 = smov %s6347_s24  ;;  %17 = sbr.rel (!%p15_p3) target bundleno = 3 (0x3), region = 84 }
0x3280   :  { %5057 = vsyncpa [#allocation3], 1 }
0x3281   :  { %5059 = vsyncpa [#allocation3 + $0x1], 1 }

</bundles_post_ra>
